<compile_context>
chip_gen: v7x
topology: tpu7x:2x2x1
jax: 0.10.0
libtpu: 0.0.40
codegen_flags: <defaults>
</compile_context>

<pallas_src>
import functools

import jax
import jax.numpy as jnp
from jax.experimental import pallas as pl
from jax.experimental.pallas import tpu as pltpu


def _gat_mul_kernel(feat_t_ref, feat_d_ref, adj_ref, ew_ref, attn_l_ref,
                    attn_r_ref, wedge_ref, bias_ref, out_ref, *,
                    num_heads, out_feats, negative_slope):
    H, F = num_heads, out_feats

    adj = adj_ref[...]                                   # (T, S)
    ew = ew_ref[...]                                     # (T, S)

    # Mask handling hoisted out of the H*F work: 0/1 multiplier + additive
    # -inf-ish bias (replaces two selects per element per channel).
    adj01 = (adj > 0.0).astype(jnp.float32)
    mask_bias = (1.0 - adj01) * jnp.float32(-1e30)       # 0 on edges, -1e30 off

    feat_d = feat_d_ref[...]                             # (T, C) dst-tile feats
    attn_l = attn_l_ref[...]                             # (H, F)
    attn_r = attn_r_ref[...]                             # (H, F)

    head_slabs = []
    for h in range(H):                                   # tiny static unroll
        fh_t = feat_t_ref[h * F:(h + 1) * F, :]          # (F, S) src feats, head h
        al = attn_l[h:h + 1, :]                          # (1, F)
        ar = attn_r[h:h + 1, :]                          # (1, F)

        # el over all sources as one small MXU matmul with a lane-dense (1, S)
        # result (MXU is otherwise idle here).
        el_row = jnp.dot(al, fh_t, preferred_element_type=jnp.float32)  # (1, S)
        # er over the dst tile as elementwise multiply + lane reduce.
        er_col = jnp.sum(feat_d[:, h * F:(h + 1) * F] * ar,
                         axis=-1, keepdims=True)                        # (T, 1)

        # (el[src] + er[dst]) * edge weight, shared across the F channels.
        sew = (er_col + el_row) * ew                     # (T, S)

        # Batched over all F channels of this head: (F, T, S).
        w_h = wedge_ref[h * F:(h + 1) * F, :]            # (F, 1) edgefc weights
        e = sew[None, :, :] * w_h[:, :, None]            # (F, T, S)
        e = jnp.maximum(e, negative_slope * e)           # leaky_relu: 1 mul + 1 max
        e = e + mask_bias[None, :, :]                    # mask off non-edges

        m = jnp.max(e, axis=-1, keepdims=True)           # per-(f, dst) max
        p = adj01[None, :, :] * jnp.exp(e - m)           # masked exp (EUP-bound)
        denom = jnp.maximum(jnp.sum(p, axis=-1, keepdims=True),
                            jnp.float32(1e-20))          # zero in-degree guard

        # Aggregate messages with a VPU multiply + lane reduce:
        #   out[f, i] = sum_j p[f, i, j] * feat[j, h*F + f] / denom[f, i]
        num = jnp.sum(p * fh_t[:, None, :], axis=-1)     # (F, T)
        out_h = (num / denom[..., 0]).T                  # (T, F)
        head_slabs.append(out_h)

    # Single lane-dense (T, C) store with the bias folded in.
    out_ref[...] = (jnp.concatenate(head_slabs, axis=-1)
                    + bias_ref[...]).astype(out_ref.dtype)


def gat_conv_mul(x, adj, ew, params, *, num_heads, out_feats,
                 negative_slope=0.2, tile_dst=128):
    """Forward pass of GATConvMul on a dense adjacency / edge-weight matrix."""
    N = x.shape[0]
    H, F = num_heads, out_feats
    C = H * F

    # fc projection once, on the MXU via XLA (hoisted out of the per-tile
    # kernel per the review); everything downstream is O(N^2 * H * F) and
    # lives in the Pallas kernel.
    feat = jnp.dot(x, params["wfc"], preferred_element_type=jnp.float32)  # (N, C)

    # Destination-row tiling.  Padded dst rows have no edges and are sliced off
    # (the zero in-degree guard keeps them finite); padded src columns are
    # fully masked, so padding is semantically inert.
    T = min(tile_dst, N)
    n_tiles = -(-N // T)
    n_pad = n_tiles * T
    if n_pad != N:
        pad = n_pad - N
        feat = jnp.pad(feat, ((0, pad), (0, 0)))
        adj = jnp.pad(adj, ((0, pad), (0, pad)))
        ew = jnp.pad(ew, ((0, pad), (0, pad)))
    S = n_pad

    feat_t = feat.T                         # (C, S): per-head (F, S) rows, no
                                            # in-kernel transpose needed
    wedge_col = params["wedge"].reshape(C, 1)
    bias_row = params["bias"].reshape(1, C)

    kernel = functools.partial(_gat_mul_kernel, num_heads=H, out_feats=F,
                               negative_slope=negative_slope)

    out = pl.pallas_call(
        kernel,
        out_shape=jax.ShapeDtypeStruct((n_pad, C), jnp.float32),
        grid_spec=pltpu.PrefetchScalarGridSpec(
            num_scalar_prefetch=0,
            grid=(n_tiles,),
            in_specs=[
                pl.BlockSpec((C, S), lambda i: (0, 0)),   # feat^T (all src, resident)
                pl.BlockSpec((T, C), lambda i: (i, 0)),   # feat (dst tile)
                pl.BlockSpec((T, S), lambda i: (i, 0)),   # adj  (dst tile x all src)
                pl.BlockSpec((T, S), lambda i: (i, 0)),   # edge weights
                pl.BlockSpec((H, F), lambda i: (0, 0)),   # attn_l
                pl.BlockSpec((H, F), lambda i: (0, 0)),   # attn_r
                pl.BlockSpec((C, 1), lambda i: (0, 0)),   # edgefc weight column
                pl.BlockSpec((1, C), lambda i: (0, 0)),   # bias row
            ],
            out_specs=pl.BlockSpec((T, C), lambda i: (i, 0)),
        ),
        # dst rows are independent -> parallel (lets v7x split across its 2 TCs).
        # For large graphs, size T so 2x double-buffered (T, S) f32 tiles plus
        # the resident (C, S) feat stay under ~24-28 MiB (v7x has 64 MiB VMEM),
        # raising vmem_limit_bytes via CompilerParams if needed.
        compiler_params=pltpu.CompilerParams(
            dimension_semantics=("parallel",)),
    )(feat_t, feat, adj, ew, params["attn_l"], params["attn_r"],
      wedge_col, bias_row)

    return out[:N].reshape(N, H, F)


def _reference(x, adj, ew, params, *, num_heads, out_feats, negative_slope=0.2):
    N = x.shape[0]
    H, F = num_heads, out_feats
    feat = (x @ params["wfc"]).reshape(N, H, F)
    el = (feat * params["attn_l"][None]).sum(-1)           # (N, H)
    er = (feat * params["attn_r"][None]).sum(-1)           # (N, H)
    s = el[None, :, :] + er[:, None, :]                    # (dst, src, H)
    edge_ft = ew[:, :, None, None] * params["wedge"].reshape(1, 1, H, F)
    e = s[..., None] * edge_ft                             # (dst, src, H, F)
    e = jnp.where(e >= 0, e, negative_slope * e)
    mask = (adj > 0.0)[:, :, None, None]
    e_m = jnp.where(mask, e, -1e30)
    m = jnp.max(e_m, axis=1, keepdims=True)
    p = jnp.where(mask, jnp.exp(e_m - m), 0.0)
    a = p / jnp.maximum(jnp.sum(p, axis=1, keepdims=True), 1e-20)
    rst = jnp.einsum("ijhf,jhf->ihf", a, feat)
    return rst + params["bias"].reshape(1, H, F)


if __name__ == "__main__":
    N = 16            # number of graph nodes
    in_feats = 32
    edge_feats = 1    # edge weight is a scalar per edge (unsqueeze(-1) in forward)
    out_feats = 8
    num_heads = 4
    C = num_heads * out_feats

    key = jax.random.PRNGKey(0)
    kx, kfc, kedge, kal, kar, kb, kadj, kew = jax.random.split(key, 8)

    gain = jnp.sqrt(2.0)  # calculate_gain('relu')
    std_fc = gain * jnp.sqrt(2.0 / (in_feats + C))
    std_attn = gain * jnp.sqrt(2.0 / (out_feats + num_heads * out_feats))

    params = {
        # fc.weight is (C, Din) in torch; stored transposed for x @ W
        "wfc": jax.random.normal(kfc, (in_feats, C), jnp.float32) * std_fc,
        # edgefc.weight is (C, edge_feats=1) -> flat (C,) vector
        "wedge": jax.random.normal(kedge, (C,), jnp.float32) * 0.5,
        "attn_l": jax.random.normal(kal, (num_heads, out_feats), jnp.float32) * std_attn,
        "attn_r": jax.random.normal(kar, (num_heads, out_feats), jnp.float32) * std_attn,
        # reset_parameters sets bias to 0; use a small nonzero one here so the
        # fused bias-add path is actually exercised by the check.
        "bias": jax.random.normal(kb, (C,), jnp.float32) * 0.1,
    }

    x = jax.random.normal(kx, (N, in_feats), jnp.float32)

    # dense directed graph with guaranteed self-loops (no zero in-degree)
    adj = (jax.random.uniform(kadj, (N, N)) < 0.3).astype(jnp.float32)
    adj = jnp.clip(adj + jnp.eye(N, dtype=jnp.float32), 0.0, 1.0)
    ew = jax.random.normal(kew, (N, N), jnp.float32)  # scalar edge weights

    out = gat_conv_mul(x, adj, ew, params, num_heads=num_heads,
                       out_feats=out_feats)
    out = jax.block_until_ready(out)

    ref = _reference(x, adj, ew, params, num_heads=num_heads,
                     out_feats=out_feats)
    max_err = float(jnp.max(jnp.abs(out - ref)))
    assert out.shape == (N, num_heads, out_feats)
    assert max_err < 5e-2, f"mismatch vs reference: {max_err}"
    print("KERNEL_OK")
</pallas_src>

<mosaic_0001>
module attributes {stable_mosaic.version = 11 : i64} {
  func.func @_gat_mul_kernel(%arg0: i32, %arg1: memref<32x16xf32, #tpu.memory_space<vmem>>, %arg2: memref<16x32xf32, #tpu.memory_space<vmem>>, %arg3: memref<16x16xf32, #tpu.memory_space<vmem>>, %arg4: memref<16x16xf32, #tpu.memory_space<vmem>>, %arg5: memref<4x8xf32, #tpu.memory_space<vmem>>, %arg6: memref<4x8xf32, #tpu.memory_space<vmem>>, %arg7: memref<32x1xf32, #tpu.memory_space<vmem>>, %arg8: memref<1x32xf32, #tpu.memory_space<vmem>>, %arg9: memref<16x32xf32, #tpu.memory_space<vmem>>) attributes {dimension_semantics = [#tpu.dimension_semantics<parallel>], iteration_bounds = array<i64: 1>, scalar_prefetch = 0 : i64, scratch_operands = 0 : i64, tpu.core_type = #tpu.core_type<tc>, window_params = [{pipeline_mode = #tpu.pipeline_mode<synchronous>, transform_indices = @transform_0, window_bounds = array<i64: 32, 16>}, {transform_indices = @transform_1, window_bounds = array<i64: 16, 32>}, {transform_indices = @transform_2, window_bounds = array<i64: 16, 16>}, {transform_indices = @transform_3, window_bounds = array<i64: 16, 16>}, {pipeline_mode = #tpu.pipeline_mode<synchronous>, transform_indices = @transform_4, window_bounds = array<i64: 4, 8>}, {pipeline_mode = #tpu.pipeline_mode<synchronous>, transform_indices = @transform_5, window_bounds = array<i64: 4, 8>}, {pipeline_mode = #tpu.pipeline_mode<synchronous>, transform_indices = @transform_6, window_bounds = array<i64: 32, 1>}, {pipeline_mode = #tpu.pipeline_mode<synchronous>, transform_indices = @transform_7, window_bounds = array<i64: 1, 32>}, {transform_indices = @transform_8, window_bounds = array<i64: 16, 32>}]} {
    %c0 = arith.constant 0 : index
    %c0_0 = arith.constant 0 : index
    %0 = vector.load %arg3[%c0, %c0_0] : memref<16x16xf32, #tpu.memory_space<vmem>>, vector<16x16xf32>
    %c0_1 = arith.constant 0 : index
    %c0_2 = arith.constant 0 : index
    %1 = vector.load %arg4[%c0_1, %c0_2] : memref<16x16xf32, #tpu.memory_space<vmem>>, vector<16x16xf32>
    %cst = arith.constant 0.000000e+00 : f32
    %2 = vector.broadcast %cst : f32 to vector<16x16xf32>
    %3 = arith.cmpf ogt, %0, %2 : vector<16x16xf32>
    %4 = arith.extui %3 : vector<16x16xi1> to vector<16x16xi32>
    %5 = arith.sitofp %4 : vector<16x16xi32> to vector<16x16xf32>
    %cst_3 = arith.constant 1.000000e+00 : f32
    %6 = vector.broadcast %cst_3 : f32 to vector<16x16xf32>
    %7 = arith.subf %6, %5 : vector<16x16xf32>
    %cst_4 = arith.constant -1.000000e+30 : f32
    %8 = vector.broadcast %cst_4 : f32 to vector<16x16xf32>
    %9 = arith.mulf %7, %8 : vector<16x16xf32>
    %c0_5 = arith.constant 0 : index
    %c0_6 = arith.constant 0 : index
    %10 = vector.load %arg2[%c0_5, %c0_6] : memref<16x32xf32, #tpu.memory_space<vmem>>, vector<16x32xf32>
    %c0_7 = arith.constant 0 : index
    %c0_8 = arith.constant 0 : index
    %11 = vector.load %arg5[%c0_7, %c0_8] : memref<4x8xf32, #tpu.memory_space<vmem>>, vector<4x8xf32>
    %c0_9 = arith.constant 0 : index
    %c0_10 = arith.constant 0 : index
    %12 = vector.load %arg6[%c0_9, %c0_10] : memref<4x8xf32, #tpu.memory_space<vmem>>, vector<4x8xf32>
    %c0_11 = arith.constant 0 : index
    %c0_12 = arith.constant 0 : index
    %13 = vector.load %arg1[%c0_11, %c0_12] : memref<32x16xf32, #tpu.memory_space<vmem>>, vector<8x16xf32>
    %14 = vector.extract_strided_slice %11 {offsets = [0, 0], sizes = [1, 8], strides = [1, 1]} : vector<4x8xf32> to vector<1x8xf32>
    %15 = vector.extract_strided_slice %12 {offsets = [0, 0], sizes = [1, 8], strides = [1, 1]} : vector<4x8xf32> to vector<1x8xf32>
    %cst_13 = arith.constant dense<0.000000e+00> : vector<1x16xf32>
    %16 = tpu.matmul %14, %13, %cst_13 {dimension_numbers = #tpu.dot_dimension_numbers<[1], [0], [0], [1], [0, 0, 1, 1], [], []>} : vector<1x8xf32>, vector<8x16xf32>, vector<1x16xf32> -> vector<1x16xf32>
    %17 = vector.extract_strided_slice %10 {offsets = [0, 0], sizes = [16, 8], strides = [1, 1]} : vector<16x32xf32> to vector<16x8xf32>
    %18 = vector.broadcast %15 : vector<1x8xf32> to vector<16x8xf32>
    %19 = arith.mulf %17, %18 : vector<16x8xf32>
    %cst_14 = arith.constant dense<0.000000e+00> : vector<16xf32>
    %20 = vector.multi_reduction <add>, %19, %cst_14 [1] : vector<16x8xf32> to vector<16xf32>
    %21 = vector.shape_cast %20 : vector<16xf32> to vector<16x1xf32>
    %22 = vector.broadcast %21 : vector<16x1xf32> to vector<16x16xf32>
    %23 = vector.broadcast %16 : vector<1x16xf32> to vector<16x16xf32>
    %24 = arith.addf %22, %23 : vector<16x16xf32>
    %25 = arith.mulf %24, %1 : vector<16x16xf32>
    %c0_15 = arith.constant 0 : index
    %c0_16 = arith.constant 0 : index
    %26 = vector.load %arg7[%c0_15, %c0_16] : memref<32x1xf32, #tpu.memory_space<vmem>>, vector<8x1xf32>
    %27 = vector.shape_cast %25 : vector<16x16xf32> to vector<1x16x16xf32>
    %28 = vector.shape_cast %26 : vector<8x1xf32> to vector<8x1x1xf32>
    %29 = vector.broadcast %27 : vector<1x16x16xf32> to vector<8x16x16xf32>
    %30 = vector.broadcast %28 : vector<8x1x1xf32> to vector<8x16x16xf32>
    %31 = arith.mulf %29, %30 : vector<8x16x16xf32>
    %cst_17 = arith.constant 2.000000e-01 : f32
    %32 = vector.broadcast %cst_17 : f32 to vector<8x16x16xf32>
    %33 = arith.mulf %32, %31 : vector<8x16x16xf32>
    %34 = arith.maximumf %31, %33 : vector<8x16x16xf32>
    %35 = vector.shape_cast %9 : vector<16x16xf32> to vector<1x16x16xf32>
    %36 = vector.broadcast %35 : vector<1x16x16xf32> to vector<8x16x16xf32>
    %37 = arith.addf %34, %36 : vector<8x16x16xf32>
    %cst_18 = arith.constant dense<0xFF800000> : vector<8x16xf32>
    %38 = vector.multi_reduction <maximumf>, %37, %cst_18 [2] : vector<8x16x16xf32> to vector<8x16xf32>
    %39 = vector.shape_cast %38 : vector<8x16xf32> to vector<8x16x1xf32>
    %40 = vector.shape_cast %5 : vector<16x16xf32> to vector<1x16x16xf32>
    %41 = vector.broadcast %39 : vector<8x16x1xf32> to vector<8x16x16xf32>
    %42 = arith.subf %37, %41 : vector<8x16x16xf32>
    %43 = math.exp %42 : vector<8x16x16xf32>
    %44 = vector.broadcast %40 : vector<1x16x16xf32> to vector<8x16x16xf32>
    %45 = arith.mulf %44, %43 : vector<8x16x16xf32>
    %cst_19 = arith.constant dense<0.000000e+00> : vector<8x16xf32>
    %46 = vector.multi_reduction <add>, %45, %cst_19 [2] : vector<8x16x16xf32> to vector<8x16xf32>
    %47 = vector.shape_cast %46 : vector<8x16xf32> to vector<8x16x1xf32>
    %cst_20 = arith.constant 9.99999968E-21 : f32
    %48 = vector.broadcast %cst_20 : f32 to vector<8x16x1xf32>
    %49 = arith.maximumf %47, %48 : vector<8x16x1xf32>
    %50 = vector.shape_cast %13 : vector<8x16xf32> to vector<8x1x16xf32>
    %51 = vector.broadcast %50 : vector<8x1x16xf32> to vector<8x16x16xf32>
    %52 = arith.mulf %45, %51 : vector<8x16x16xf32>
    %cst_21 = arith.constant dense<0.000000e+00> : vector<8x16xf32>
    %53 = vector.multi_reduction <add>, %52, %cst_21 [2] : vector<8x16x16xf32> to vector<8x16xf32>
    %54 = vector.shape_cast %49 : vector<8x16x1xf32> to vector<8x16xf32>
    %55 = arith.divf %53, %54 : vector<8x16xf32>
    %56 = tpu.transpose %55, [1, 0] : vector<8x16xf32> -> vector<16x8xf32>
    %c8 = arith.constant 8 : index
    %c0_22 = arith.constant 0 : index
    %57 = vector.load %arg1[%c8, %c0_22] : memref<32x16xf32, #tpu.memory_space<vmem>>, vector<8x16xf32>
    %58 = vector.extract_strided_slice %11 {offsets = [1, 0], sizes = [1, 8], strides = [1, 1]} : vector<4x8xf32> to vector<1x8xf32>
    %59 = vector.extract_strided_slice %12 {offsets = [1, 0], sizes = [1, 8], strides = [1, 1]} : vector<4x8xf32> to vector<1x8xf32>
    %cst_23 = arith.constant dense<0.000000e+00> : vector<1x16xf32>
    %60 = tpu.matmul %58, %57, %cst_23 {dimension_numbers = #tpu.dot_dimension_numbers<[1], [0], [0], [1], [0, 0, 1, 1], [], []>} : vector<1x8xf32>, vector<8x16xf32>, vector<1x16xf32> -> vector<1x16xf32>
    %61 = vector.extract_strided_slice %10 {offsets = [0, 8], sizes = [16, 8], strides = [1, 1]} : vector<16x32xf32> to vector<16x8xf32>
    %62 = vector.broadcast %59 : vector<1x8xf32> to vector<16x8xf32>
    %63 = arith.mulf %61, %62 : vector<16x8xf32>
    %cst_24 = arith.constant dense<0.000000e+00> : vector<16xf32>
    %64 = vector.multi_reduction <add>, %63, %cst_24 [1] : vector<16x8xf32> to vector<16xf32>
    %65 = vector.shape_cast %64 : vector<16xf32> to vector<16x1xf32>
    %66 = vector.broadcast %65 : vector<16x1xf32> to vector<16x16xf32>
    %67 = vector.broadcast %60 : vector<1x16xf32> to vector<16x16xf32>
    %68 = arith.addf %66, %67 : vector<16x16xf32>
    %69 = arith.mulf %68, %1 : vector<16x16xf32>
    %c8_25 = arith.constant 8 : index
    %c0_26 = arith.constant 0 : index
    %70 = vector.load %arg7[%c8_25, %c0_26] : memref<32x1xf32, #tpu.memory_space<vmem>>, vector<8x1xf32>
    %71 = vector.shape_cast %69 : vector<16x16xf32> to vector<1x16x16xf32>
    %72 = vector.shape_cast %70 : vector<8x1xf32> to vector<8x1x1xf32>
    %73 = vector.broadcast %71 : vector<1x16x16xf32> to vector<8x16x16xf32>
    %74 = vector.broadcast %72 : vector<8x1x1xf32> to vector<8x16x16xf32>
    %75 = arith.mulf %73, %74 : vector<8x16x16xf32>
    %cst_27 = arith.constant 2.000000e-01 : f32
    %76 = vector.broadcast %cst_27 : f32 to vector<8x16x16xf32>
    %77 = arith.mulf %76, %75 : vector<8x16x16xf32>
    %78 = arith.maximumf %75, %77 : vector<8x16x16xf32>
    %79 = vector.shape_cast %9 : vector<16x16xf32> to vector<1x16x16xf32>
    %80 = vector.broadcast %79 : vector<1x16x16xf32> to vector<8x16x16xf32>
    %81 = arith.addf %78, %80 : vector<8x16x16xf32>
    %cst_28 = arith.constant dense<0xFF800000> : vector<8x16xf32>
    %82 = vector.multi_reduction <maximumf>, %81, %cst_28 [2] : vector<8x16x16xf32> to vector<8x16xf32>
    %83 = vector.shape_cast %82 : vector<8x16xf32> to vector<8x16x1xf32>
    %84 = vector.shape_cast %5 : vector<16x16xf32> to vector<1x16x16xf32>
    %85 = vector.broadcast %83 : vector<8x16x1xf32> to vector<8x16x16xf32>
    %86 = arith.subf %81, %85 : vector<8x16x16xf32>
    %87 = math.exp %86 : vector<8x16x16xf32>
    %88 = vector.broadcast %84 : vector<1x16x16xf32> to vector<8x16x16xf32>
    %89 = arith.mulf %88, %87 : vector<8x16x16xf32>
    %cst_29 = arith.constant dense<0.000000e+00> : vector<8x16xf32>
    %90 = vector.multi_reduction <add>, %89, %cst_29 [2] : vector<8x16x16xf32> to vector<8x16xf32>
    %91 = vector.shape_cast %90 : vector<8x16xf32> to vector<8x16x1xf32>
    %cst_30 = arith.constant 9.99999968E-21 : f32
    %92 = vector.broadcast %cst_30 : f32 to vector<8x16x1xf32>
    %93 = arith.maximumf %91, %92 : vector<8x16x1xf32>
    %94 = vector.shape_cast %57 : vector<8x16xf32> to vector<8x1x16xf32>
    %95 = vector.broadcast %94 : vector<8x1x16xf32> to vector<8x16x16xf32>
    %96 = arith.mulf %89, %95 : vector<8x16x16xf32>
    %cst_31 = arith.constant dense<0.000000e+00> : vector<8x16xf32>
    %97 = vector.multi_reduction <add>, %96, %cst_31 [2] : vector<8x16x16xf32> to vector<8x16xf32>
    %98 = vector.shape_cast %93 : vector<8x16x1xf32> to vector<8x16xf32>
    %99 = arith.divf %97, %98 : vector<8x16xf32>
    %100 = tpu.transpose %99, [1, 0] : vector<8x16xf32> -> vector<16x8xf32>
    %c16 = arith.constant 16 : index
    %c0_32 = arith.constant 0 : index
    %101 = vector.load %arg1[%c16, %c0_32] : memref<32x16xf32, #tpu.memory_space<vmem>>, vector<8x16xf32>
    %102 = vector.extract_strided_slice %11 {offsets = [2, 0], sizes = [1, 8], strides = [1, 1]} : vector<4x8xf32> to vector<1x8xf32>
    %103 = vector.extract_strided_slice %12 {offsets = [2, 0], sizes = [1, 8], strides = [1, 1]} : vector<4x8xf32> to vector<1x8xf32>
    %cst_33 = arith.constant dense<0.000000e+00> : vector<1x16xf32>
    %104 = tpu.matmul %102, %101, %cst_33 {dimension_numbers = #tpu.dot_dimension_numbers<[1], [0], [0], [1], [0, 0, 1, 1], [], []>} : vector<1x8xf32>, vector<8x16xf32>, vector<1x16xf32> -> vector<1x16xf32>
    %105 = vector.extract_strided_slice %10 {offsets = [0, 16], sizes = [16, 8], strides = [1, 1]} : vector<16x32xf32> to vector<16x8xf32>
    %106 = vector.broadcast %103 : vector<1x8xf32> to vector<16x8xf32>
    %107 = arith.mulf %105, %106 : vector<16x8xf32>
    %cst_34 = arith.constant dense<0.000000e+00> : vector<16xf32>
    %108 = vector.multi_reduction <add>, %107, %cst_34 [1] : vector<16x8xf32> to vector<16xf32>
    %109 = vector.shape_cast %108 : vector<16xf32> to vector<16x1xf32>
    %110 = vector.broadcast %109 : vector<16x1xf32> to vector<16x16xf32>
    %111 = vector.broadcast %104 : vector<1x16xf32> to vector<16x16xf32>
    %112 = arith.addf %110, %111 : vector<16x16xf32>
    %113 = arith.mulf %112, %1 : vector<16x16xf32>
    %c16_35 = arith.constant 16 : index
    %c0_36 = arith.constant 0 : index
    %114 = vector.load %arg7[%c16_35, %c0_36] : memref<32x1xf32, #tpu.memory_space<vmem>>, vector<8x1xf32>
    %115 = vector.shape_cast %113 : vector<16x16xf32> to vector<1x16x16xf32>
    %116 = vector.shape_cast %114 : vector<8x1xf32> to vector<8x1x1xf32>
    %117 = vector.broadcast %115 : vector<1x16x16xf32> to vector<8x16x16xf32>
    %118 = vector.broadcast %116 : vector<8x1x1xf32> to vector<8x16x16xf32>
    %119 = arith.mulf %117, %118 : vector<8x16x16xf32>
    %cst_37 = arith.constant 2.000000e-01 : f32
    %120 = vector.broadcast %cst_37 : f32 to vector<8x16x16xf32>
    %121 = arith.mulf %120, %119 : vector<8x16x16xf32>
    %122 = arith.maximumf %119, %121 : vector<8x16x16xf32>
    %123 = vector.shape_cast %9 : vector<16x16xf32> to vector<1x16x16xf32>
    %124 = vector.broadcast %123 : vector<1x16x16xf32> to vector<8x16x16xf32>
    %125 = arith.addf %122, %124 : vector<8x16x16xf32>
    %cst_38 = arith.constant dense<0xFF800000> : vector<8x16xf32>
    %126 = vector.multi_reduction <maximumf>, %125, %cst_38 [2] : vector<8x16x16xf32> to vector<8x16xf32>
    %127 = vector.shape_cast %126 : vector<8x16xf32> to vector<8x16x1xf32>
    %128 = vector.shape_cast %5 : vector<16x16xf32> to vector<1x16x16xf32>
    %129 = vector.broadcast %127 : vector<8x16x1xf32> to vector<8x16x16xf32>
    %130 = arith.subf %125, %129 : vector<8x16x16xf32>
    %131 = math.exp %130 : vector<8x16x16xf32>
    %132 = vector.broadcast %128 : vector<1x16x16xf32> to vector<8x16x16xf32>
    %133 = arith.mulf %132, %131 : vector<8x16x16xf32>
    %cst_39 = arith.constant dense<0.000000e+00> : vector<8x16xf32>
    %134 = vector.multi_reduction <add>, %133, %cst_39 [2] : vector<8x16x16xf32> to vector<8x16xf32>
    %135 = vector.shape_cast %134 : vector<8x16xf32> to vector<8x16x1xf32>
    %cst_40 = arith.constant 9.99999968E-21 : f32
    %136 = vector.broadcast %cst_40 : f32 to vector<8x16x1xf32>
    %137 = arith.maximumf %135, %136 : vector<8x16x1xf32>
    %138 = vector.shape_cast %101 : vector<8x16xf32> to vector<8x1x16xf32>
    %139 = vector.broadcast %138 : vector<8x1x16xf32> to vector<8x16x16xf32>
    %140 = arith.mulf %133, %139 : vector<8x16x16xf32>
    %cst_41 = arith.constant dense<0.000000e+00> : vector<8x16xf32>
    %141 = vector.multi_reduction <add>, %140, %cst_41 [2] : vector<8x16x16xf32> to vector<8x16xf32>
    %142 = vector.shape_cast %137 : vector<8x16x1xf32> to vector<8x16xf32>
    %143 = arith.divf %141, %142 : vector<8x16xf32>
    %144 = tpu.transpose %143, [1, 0] : vector<8x16xf32> -> vector<16x8xf32>
    %c24 = arith.constant 24 : index
    %c0_42 = arith.constant 0 : index
    %145 = vector.load %arg1[%c24, %c0_42] : memref<32x16xf32, #tpu.memory_space<vmem>>, vector<8x16xf32>
    %146 = vector.extract_strided_slice %11 {offsets = [3, 0], sizes = [1, 8], strides = [1, 1]} : vector<4x8xf32> to vector<1x8xf32>
    %147 = vector.extract_strided_slice %12 {offsets = [3, 0], sizes = [1, 8], strides = [1, 1]} : vector<4x8xf32> to vector<1x8xf32>
    %cst_43 = arith.constant dense<0.000000e+00> : vector<1x16xf32>
    %148 = tpu.matmul %146, %145, %cst_43 {dimension_numbers = #tpu.dot_dimension_numbers<[1], [0], [0], [1], [0, 0, 1, 1], [], []>} : vector<1x8xf32>, vector<8x16xf32>, vector<1x16xf32> -> vector<1x16xf32>
    %149 = vector.extract_strided_slice %10 {offsets = [0, 24], sizes = [16, 8], strides = [1, 1]} : vector<16x32xf32> to vector<16x8xf32>
    %150 = vector.broadcast %147 : vector<1x8xf32> to vector<16x8xf32>
    %151 = arith.mulf %149, %150 : vector<16x8xf32>
    %cst_44 = arith.constant dense<0.000000e+00> : vector<16xf32>
    %152 = vector.multi_reduction <add>, %151, %cst_44 [1] : vector<16x8xf32> to vector<16xf32>
    %153 = vector.shape_cast %152 : vector<16xf32> to vector<16x1xf32>
    %154 = vector.broadcast %153 : vector<16x1xf32> to vector<16x16xf32>
    %155 = vector.broadcast %148 : vector<1x16xf32> to vector<16x16xf32>
    %156 = arith.addf %154, %155 : vector<16x16xf32>
    %157 = arith.mulf %156, %1 : vector<16x16xf32>
    %c24_45 = arith.constant 24 : index
    %c0_46 = arith.constant 0 : index
    %158 = vector.load %arg7[%c24_45, %c0_46] : memref<32x1xf32, #tpu.memory_space<vmem>>, vector<8x1xf32>
    %159 = vector.shape_cast %157 : vector<16x16xf32> to vector<1x16x16xf32>
    %160 = vector.shape_cast %158 : vector<8x1xf32> to vector<8x1x1xf32>
    %161 = vector.broadcast %159 : vector<1x16x16xf32> to vector<8x16x16xf32>
    %162 = vector.broadcast %160 : vector<8x1x1xf32> to vector<8x16x16xf32>
    %163 = arith.mulf %161, %162 : vector<8x16x16xf32>
    %cst_47 = arith.constant 2.000000e-01 : f32
    %164 = vector.broadcast %cst_47 : f32 to vector<8x16x16xf32>
    %165 = arith.mulf %164, %163 : vector<8x16x16xf32>
    %166 = arith.maximumf %163, %165 : vector<8x16x16xf32>
    %167 = vector.shape_cast %9 : vector<16x16xf32> to vector<1x16x16xf32>
    %168 = vector.broadcast %167 : vector<1x16x16xf32> to vector<8x16x16xf32>
    %169 = arith.addf %166, %168 : vector<8x16x16xf32>
    %cst_48 = arith.constant dense<0xFF800000> : vector<8x16xf32>
    %170 = vector.multi_reduction <maximumf>, %169, %cst_48 [2] : vector<8x16x16xf32> to vector<8x16xf32>
    %171 = vector.shape_cast %170 : vector<8x16xf32> to vector<8x16x1xf32>
    %172 = vector.shape_cast %5 : vector<16x16xf32> to vector<1x16x16xf32>
    %173 = vector.broadcast %171 : vector<8x16x1xf32> to vector<8x16x16xf32>
    %174 = arith.subf %169, %173 : vector<8x16x16xf32>
    %175 = math.exp %174 : vector<8x16x16xf32>
    %176 = vector.broadcast %172 : vector<1x16x16xf32> to vector<8x16x16xf32>
    %177 = arith.mulf %176, %175 : vector<8x16x16xf32>
    %cst_49 = arith.constant dense<0.000000e+00> : vector<8x16xf32>
    %178 = vector.multi_reduction <add>, %177, %cst_49 [2] : vector<8x16x16xf32> to vector<8x16xf32>
    %179 = vector.shape_cast %178 : vector<8x16xf32> to vector<8x16x1xf32>
    %cst_50 = arith.constant 9.99999968E-21 : f32
    %180 = vector.broadcast %cst_50 : f32 to vector<8x16x1xf32>
    %181 = arith.maximumf %179, %180 : vector<8x16x1xf32>
    %182 = vector.shape_cast %145 : vector<8x16xf32> to vector<8x1x16xf32>
    %183 = vector.broadcast %182 : vector<8x1x16xf32> to vector<8x16x16xf32>
    %184 = arith.mulf %177, %183 : vector<8x16x16xf32>
    %cst_51 = arith.constant dense<0.000000e+00> : vector<8x16xf32>
    %185 = vector.multi_reduction <add>, %184, %cst_51 [2] : vector<8x16x16xf32> to vector<8x16xf32>
    %186 = vector.shape_cast %181 : vector<8x16x1xf32> to vector<8x16xf32>
    %187 = arith.divf %185, %186 : vector<8x16xf32>
    %188 = tpu.transpose %187, [1, 0] : vector<8x16xf32> -> vector<16x8xf32>
    %189 = tpu.concatenate %56, %100, %144, %188 in 1 : vector<16x8xf32>, vector<16x8xf32>, vector<16x8xf32>, vector<16x8xf32> -> vector<16x32xf32>
    %c0_52 = arith.constant 0 : index
    %c0_53 = arith.constant 0 : index
    %190 = vector.load %arg8[%c0_52, %c0_53] : memref<1x32xf32, #tpu.memory_space<vmem>>, vector<1x32xf32>
    %191 = vector.broadcast %190 : vector<1x32xf32> to vector<16x32xf32>
    %192 = arith.addf %189, %191 : vector<16x32xf32>
    %c0_54 = arith.constant 0 : index
    %c0_55 = arith.constant 0 : index
    %193 = vector.load %arg9[%c0_54, %c0_55] : memref<16x32xf32, #tpu.memory_space<vmem>>, vector<16x32xf32>
    tpu.vector_store %arg9[%c0_54, %c0_55], %192 {strides = array<i32>} : memref<16x32xf32, #tpu.memory_space<vmem>>, vector<16x32xf32>,
    return
  }
  func.func @transform_0(%arg0: i32) -> (i32, i32) {
    %c0_i32 = arith.constant 0 : i32
    %c0_i32_0 = arith.constant 0 : i32
    %c0_i32_1 = arith.constant 0 : i32
    return %c0_i32, %c0_i32_0 : i32, i32
  }
  func.func @transform_1(%arg0: i32) -> (i32, i32) {
    %c0_i32 = arith.constant 0 : i32
    %c0_i32_0 = arith.constant 0 : i32
    return %arg0, %c0_i32 : i32, i32
  }
  func.func @transform_2(%arg0: i32) -> (i32, i32) {
    %c0_i32 = arith.constant 0 : i32
    %c0_i32_0 = arith.constant 0 : i32
    return %arg0, %c0_i32 : i32, i32
  }
  func.func @transform_3(%arg0: i32) -> (i32, i32) {
    %c0_i32 = arith.constant 0 : i32
    %c0_i32_0 = arith.constant 0 : i32
    return %arg0, %c0_i32 : i32, i32
  }
  func.func @transform_4(%arg0: i32) -> (i32, i32) {
    %c0_i32 = arith.constant 0 : i32
    %c0_i32_0 = arith.constant 0 : i32
    %c0_i32_1 = arith.constant 0 : i32
    return %c0_i32, %c0_i32_0 : i32, i32
  }
  func.func @transform_5(%arg0: i32) -> (i32, i32) {
    %c0_i32 = arith.constant 0 : i32
    %c0_i32_0 = arith.constant 0 : i32
    %c0_i32_1 = arith.constant 0 : i32
    return %c0_i32, %c0_i32_0 : i32, i32
  }
  func.func @transform_6(%arg0: i32) -> (i32, i32) {
    %c0_i32 = arith.constant 0 : i32
    %c0_i32_0 = arith.constant 0 : i32
    %c0_i32_1 = arith.constant 0 : i32
    return %c0_i32, %c0_i32_0 : i32, i32
  }
  func.func @transform_7(%arg0: i32) -> (i32, i32) {
    %c0_i32 = arith.constant 0 : i32
    %c0_i32_0 = arith.constant 0 : i32
    %c0_i32_1 = arith.constant 0 : i32
    return %c0_i32, %c0_i32_0 : i32, i32
  }
  func.func @transform_8(%arg0: i32) -> (i32, i32) {
    %c0_i32 = arith.constant 0 : i32
    %c0_i32_0 = arith.constant 0 : i32
    return %arg0, %c0_i32 : i32, i32
  }
}

</mosaic_0001>

<bundles_post_ra>
// kernel: tpu_custom_call.1
= control target key start
LH: loop header
LB: loop body
LE: loop exit
PB: predicated region body
PF: predicated region fallthrough
CT: control target
= control target key end

     0   :  { %v5518_v1 = vlaneseq  ;;  %v3553_v2 = vmov 0.0   ;;  %v3554_v3 = vmov 1966171168   ;;  %vm3555_vm0 = vmmov 0   ;;  %s5509_s0 = inlined_call_operand.vmem [shape: f32[32,16], index: 0, kind: input, shape index: {}]   ;;  %s5510_s1 = inlined_call_operand.vmem [shape: f32[16,32], index: 1, kind: input, shape index: {}]   ;;  %s5511_s2 = inlined_call_operand.vmem [shape: f32[16,16], index: 2, kind: input, shape index: {}]   ;;  %s5512_s3 = inlined_call_operand.vmem [shape: f32[16,16], index: 3, kind: input, shape index: {}]   ;;  %s5513_s4 = inlined_call_operand.vmem [shape: f32[4,8], index: 4, kind: input, shape index: {}]   ;;  %s5514_s5 = inlined_call_operand.vmem [shape: f32[4,8], index: 5, kind: input, shape index: {}]   ;;  %s5515_s6 = inlined_call_operand.vmem [shape: f32[32,1], index: 6, kind: input, shape index: {}]   ;;  %s5516_s7 = inlined_call_operand.vmem [shape: f32[1,32], index: 7, kind: input, shape index: {}]   ;;  %s5517_s8 = inlined_call_operand.hbm [shape: f32[16,32], index: 8, kind: output, shape index: {}]  }
   0x1   :  { %v3613_v0 = vld [vmem:[%s5509_s0] sm:$0xff]  ;;  %3223 = vmatprep.subr.mxu0 %v3553_v2  ;;  %v147_v4 = vunpack.c.l.s4 %v3554_v3  ;;  %3228 = vmatprep.subr.mxu1 %v3553_v2  ;;  %vm49_vm1 = vcmask 64512  }
   0x2   :  { %v3619_v5 = vld [vmem:[%s5513_s4] sm:$0xf]  ;;  %3224 = vmatpush3.msra.mxu0 %v3613_v0  ;;  %v3624_v6 = vshrl.u32 %v5518_v1, 7  ;;  %3225 = vmatprep.mubr.msk.f32.mxu0 %vm3555_vm0, %v3553_v2 }
   0x3   :  { %v148_v7 = vunpack.c.0.s8 %v147_v4  ;;  %v3631_v8 = vld [vmem:[%s5514_s5] sm:$0xf]  ;;  %3230 = vmatprep.mubr.msk.f32.mxu1 %vm3555_vm0, %v3553_v2  ;;  %3226 = vmatmul.mubr.msk.f32.vlgmr.msra.gmra.mrb[0].mxu0 %vm49_vm1, %v3619_v5 }
   0x4   :  { %5521 = vst [vmem:[#allocation5_spill] sm:$0xff] %v3624_v6  ;;  %v3638_v9 = vsub.s32 0, %v3624_v6  ;;  %v143_v10 = vld [vmem:[%s5515_s6] sm:$0xff]  ;;  %3233 = vmatprep.subr.mxu0 %v3553_v2 }
   0x5   :  { %13 = vsyncpa [#allocation3], 0  ;;  %v3645_v11 = vsub.s32 %v148_v7, %v3624_v6  ;;  %v3650_v12 = vld [vmem:[%s5510_s1] sm:$0xff]  ;;  %v3655_v13 = vld [vmem:[%s5510_s1 + $0x8] sm:$0xff]  ;;  %v3556_v14 = vmov 0   ;;  %v145_v16 = vcombine.high %v143_v10, %v143_v10  ;;  %3235 = vmatprep.mubr.msk.f32.mxu0 %vm3555_vm0, %v3553_v2  ;;  %v900_v41 = vsub.s32 1, %v3624_v6 }
   0x6   :  { %3256 = vset.pattern.permute.xlu0 %v3556_v14  ;;  %3255 = vset.pattern.permute.xlu1 %v3556_v14  ;;  %v126_v15 = vrot.slane %v3631_v8, %v3638_v9  ;;  %v930_v37 = vld [vmem:[%s5515_s6 + $0x8] sm:$0xff]  ;;  %s3557_s18 = smov 8   ;;  %v825_v7 = vrot.slane %v3619_v5, 1  ;;  %s3558_s21 = smov 120   ;;  %vm322_vm4 = vcmask 130048   ;;  %vm712_vm5 = vcmask 130112  }
   0x7   :  { %v152_v17 = vrot.slane %v143_v10, %v3645_v11  ;;  %v159_v22 = vrot.slane %v145_v16, %v3645_v11  ;;  %v939_v42 = vrot.slane %v930_v37, %v3645_v11  ;;  %v901_v44 = vrot.slane %v3631_v8, %v900_v41  ;;  %v824_v4 = vld [vmem:[%s5509_s0 + $0x8] sm:$0xff]  ;;  %s3559_s22 = smov 16   ;;  %s3560_s23 = smov 24  }
   0x8   :  { %v127_v18 = vmul.f32 %v126_v15, %v3650_v12  ;;  %v128_v19 = vmul.f32 %v126_v15, %v3655_v13  ;;  %v932_v47 = vcombine.high %v930_v37, %v930_v37  ;;  %3229 = vmatpush3.msra.mxu1 %v824_v4  ;;  %s3562_s19 = smov 104   ;;  %vm777_vm6 = vcmask 1041409  }
   0x9   :  { %v168_v20 = vrot.slane %v152_v17, %v3645_v11  ;;  %v160_v25 = vcombine.high %v152_v17, %v152_v17  ;;  %v175_v27 = vrot.slane %v159_v22, %v3645_v11  ;;  %v161_v29 = vcombine.high %v159_v22, %v159_v22  ;;  %3231 = vmatmul.mubr.msk.f32.vlgmr.msra.gmra.mrb[0].mxu1 %vm49_vm1, %v825_v7 }
   0xa   :  { %v129_v21 = vsel %vm49_vm1, %v127_v18, 0.0  ;;  %v132_v24 = vsel %vm49_vm1, %v128_v19, 0.0  ;;  %v955_v45 = vrot.slane %v939_v42, %v3645_v11  ;;  %v947_v46 = vcombine.high %v939_v42, %v939_v42  ;;  %3238 = vmatprep.subr.mxu1 %v3553_v2  ;;  %3240 = vmatprep.mubr.msk.f32.mxu1 %vm3555_vm0, %v3553_v2 }
   0xb   :  { %130 = vadd.xlane.f32.xlu0 %v129_v21  ;;  %v197_v23 = vrot.slane %v168_v20, %v3638_v9  ;;  %v182_v26 = vrot.slane %v160_v25, %v3645_v11  ;;  %v213_v30 = vrot.slane %v175_v27, %v3638_v9  ;;  %v189_v31 = vrot.slane %v161_v29, %v3645_v11  ;;  %v31_v29 = vld [vmem:[%s5511_s2 + $0x8] sm:$0xff] }
   0xc   :  { %v191_v35 = vcombine.high %v175_v27, %v175_v27  ;;  %v190_v36 = vcombine.high %v168_v20, %v168_v20  ;;  %v984_v48 = vrot.slane %v955_v45, %v3638_v9  ;;  %v969_v49 = vrot.slane %v947_v46, %v3645_v11 }
   0xd   :  { %227 = vperm.xlu1 %3255, %v197_v23   ;;  %v201_v28 = vrot.slane %v182_v26, %v3638_v9  ;;  %v217_v32 = vrot.slane %v189_v31, %v3638_v9  ;;  %v192_v33 = vcombine.high %v182_v26, %v182_v26  ;;  %v193_v39 = vcombine.high %v189_v31, %v189_v31 }
   0xe   :  { %v221_v38 = vrot.slane %v191_v35, %v3638_v9  ;;  %v205_v40 = vrot.slane %v190_v36, %v3638_v9  ;;  %v988_v50 = vrot.slane %v969_v49, %v3638_v9  ;;  %v977_v51 = vcombine.high %v955_v45, %v955_v45 }
   0xf   :  { %133 = vadd.xlane.f32.xlu0 %v132_v24  ;;  %v209_v34 = vrot.slane %v192_v33, %v3638_v9  ;;  %v225_v43 = vrot.slane %v193_v39, %v3638_v9  ;;  %v946_v52 = vrot.slane %v932_v47, %v3645_v11  ;;  %v979_v54 = vcombine.high %v969_v49, %v969_v49  ;;  %v30_v24 = vld [vmem:[%s5511_s2] sm:$0xff]  ;;  %s3561_s2 = smov 112  }
  0x10   :  { %v992_v53 = vrot.slane %v977_v51, %v3638_v9  ;;  %v1675_v18 = vsub.s32 2, %v3624_v6  ;;  %v2450_v21 = vsub.s32 3, %v3624_v6  ;;  %vm34_vm2 = vcmp.gt.f32.partialorder %v30_v24, 0.0  ;;  %v4311_v6 = vld [vmem:[%s5512_s3] sm:$0xff] }
  0x11   :  { %231 = vperm.xlu1 %3255, %v201_v28   ;;  %v948_v55 = vcombine.high %v946_v52, %v946_v52  ;;  %v996_v56 = vrot.slane %v979_v54, %v3638_v9  ;;  %v962_v58 = vrot.slane %v946_v52, %v3645_v11  ;;  %v3735_v31 = vsel %vm34_vm2, 1.0, %v3553_v2 }
  0x12   :  { %v1676_v20 = vrot.slane %v3631_v8, %v1675_v18  ;;  %v2451_v22 = vrot.slane %v3631_v8, %v2450_v21  ;;  %v3727_v8 = vld [vmem:[%s5512_s3] sm:$0xff]  ;;  %vm35_vm3 = vcmp.gt.f32.partialorder %v31_v29, 0.0  ;;  %v40_v37 = vsub.f32 1.0, %v3735_v31 }
  0x13   :  { %v976_v57 = vrot.slane %v948_v55, %v3645_v11  ;;  %v1000_v59 = vrot.slane %v962_v58, %v3638_v9  ;;  %v978_v61 = vcombine.high %v962_v58, %v962_v58  ;;  %vm779_vm7 = vcmask 1042434  }
  0x14   :  { %v3749_v42 = vmul.f32 -1e+30, %v40_v37  ;;  %vm781_vm8 = vcmask 1043459   ;;  %vm783_vm9 = vcmask 1044484   ;;  %vm785_vm10 = vcmask 1045509  }
  0x15   :  { %243 = vperm.xlu1 %3255, %v213_v30   ;;  %v1004_v60 = vrot.slane %v976_v57, %v3638_v9  ;;  %v1008_v62 = vrot.slane %v978_v61, %v3638_v9  ;;  %v980_v63 = vcombine.high %v976_v57, %v976_v57  ;;  %v3732_v30 = vld [vmem:[%s5512_s3 + $0x8] sm:$0xff]  ;;  %vm787_vm11 = vcmask 1046534  }
  0x16   :  { %vm789_vm12 = vcmask 1047559   ;;  %vm3177_vm13 = vcmask 195584   ;;  %vm3189_vm14 = vcmask 261120  }
  0x17   :  { %v1012_v3 = vrot.slane %v980_v63, %v3638_v9 }
  0x19   :  { %247 = vperm.xlu1 %3255, %v217_v32  }
  0x1d   :  { %239 = vperm.xlu1 %3255, %v209_v34  }
  0x21   :  { %251 = vperm.xlu1 %3255, %v221_v38   ;;  %v3745_v38 = vsel %vm35_vm3, 1.0, %v3553_v2 }
  0x22   :  { %v41_v45 = vsub.f32 1.0, %v3745_v38 }
  0x24   :  { %v3757_v51 = vmul.f32 -1e+30, %v41_v45 }
  0x25   :  { %235 = vperm.xlu0 %3256, %v205_v40   ;;  %255 = vperm.xlu1 %3255, %v225_v43  }
  0x29   :  { %903 = vrot.lane.b32.xlu0 %v901_v44, %s3557_s18  ;;  %1030 = vperm.xlu1 %3255, %v1000_v59  }
  0x2d   :  { %1014 = vperm.xlu0 %3256, %v984_v48  }
  0x31   :  { %1018 = vperm.xlu0 %3256, %v988_v50  }
  0x35   :  { %1022 = vperm.xlu0 %3256, %v992_v53  }
  0x39   :  { %1026 = vperm.xlu0 %3256, %v996_v56  }
  0x3d   :  { %1034 = vperm.xlu0 %3256, %v1004_v60  }
  0x41   :  { %1038 = vperm.xlu0 %3256, %v1008_v62  }
  0x45   :  { %1042 = vperm.xlu0 %3256, %v1012_v3  }
  0x8c   :  { %v3715_v23 = vpop.permute.xlu1 %227 }
  0x90   :  { %v232_v25 = vpop.permute.xlu1 %231 }
  0x94   :  { %v3741_v36 = vpop.permute.xlu1 %243 }
  0x98   :  { %v131_v10 = vpop.xlane.xlu0 %130  ;;  %v3752_v46 = vpop.permute.xlu1 %247 }
  0x9c   :  { %v134_v14 = vpop.xlane.xlu0 %133  ;;  %v3765_v57 = vpop.permute.xlu1 %239 }
  0xa4   :  { %v236_v15 = vpop.permute.xlu0 %235 }
  0xa8   :  { %v904_v16 = vpop.permute.xlu0 %903 }
  0xa9   :  { %v906_v17 = vmul.f32 %v904_v16, %v3650_v12  ;;  %v907_v19 = vmul.f32 %v904_v16, %v3655_v13 }
  0xab   :  { %910 = vrot.lane.b32.xlu0 %v906_v17, %s3558_s21 }
  0xaf   :  { %912 = vrot.lane.b32.xlu0 %v907_v19, %s3558_s21 }
  0xb3   :  { %1678 = vrot.lane.b32.xlu0 %v1676_v20, %s3559_s22  ;;  %v3787_v20 = vpop.permute.xlu0 %1014 }
  0xb7   :  { %2453 = vrot.lane.b32.xlu0 %v2451_v22, %s3560_s23  ;;  %v3795_v29 = vpop.permute.xlu0 %1018 }
  0xd6   :  { %v119_v26 = vpop.f32.mrb[0].mxu0 }
  0xd7   :  { %v138_v27 = vrot.slane %v119_v26, %v3638_v9  ;;  %v3227_v28 = vpop.f32.mrb[1].mxu0 }
  0xd9   :  { %v139_v32 = vadd.f32 %v138_v27, %v131_v10  ;;  %v140_v33 = vadd.f32 %v138_v27, %v134_v14  ;;  %v3779_v14 = vpop.permute.xlu1 %251 }
  0xdb   :  { %v141_v34 = vmul.f32 %v139_v32, %v3727_v8  ;;  %v3739_v35 = vmul.f32 %v140_v33, %v3732_v30 }
  0xdd   :  { %v258_v39 = vmul.f32 %v3715_v23, %v141_v34  ;;  %v260_v40 = vmul.f32 %v232_v25, %v141_v34  ;;  %v261_v41 = vmul.f32 %v232_v25, %v3739_v35  ;;  %v262_v50 = vmul.f32 %v236_v15, %v141_v34  ;;  %v256_v22 = vpop.permute.xlu1 %255 }
  0xde   :  { %v263_v52 = vmul.f32 %v236_v15, %v3739_v35  ;;  %v264_v58 = vmul.f32 %v3765_v57, %v141_v34  ;;  %v266_v63 = vmul.f32 %v3741_v36, %v141_v34  ;;  %v268_v15 = vmul.f32 %v3752_v46, %v141_v34 }
  0xdf   :  { %v274_v43 = vmul.f32 0.2, %v258_v39  ;;  %v276_v44 = vmul.f32 0.2, %v260_v40  ;;  %v277_v49 = vmul.f32 0.2, %v261_v41  ;;  %v270_v21 = vmul.f32 %v3779_v14, %v141_v34 }
  0xe0   :  { %v278_v56 = vmul.f32 0.2, %v262_v50  ;;  %v279_v62 = vmul.f32 0.2, %v263_v52  ;;  %v280_v10 = vmul.f32 0.2, %v264_v58  ;;  %v272_v28 = vmul.f32 %v256_v22, %v141_v34  ;;  %v3807_v34 = vpop.permute.xlu0 %1022 }
  0xe1   :  { %v290_v47 = vmax.f32 %v258_v39, %v274_v43  ;;  %v292_v48 = vmax.f32 %v260_v40, %v276_v44  ;;  %v293_v55 = vmax.f32 %v261_v41, %v277_v49  ;;  %v282_v19 = vmul.f32 0.2, %v266_v63 }
  0xe2   :  { %v294_v61 = vmax.f32 %v262_v50, %v278_v56  ;;  %v295_v7 = vmax.f32 %v263_v52, %v279_v62  ;;  %v296_v18 = vmax.f32 %v264_v58, %v280_v10  ;;  %v284_v27 = vmul.f32 0.2, %v268_v15  ;;  %v3832_v10 = vpop.f32.mrb[0].mxu1 }
  0xe3   :  { %v3755_v2 = vadd.f32 %v290_v47, %v3749_v42  ;;  %v3763_v54 = vadd.f32 %v292_v48, %v3749_v42  ;;  %v3771_v60 = vadd.f32 %v293_v55, %v3757_v51  ;;  %v298_v26 = vmax.f32 %v266_v63, %v282_v19 }
  0xe4   :  { %v3777_v4 = vadd.f32 %v294_v61, %v3749_v42  ;;  %v3785_v17 = vadd.f32 %v295_v7, %v3757_v51  ;;  %v3793_v25 = vadd.f32 %v296_v18, %v3749_v42  ;;  %v286_v32 = vmul.f32 0.2, %v270_v21  ;;  %v3814_v49 = vpop.permute.xlu0 %1026 }
  0xe5   :  { %v323_v53 = vsel %vm322_vm4, %v3755_v2, -inf  ;;  %v329_v59 = vsel %vm322_vm4, %v3763_v54, -inf  ;;  %v332_v3 = vsel %vm322_vm4, %v3771_v60, -inf  ;;  %v3800_v37 = vadd.f32 %v298_v26, %v3749_v42 }
  0xe6   :  { %324 = vmax.xlane.f32.xlu1 %v323_v53  ;;  %v335_v16 = vsel %vm322_vm4, %v3777_v4, -inf  ;;  %v338_v24 = vsel %vm322_vm4, %v3785_v17, -inf  ;;  %v341_v33 = vsel %vm322_vm4, %v3793_v25, -inf  ;;  %v300_v39 = vmax.f32 %v268_v15, %v284_v27  ;;  %v3232_v15 = vpop.f32.mrb[1].mxu1 }
  0xe7   :  { %v288_v40 = vmul.f32 0.2, %v272_v28  ;;  %v347_v41 = vsel %vm322_vm4, %v3800_v37, -inf  ;;  %v302_v44 = vmax.f32 %v270_v21, %v286_v32  ;;  %v265_v19 = vmul.f32 %v3765_v57, %v3739_v35  ;;  %v3881_v15 = vpop.permute.xlu1 %1030 }
  0xe8   :  { %v3805_v43 = vadd.f32 %v300_v39, %v3749_v42  ;;  %v3823_v55 = vpop.permute.xlu0 %1034  ;;  %v1600_v32 = vrot.slane %v3619_v5, 2 }
  0xe9   :  { %v3812_v47 = vadd.f32 %v302_v44, %v3749_v42  ;;  %v304_v48 = vmax.f32 %v272_v28, %v288_v40  ;;  %v269_v28 = vmul.f32 %v3752_v46, %v3739_v35  ;;  %v1599_v40 = vld [vmem:[%s5509_s0 + $0x10] sm:$0xff]  ;;  %v273_v46 = vmul.f32 %v256_v22, %v3739_v35 }
  0xea   :  { %330 = vmax.xlane.f32.xlu1 %v329_v59  ;;  %v353_v45 = vsel %vm322_vm4, %v3805_v43, -inf  ;;  %3234 = vmatpush3.msra.mxu0 %v1599_v40 }
  0xeb   :  { %v359_v50 = vsel %vm322_vm4, %v3812_v47, -inf  ;;  %v3819_v52 = vadd.f32 %v304_v48, %v3749_v42  ;;  %v285_v39 = vmul.f32 0.2, %v269_v28  ;;  %3236 = vmatmul.mubr.msk.f32.vlgmr.msra.gmra.mrb[2].mxu0 %vm49_vm1, %v1600_v32 }
  0xec   :  { %v3825_v56 = vpop.permute.xlu0 %1038 }
  0xed   :  { %v365_v53 = vsel %vm322_vm4, %v3819_v52, -inf  ;;  %v301_v44 = vmax.f32 %v269_v28, %v285_v39 }
  0xee   :  { %333 = vmax.xlane.f32.xlu1 %v332_v3 }
  0xf0   :  { %v3827_v58 = vpop.permute.xlu0 %1042 }
  0xf2   :  { %336 = vmax.xlane.f32.xlu1 %v335_v16  ;;  %v259_v16 = vmul.f32 %v3715_v23, %v3739_v35  ;;  %v271_v23 = vmul.f32 %v3779_v14, %v3739_v35 }
  0xf4   :  { %v275_v18 = vmul.f32 0.2, %v259_v16  ;;  %v287_v5 = vmul.f32 0.2, %v271_v23 }
  0xf6   :  { %339 = vmax.xlane.f32.xlu1 %v338_v24  ;;  %v291_v21 = vmax.f32 %v259_v16, %v275_v18  ;;  %v281_v24 = vmul.f32 0.2, %v265_v19 }
  0xf8   :  { %v3841_v26 = vadd.f32 %v291_v21, %v3757_v51 }
  0xfa   :  { %342 = vmax.xlane.f32.xlu1 %v341_v33  ;;  %v326_v57 = vsel %vm322_vm4, %v3841_v26, -inf }
  0xfe   :  { %348 = vmax.xlane.f32.xlu1 %v347_v41 }
 0x102   :  { %354 = vmax.xlane.f32.xlu1 %v353_v45  ;;  %v289_v45 = vmul.f32 0.2, %v273_v46 }
 0x106   :  { %360 = vmax.xlane.f32.xlu1 %v359_v50  ;;  %v3866_v50 = vadd.f32 %v301_v44, %v3757_v51 }
 0x108   :  { %v356_v22 = vsel %vm322_vm4, %v3866_v50, -inf }
 0x10a   :  { %366 = vmax.xlane.f32.xlu1 %v365_v53 }
 0x11d   :  { %v911_v59 = vpop.permute.xlu0 %910 }
 0x121   :  { %v913_v61 = vpop.permute.xlu0 %912 }
 0x122   :  { %v919_v62 = vsel %vm49_vm1, %v913_v61, 0.0  ;;  %v305_v61 = vmax.f32 %v273_v46, %v289_v45 }
 0x123   :  { %920 = vadd.xlane.f32.xlu1 %v919_v62 }
 0x125   :  { %v1679_v63 = vpop.permute.xlu0 %1678 }
 0x126   :  { %v1681_v3 = vmul.f32 %v1679_v63, %v3650_v12  ;;  %v1682_v7 = vmul.f32 %v1679_v63, %v3655_v13  ;;  %v267_v12 = vmul.f32 %v3741_v36, %v3739_v35  ;;  %v297_v13 = vmax.f32 %v265_v19, %v281_v24 }
 0x127   :  { %v303_v35 = vmax.f32 %v271_v23, %v287_v5  ;;  %v3876_v63 = vadd.f32 %v305_v61, %v3757_v51 }
 0x128   :  { %1685 = vrot.lane.b32.xlu0 %v1681_v3, %s3561_s2  ;;  %v283_v27 = vmul.f32 0.2, %v267_v12  ;;  %v3851_v33 = vadd.f32 %v297_v13, %v3757_v51 }
 0x129   :  { %v3871_v53 = vadd.f32 %v303_v35, %v3757_v51  ;;  %v368_v3 = vsel %vm322_vm4, %v3876_v63, -inf }
 0x12a   :  { %v299_v36 = vmax.f32 %v267_v12, %v283_v27  ;;  %v344_v14 = vsel %vm322_vm4, %v3851_v33, -inf }
 0x12b   :  { %v362_v62 = vsel %vm322_vm4, %v3871_v53, -inf }
 0x12c   :  { %1687 = vrot.lane.b32.xlu0 %v1682_v7, %s3561_s2  ;;  %v3860_v41 = vadd.f32 %v299_v36, %v3757_v51  ;;  %v916_v7 = vsel %vm49_vm1, %v911_v59, 0.0 }
 0x12e   :  { %v350_v48 = vsel %vm322_vm4, %v3860_v41, -inf }
 0x14b   :  { %327 = vmax.xlane.f32.xlu0 %v326_v57 }
 0x14f   :  { %345 = vmax.xlane.f32.xlu0 %v344_v14 }
 0x153   :  { %351 = vmax.xlane.f32.xlu0 %v350_v48 }
 0x157   :  { %357 = vmax.xlane.f32.xlu0 %v356_v22 }
 0x15b   :  { %363 = vmax.xlane.f32.xlu0 %v362_v62 }
 0x15f   :  { %369 = vmax.xlane.f32.xlu0 %v368_v3 }
 0x163   :  { %917 = vadd.xlane.f32.xlu0 %v916_v7 }
 0x173   :  { %v325_v16 = vpop.xlane.xlu1 %324 }
 0x174   :  { %v371_v18 = vsub.f32 %v3755_v2, %v325_v16 }
 0x176   :  { %v387_v19 = vmul.f32 1.442695, %v371_v18 }
 0x177   :  { %v331_v21 = vpop.xlane.xlu1 %330 }
 0x178   :  { %3265 = vpow2.f32 %v387_v19  ;;  %v373_v24 = vsub.f32 %v3763_v54, %v331_v21 }
 0x17a   :  { %v391_v12 = vmul.f32 1.442695, %v373_v24 }
 0x17b   :  { %v3885_v13 = vpop.xlane.xlu1 %333 }
 0x17c   :  { %3267 = vpow2.f32 %v391_v12 }
 0x17f   :  { %v337_v27 = vpop.xlane.xlu1 %336 }
 0x180   :  { %v375_v28 = vsub.f32 %v3777_v4, %v337_v27  ;;  %v507_v27 = vrot.slane %v3613_v0, %v3645_v11 }
 0x182   :  { %v3266_v32 = vpop.eup %3265  ;;  %v395_v59 = vmul.f32 1.442695, %v375_v28 }
 0x183   :  { %v3888_v23 = vpop.xlane.xlu1 %339  ;;  %v419_v57 = vmul.f32 %v3266_v32, %v3735_v31 }
 0x184   :  { %3269 = vpow2.f32 %v395_v59  ;;  %v515_v59 = vcombine.high %v507_v27, %v507_v27 }
 0x185   :  { %v435_v2 = vsel %vm322_vm4, %v419_v57, 0.0 }
 0x186   :  { %v3268_v36 = vpop.eup %3267  ;;  %436 = vadd.xlane.f32.xlu1 %v435_v2 }
 0x187   :  { %v343_v39 = vpop.xlane.xlu1 %342  ;;  %v421_v54 = vmul.f32 %v3268_v36, %v3735_v31 }
 0x188   :  { %v377_v40 = vsub.f32 %v3793_v25, %v343_v39 }
 0x189   :  { %v441_v46 = vsel %vm322_vm4, %v421_v54, 0.0 }
 0x18a   :  { %v399_v5 = vmul.f32 1.442695, %v377_v40  ;;  %442 = vadd.xlane.f32.xlu1 %v441_v46 }
 0x18b   :  { %v349_v4 = vpop.xlane.xlu1 %348 }
 0x18c   :  { %3271 = vpow2.f32 %v399_v5  ;;  %v379_v14 = vsub.f32 %v3800_v37, %v349_v4  ;;  %v537_v5 = vrot.slane %v515_v59, %v3645_v11 }
 0x18e   :  { %v3270_v44 = vpop.eup %3269  ;;  %v403_v45 = vmul.f32 1.442695, %v379_v14 }
 0x18f   :  { %v355_v48 = vpop.xlane.xlu1 %354  ;;  %v423_v35 = vmul.f32 %v3270_v44, %v3735_v31  ;;  %v500_v44 = vcombine.high %v3613_v0, %v3613_v0 }
 0x190   :  { %3273 = vpow2.f32 %v403_v45  ;;  %v381_v22 = vsub.f32 %v3805_v43, %v355_v48 }
 0x191   :  { %v447_v61 = vsel %vm322_vm4, %v423_v35, 0.0 }
 0x192   :  { %v407_v62 = vmul.f32 1.442695, %v381_v22  ;;  %448 = vadd.xlane.f32.xlu1 %v447_v61  ;;  %v3922_v22 = vrot.slane %v537_v5, %v3638_v9 }
 0x193   :  { %v361_v25 = vpop.xlane.xlu1 %360 }
 0x194   :  { %3275 = vpow2.f32 %v407_v62  ;;  %v383_v3 = vsub.f32 %v3812_v47, %v361_v25  ;;  %v514_v62 = vrot.slane %v500_v44, %v3645_v11 }
 0x196   :  { %v3272_v7 = vpop.eup %3271  ;;  %v411_v16 = vmul.f32 1.442695, %v383_v3  ;;  %v591_v3 = vmul.f32 %v3922_v22, %v421_v54  ;;  %v516_v0 = vcombine.high %v514_v62, %v514_v62 }
 0x197   :  { %v367_v18 = vpop.xlane.xlu1 %366  ;;  %v425_v37 = vmul.f32 %v3272_v7, %v3735_v31 }
 0x198   :  { %3277 = vpow2.f32 %v411_v16  ;;  %v385_v19 = vsub.f32 %v3819_v52, %v367_v18  ;;  %v523_v52 = vrot.slane %v507_v27, %v3645_v11  ;;  %v547_v16 = vcombine.high %v537_v5, %v537_v5 }
 0x199   :  { %v453_v21 = vsel %vm322_vm4, %v425_v37, 0.0  ;;  %v530_v18 = vrot.slane %v514_v62, %v3645_v11 }
 0x19a   :  { %v3274_v24 = vpop.eup %3273  ;;  %v415_v43 = vmul.f32 1.442695, %v385_v19  ;;  %454 = vadd.xlane.f32.xlu1 %v453_v21  ;;  %v3913_v46 = vrot.slane %v523_v52, %v3638_v9  ;;  %v545_v61 = vcombine.high %v523_v52, %v523_v52  ;;  %v611_v19 = vsel %vm322_vm4, %v591_v3, 0.0 }
 0x19b   :  { %v427_v12 = vmul.f32 %v3274_v24, %v3735_v31  ;;  %v3938_v24 = vrot.slane %v547_v16, %v3638_v9  ;;  %v546_v59 = vcombine.high %v530_v18, %v530_v18 }
 0x19c   :  { %3279 = vpow2.f32 %v415_v43  ;;  %v589_v48 = vmul.f32 %v3913_v46, %v419_v57  ;;  %v3928_v7 = vrot.slane %v545_v61, %v3638_v9  ;;  %v3933_v57 = vrot.slane %v3832_v10, %v3638_v9 }
 0x19d   :  { %v459_v47 = vsel %vm322_vm4, %v427_v12, 0.0  ;;  %v3941_v43 = vrot.slane %v530_v18, %v3638_v9  ;;  %v544_v10 = vrot.slane %v516_v0, %v3645_v11  ;;  %v374_v18 = vsub.f32 %v3771_v60, %v3885_v13 }
 0x19e   :  { %v3276_v28 = vpop.eup %3275  ;;  %460 = vadd.xlane.f32.xlu1 %v459_v47  ;;  %v605_v25 = vsel %vm322_vm4, %v589_v48, 0.0  ;;  %v593_v21 = vmul.f32 %v3928_v7, %v423_v35 }
 0x19f   :  { %v429_v32 = vmul.f32 %v3276_v28, %v3735_v31  ;;  %v595_v28 = vmul.f32 %v3938_v24, %v425_v37 }
 0x1a0   :  { %v617_v47 = vsel %vm322_vm4, %v593_v21, 0.0 }
 0x1a1   :  { %v465_v2 = vsel %vm322_vm4, %v429_v32, 0.0  ;;  %v623_v52 = vsel %vm322_vm4, %v595_v28, 0.0 }
 0x1a2   :  { %v3278_v36 = vpop.eup %3277  ;;  %466 = vadd.xlane.f32.xlu1 %v465_v2  ;;  %v597_v2 = vmul.f32 %v3941_v43, %v427_v12 }
 0x1a3   :  { %v431_v39 = vmul.f32 %v3278_v36, %v3735_v31  ;;  %v3953_v36 = vrot.slane %v544_v10, %v3638_v9 }
 0x1a4   :  { %v629_v37 = vsel %vm322_vm4, %v597_v2, 0.0 }
 0x1a5   :  { %v471_v40 = vsel %vm322_vm4, %v431_v39, 0.0  ;;  %v599_v5 = vmul.f32 %v3953_v36, %v429_v32  ;;  %v3969_v32 = vpop.permute.xlu0 %2453 }
 0x1a6   :  { %v3280_v4 = vpop.eup %3279  ;;  %472 = vadd.xlane.f32.xlu1 %v471_v40  ;;  %v3956_v40 = vrot.slane %v546_v59, %v3638_v9 }
 0x1a7   :  { %v433_v14 = vmul.f32 %v3280_v4, %v3735_v31  ;;  %v548_v4 = vcombine.high %v544_v10, %v544_v10  ;;  %v635_v44 = vsel %vm322_vm4, %v599_v5, 0.0 }
 0x1a8   :  { %v601_v12 = vmul.f32 %v3956_v40, %v431_v39 }
 0x1a9   :  { %v477_v45 = vsel %vm322_vm4, %v433_v14, 0.0  ;;  %v3975_v39 = vpop.permute.xlu0 %1685 }
 0x1aa   :  { %478 = vadd.xlane.f32.xlu1 %v477_v45  ;;  %v3965_v45 = vrot.slane %v548_v4, %v3638_v9  ;;  %v641_v61 = vsel %vm322_vm4, %v601_v12, 0.0 }
 0x1ac   :  { %v603_v62 = vmul.f32 %v3965_v45, %v433_v14 }
 0x1ad   :  { %v3981_v14 = vpop.permute.xlu0 %1687 }
 0x1ae   :  { %606 = vadd.xlane.f32.xlu1 %v605_v25  ;;  %v647_v3 = vsel %vm322_vm4, %v603_v62, 0.0 }
 0x1b0   :  { %v921_v54 = vpop.xlane.xlu1 %920 }
 0x1b1   :  { %v927_v27 = vadd.f32 %v3933_v57, %v921_v54  ;;  %v376_v54 = vsub.f32 %v3785_v17, %v3888_v23 }
 0x1b2   :  { %612 = vadd.xlane.f32.xlu1 %v611_v19  ;;  %v393_v19 = vmul.f32 1.442695, %v374_v18 }
 0x1b3   :  { %v3948_v35 = vmul.f32 %v927_v27, %v3732_v30  ;;  %v397_v10 = vmul.f32 1.442695, %v376_v54 }
 0x1b4   :  { %3281 = vpow2.f32 %v393_v19 }
 0x1b5   :  { %v1046_v30 = vmul.f32 %v3787_v20, %v3948_v35 }
 0x1b6   :  { %618 = vadd.xlane.f32.xlu1 %v617_v47 }
 0x1b7   :  { %v1062_v48 = vmul.f32 0.2, %v1046_v30 }
 0x1b9   :  { %v1078_v25 = vmax.f32 %v1046_v30, %v1062_v48 }
 0x1ba   :  { %624 = vadd.xlane.f32.xlu1 %v623_v52 }
 0x1bb   :  { %v3973_v16 = vadd.f32 %v1078_v25, %v3757_v51 }
 0x1bd   :  { %v1112_v0 = vsel %vm322_vm4, %v3973_v16, -inf }
 0x1be   :  { %630 = vadd.xlane.f32.xlu1 %v629_v37  ;;  %v3282_v17 = vpop.eup %3281 }
 0x1c2   :  { %636 = vadd.xlane.f32.xlu1 %v635_v44 }
 0x1c6   :  { %642 = vadd.xlane.f32.xlu1 %v641_v61 }
 0x1ca   :  { %648 = vadd.xlane.f32.xlu1 %v647_v3 }
 0x1ce   :  { %1113 = vmax.xlane.f32.xlu1 %v1112_v0 }
 0x1d8   :  { %v328_v21 = vpop.xlane.xlu0 %327 }
 0x1d9   :  { %v372_v27 = vsub.f32 %v3841_v26, %v328_v21 }
 0x1db   :  { %v389_v47 = vmul.f32 1.442695, %v372_v27 }
 0x1dc   :  { %v346_v28 = vpop.xlane.xlu0 %345 }
 0x1dd   :  { %3283 = vpow2.f32 %v389_v47  ;;  %v378_v59 = vsub.f32 %v3851_v33, %v346_v28 }
 0x1de   :  { %3285 = vpow2.f32 %v397_v10 }
 0x1df   :  { %v401_v2 = vmul.f32 1.442695, %v378_v59 }
 0x1e0   :  { %v352_v52 = vpop.xlane.xlu0 %351 }
 0x1e1   :  { %v380_v60 = vsub.f32 %v3860_v41, %v352_v52  ;;  %3287 = vpow2.f32 %v401_v2  ;;  %v3996_v41 = vmul.f32 %v3282_v17, %v3745_v38 }
 0x1e3   :  { %v405_v37 = vmul.f32 1.442695, %v380_v60  ;;  %v444_v62 = vsel %vm322_vm4, %v3996_v41, 0.0 }
 0x1e4   :  { %v358_v13 = vpop.xlane.xlu0 %357 }
 0x1e5   :  { %v382_v5 = vsub.f32 %v3866_v50, %v358_v13  ;;  %3289 = vpow2.f32 %v405_v37 }
 0x1e7   :  { %v3284_v23 = vpop.eup %3283  ;;  %v409_v30 = vmul.f32 1.442695, %v382_v5 }
 0x1e8   :  { %v364_v26 = vpop.xlane.xlu0 %363  ;;  %v3990_v4 = vmul.f32 %v3284_v23, %v3745_v38  ;;  %v3286_v12 = vpop.eup %3285 }
 0x1e9   :  { %v384_v33 = vsub.f32 %v3871_v53, %v364_v26  ;;  %3291 = vpow2.f32 %v409_v30  ;;  %v4002_v25 = vmul.f32 %v3286_v12, %v3745_v38 }
 0x1ea   :  { %v438_v44 = vsel %vm322_vm4, %v3990_v4, 0.0 }
 0x1eb   :  { %439 = vadd.xlane.f32.xlu0 %v438_v44  ;;  %v413_v50 = vmul.f32 1.442695, %v384_v33  ;;  %v3288_v53 = vpop.eup %3287  ;;  %v450_v19 = vsel %vm322_vm4, %v4002_v25, 0.0 }
 0x1ec   :  { %v370_v48 = vpop.xlane.xlu0 %369  ;;  %v4008_v21 = vmul.f32 %v3288_v53, %v3745_v38 }
 0x1ed   :  { %v386_v61 = vsub.f32 %v3876_v63, %v370_v48  ;;  %3293 = vpow2.f32 %v413_v50 }
 0x1ee   :  { %v456_v28 = vsel %vm322_vm4, %v4008_v21, 0.0 }
 0x1ef   :  { %445 = vadd.xlane.f32.xlu0 %v444_v62  ;;  %v417_v0 = vmul.f32 1.442695, %v386_v61  ;;  %v3290_v63 = vpop.eup %3289 }
 0x1f0   :  { %v918_v3 = vpop.xlane.xlu0 %917  ;;  %v4022_v10 = vmul.f32 %v3290_v63, %v3745_v38 }
 0x1f1   :  { %v926_v18 = vadd.f32 %v3933_v57, %v918_v3  ;;  %3295 = vpow2.f32 %v417_v0 }
 0x1f2   :  { %v462_v5 = vsel %vm322_vm4, %v4022_v10, 0.0 }
 0x1f3   :  { %v4011_v54 = vmul.f32 %v926_v18, %v3727_v8  ;;  %451 = vadd.xlane.f32.xlu0 %v450_v19  ;;  %v3292_v59 = vpop.eup %3291 }
 0x1f4   :  { %v430_v17 = vmul.f32 %v3292_v59, %v3745_v38 }
 0x1f5   :  { %v1049_v27 = vmul.f32 %v3807_v34, %v4011_v54  ;;  %v1051_v47 = vmul.f32 %v3814_v49, %v4011_v54  ;;  %v1053_v57 = vmul.f32 %v3881_v15, %v4011_v54  ;;  %v1055_v37 = vmul.f32 %v3823_v55, %v4011_v54 }
 0x1f6   :  { %v1057_v30 = vmul.f32 %v3825_v56, %v4011_v54  ;;  %v468_v50 = vsel %vm322_vm4, %v430_v17, 0.0  ;;  %v1059_v53 = vmul.f32 %v3827_v58, %v4011_v54 }
 0x1f7   :  { %457 = vadd.xlane.f32.xlu0 %v456_v28  ;;  %v1065_v8 = vmul.f32 0.2, %v1049_v27  ;;  %v1067_v52 = vmul.f32 0.2, %v1051_v47  ;;  %v1069_v13 = vmul.f32 0.2, %v1053_v57  ;;  %v3294_v23 = vpop.eup %3293 }
 0x1f8   :  { %v1071_v48 = vmul.f32 0.2, %v1055_v37  ;;  %v432_v61 = vmul.f32 %v3294_v23, %v3745_v38  ;;  %v1073_v19 = vmul.f32 0.2, %v1057_v30  ;;  %v1075_v59 = vmul.f32 0.2, %v1059_v53 }
 0x1f9   :  { %v1081_v2 = vmax.f32 %v1049_v27, %v1065_v8  ;;  %v1083_v60 = vmax.f32 %v1051_v47, %v1067_v52  ;;  %v1085_v12 = vmax.f32 %v1053_v57, %v1069_v13  ;;  %v590_v52 = vmul.f32 %v3913_v46, %v3990_v4 }
 0x1fa   :  { %v1087_v18 = vmax.f32 %v1055_v37, %v1071_v48  ;;  %v474_v63 = vsel %vm322_vm4, %v432_v61, 0.0  ;;  %v1089_v28 = vmax.f32 %v1057_v30, %v1073_v19  ;;  %v1091_v13 = vmax.f32 %v1059_v53, %v1075_v59 }
 0x1fb   :  { %463 = vadd.xlane.f32.xlu0 %v462_v5  ;;  %v4030_v26 = vadd.f32 %v1081_v2, %v3749_v42  ;;  %v4037_v44 = vadd.f32 %v1083_v60, %v3749_v42  ;;  %v3296_v62 = vpop.eup %3295  ;;  %v4046_v0 = vadd.f32 %v1085_v12, %v3749_v42  ;;  %v608_v37 = vsel %vm322_vm4, %v590_v52, 0.0  ;;  %v1705_v12 = vld [vmem:[%s5515_s6 + $0x10] sm:$0xff] }
 0x1fc   :  { %v434_v27 = vmul.f32 %v3296_v62, %v3745_v38  ;;  %v4053_v57 = vadd.f32 %v1087_v18, %v3749_v42  ;;  %v4061_v60 = vadd.f32 %v1089_v28, %v3749_v42  ;;  %v592_v5 = vmul.f32 %v3922_v22, %v3996_v41 }
 0x1fd   :  { %v1121_v33 = vsel %vm322_vm4, %v4030_v26, -inf  ;;  %v1127_v3 = vsel %vm322_vm4, %v4037_v44, -inf  ;;  %v1133_v47 = vsel %vm322_vm4, %v4046_v0, -inf  ;;  %v4069_v46 = vadd.f32 %v1091_v13, %v3749_v42 }
 0x1fe   :  { %1122 = vmax.xlane.f32.xlu1 %v1121_v33  ;;  %v480_v8 = vsel %vm322_vm4, %v434_v27, 0.0  ;;  %v1139_v2 = vsel %vm322_vm4, %v4053_v57, -inf  ;;  %v1145_v23 = vsel %vm322_vm4, %v4061_v60, -inf  ;;  %v614_v4 = vsel %vm322_vm4, %v592_v5, 0.0 }
 0x1ff   :  { %469 = vadd.xlane.f32.xlu0 %v468_v50  ;;  %v594_v30 = vmul.f32 %v3928_v7, %v4002_v25  ;;  %v1151_v33 = vsel %vm322_vm4, %v4069_v46, -inf  ;;  %v596_v41 = vmul.f32 %v3938_v24, %v4008_v21  ;;  %v1694_v48 = vsel %vm49_vm1, %v3981_v14, 0.0 }
 0x200   :  { %v598_v25 = vmul.f32 %v3941_v43, %v4022_v10  ;;  %v4088_v50 = vrot.slane %v1705_v12, %v3645_v11  ;;  %v1707_v62 = vcombine.high %v1705_v12, %v1705_v12  ;;  %v600_v21 = vmul.f32 %v3953_v36, %v430_v17 }
 0x201   :  { %v620_v22 = vsel %vm322_vm4, %v594_v30, 0.0  ;;  %v626_v7 = vsel %vm322_vm4, %v596_v41, 0.0  ;;  %v1045_v53 = vmul.f32 %v3787_v20, %v4011_v54  ;;  %v602_v10 = vmul.f32 %v3956_v40, %v432_v61  ;;  %v3521_v30 = vld [vmem:[%s5513_s4] sm:$0xf] }
 0x202   :  { %1128 = vmax.xlane.f32.xlu1 %v1127_v3  ;;  %v632_v24 = vsel %vm322_vm4, %v598_v25, 0.0  ;;  %v1722_v14 = vcombine.high %v4088_v50, %v4088_v50  ;;  %v4097_v3 = vrot.slane %v1707_v62, %v3645_v11  ;;  %v638_v43 = vsel %vm322_vm4, %v600_v21, 0.0 }
 0x203   :  { %475 = vadd.xlane.f32.xlu0 %v474_v63  ;;  %v1061_v18 = vmul.f32 0.2, %v1045_v53  ;;  %v1047_v19 = vmul.f32 %v3795_v29, %v4011_v54  ;;  %v1048_v17 = vmul.f32 %v3795_v29, %v3948_v35  ;;  %v644_v63 = vsel %vm322_vm4, %v602_v10, 0.0 }
 0x204   :  { %v4104_v36 = vrot.slane %v1722_v14, %v3645_v11  ;;  %v4108_v20 = vrot.slane %v4097_v3, %v3645_v11  ;;  %v1050_v59 = vmul.f32 %v3807_v34, %v3948_v35  ;;  %v1056_v25 = vmul.f32 %v3823_v55, %v3948_v35 }
 0x205   :  { %v1077_v40 = vmax.f32 %v1045_v53, %v1061_v18  ;;  %v1063_v61 = vmul.f32 0.2, %v1047_v19  ;;  %v1058_v53 = vmul.f32 %v3825_v56, %v3948_v35  ;;  %v1060_v18 = vmul.f32 %v3827_v58, %v3948_v35 }
 0x206   :  { %1134 = vmax.xlane.f32.xlu1 %v1133_v47  ;;  %v604_v47 = vmul.f32 %v3965_v45, %v434_v27  ;;  %v1763_v54 = vrot.slane %v4104_v36, %v3638_v9  ;;  %v1753_v28 = vcombine.high %v4108_v20, %v4108_v20  ;;  %v4124_v45 = vpop.f32.mrb[2].mxu0  ;;  %v1072_v55 = vmul.f32 0.2, %v1056_v25 }
 0x207   :  { %481 = vadd.xlane.f32.xlu0 %v480_v8  ;;  %v4122_v29 = vadd.f32 %v1077_v40, %v3749_v42  ;;  %v1079_v52 = vmax.f32 %v1047_v19, %v1063_v61  ;;  %v3237_v13 = vpop.f32.mrb[3].mxu0  ;;  %v1074_v56 = vmul.f32 0.2, %v1058_v53 }
 0x208   :  { %v650_v8 = vsel %vm322_vm4, %v604_v47, 0.0  ;;  %v1783_v27 = vrot.slane %v1753_v28, %v3638_v9 }
 0x209   :  { %v1109_v34 = vsel %vm322_vm4, %v4122_v29, -inf  ;;  %v4132_v5 = vadd.f32 %v1079_v52, %v3749_v42  ;;  %v1090_v61 = vmax.f32 %v1058_v53, %v1074_v56 }
 0x20a   :  { %1140 = vmax.xlane.f32.xlu1 %v1139_v2  ;;  %v1064_v2 = vmul.f32 0.2, %v1048_v17 }
 0x20b   :  { %609 = vadd.xlane.f32.xlu0 %v608_v37  ;;  %v1052_v37 = vmul.f32 %v3814_v49, %v3948_v35  ;;  %v2374_v49 = vld [vmem:[%s5509_s0 + $0x18] sm:$0xff]  ;;  %v1115_v41 = vsel %vm322_vm4, %v4132_v5, -inf }
 0x20c   :  { %3239 = vmatpush3.msra.mxu1 %v2374_v49 }
 0x20e   :  { %1146 = vmax.xlane.f32.xlu1 %v1145_v23  ;;  %v1080_v23 = vmax.f32 %v1048_v17, %v1064_v2  ;;  %v1691_v2 = vsel %vm49_vm1, %v3975_v39, 0.0 }
 0x20f   :  { %615 = vadd.xlane.f32.xlu0 %v614_v4  ;;  %v1066_v4 = vmul.f32 0.2, %v1050_v59 }
 0x210   :  { %v4145_v12 = vadd.f32 %v1080_v23, %v3757_v51 }
 0x212   :  { %1152 = vmax.xlane.f32.xlu1 %v1151_v33  ;;  %v2375_v33 = vrot.slane %v3521_v30, 3  ;;  %v3522_v30 = vld [vmem:[%s5510_s1] sm:$0xff] }
 0x213   :  { %621 = vadd.xlane.f32.xlu0 %v620_v22  ;;  %v1054_v22 = vmul.f32 %v3881_v15, %v3948_v35  ;;  %v1118_v15 = vsel %vm322_vm4, %v4145_v12, -inf  ;;  %v4177_v35 = vadd.f32 %v1090_v61, %v3757_v51  ;;  %v2456_v39 = vmul.f32 %v3522_v30, %v3969_v32 }
 0x214   :  { %3241 = vmatmul.mubr.msk.f32.vlgmr.msra.gmra.mrb[2].mxu1 %vm49_vm1, %v2375_v33 }
 0x215   :  { %v1070_v21 = vmul.f32 0.2, %v1054_v22 }
 0x216   :  { %1695 = vadd.xlane.f32.xlu1 %v1694_v48  ;;  %v1082_v48 = vmax.f32 %v1050_v59, %v1066_v4  ;;  %v1148_v59 = vsel %vm322_vm4, %v4177_v35, -inf }
 0x217   :  { %627 = vadd.xlane.f32.xlu0 %v626_v7  ;;  %v1068_v7 = vmul.f32 0.2, %v1052_v37  ;;  %v1086_v10 = vmax.f32 %v1054_v22, %v1070_v21 }
 0x218   :  { %v4153_v62 = vadd.f32 %v1082_v48, %v3757_v51 }
 0x219   :  { %v4167_v17 = vadd.f32 %v1086_v10, %v3757_v51 }
 0x21a   :  { %v1124_v14 = vsel %vm322_vm4, %v4153_v62, -inf }
 0x21b   :  { %633 = vadd.xlane.f32.xlu0 %v632_v24  ;;  %v1084_v24 = vmax.f32 %v1052_v37, %v1068_v7  ;;  %v1136_v47 = vsel %vm322_vm4, %v4167_v17, -inf  ;;  %v1730_v37 = vrot.slane %v4088_v50, %v3645_v11  ;;  %v3523_v50 = vld [vmem:[%s5510_s1 + $0x8] sm:$0xff] }
 0x21c   :  { %v2457_v49 = vmul.f32 %v3523_v50, %v3969_v32  ;;  %v1775_v32 = vrot.slane %v4108_v20, %v3638_v9 }
 0x21d   :  { %v1759_v23 = vrot.slane %v1730_v37, %v3638_v9  ;;  %v1752_v22 = vcombine.high %v1730_v37, %v1730_v37 }
 0x21f   :  { %639 = vadd.xlane.f32.xlu0 %v638_v43  ;;  %v4160_v43 = vadd.f32 %v1084_v24, %v3757_v51  ;;  %v1767_v48 = vrot.slane %v1752_v22, %v3638_v9 }
 0x221   :  { %v1130_v19 = vsel %vm322_vm4, %v4160_v43, -inf }
 0x223   :  { %645 = vadd.xlane.f32.xlu0 %v644_v63  ;;  %v1088_v63 = vmax.f32 %v1056_v25, %v1072_v55 }
 0x225   :  { %v4172_v40 = vadd.f32 %v1088_v63, %v3757_v51 }
 0x227   :  { %651 = vadd.xlane.f32.xlu0 %v650_v8  ;;  %1793 = vperm.xlu1 %3255, %v1763_v54   ;;  %v1076_v54 = vmul.f32 0.2, %v1060_v18  ;;  %v1142_v58 = vsel %vm322_vm4, %v4172_v40, -inf }
 0x229   :  { %v1092_v28 = vmax.f32 %v1060_v18, %v1076_v54 }
 0x22b   :  { %1110 = vmax.xlane.f32.xlu0 %v1109_v34  ;;  %1813 = vperm.xlu1 %3255, %v1783_v27   ;;  %v4182_v8 = vadd.f32 %v1092_v28, %v3757_v51  ;;  %v4188_v27 = vpop.xlane.xlu1 %436 }
 0x22d   :  { %v1154_v52 = vsel %vm322_vm4, %v4182_v8, -inf }
 0x22f   :  { %1116 = vmax.xlane.f32.xlu0 %v1115_v41  ;;  %v4190_v13 = vpop.xlane.xlu1 %442  ;;  %v1754_v41 = vcombine.high %v4104_v36, %v4104_v36 }
 0x231   :  { %v1771_v25 = vrot.slane %v1754_v41, %v3638_v9 }
 0x233   :  { %1119 = vmax.xlane.f32.xlu0 %v1118_v15  ;;  %v4194_v34 = vpop.xlane.xlu1 %448  ;;  %v1723_v15 = vcombine.high %v4097_v3, %v4097_v3 }
 0x234   :  { %5522 = vst [vmem:[#allocation6_spill] sm:$0xff] %v4194_v34 }
 0x235   :  { %v1751_v21 = vrot.slane %v1723_v15, %v3645_v11 }
 0x237   :  { %1125 = vmax.xlane.f32.xlu0 %v1124_v14  ;;  %v4197_v4 = vpop.xlane.xlu1 %454  ;;  %v1779_v53 = vrot.slane %v1751_v21, %v3638_v9  ;;  %v1755_v14 = vcombine.high %v1751_v21, %v1751_v21 }
 0x238   :  { %5523 = vst [vmem:[#allocation7_spill] sm:$0xff] %v4197_v4 }
 0x239   :  { %v1787_v3 = vrot.slane %v1755_v14, %v3638_v9 }
 0x23b   :  { %1131 = vmax.xlane.f32.xlu0 %v1130_v19  ;;  %v4203_v33 = vpop.xlane.xlu1 %460 }
 0x23c   :  { %5524 = vst [vmem:[#allocation8_spill] sm:$0xff] %v4203_v33 }
 0x23f   :  { %1137 = vmax.xlane.f32.xlu0 %v1136_v47  ;;  %v4212_v7 = vpop.xlane.xlu1 %466 }
 0x240   :  { %5525 = vst [vmem:[#allocation9_spill] sm:$0xff] %v4212_v7 }
 0x243   :  { %1143 = vmax.xlane.f32.xlu0 %v1142_v58  ;;  %v4217_v24 = vpop.xlane.xlu1 %472 }
 0x244   :  { %5526 = vst [vmem:[#allocation10_spill] sm:$0xff] %v4217_v24 }
 0x247   :  { %1149 = vmax.xlane.f32.xlu0 %v1148_v59  ;;  %v4225_v10 = vpop.xlane.xlu1 %478 }
 0x248   :  { %5528 = vst [vmem:[#allocation12_spill] sm:$0xff] %v4225_v10 }
 0x24b   :  { %1155 = vmax.xlane.f32.xlu0 %v1154_v52  ;;  %v4232_v19 = vpop.xlane.xlu1 %606 }
 0x24c   :  { %5531 = vst [vmem:[#allocation15_spill] sm:$0xff] %v4232_v19 }
 0x24f   :  { %1692 = vadd.xlane.f32.xlu0 %v1691_v2  ;;  %v4236_v63 = vpop.xlane.xlu1 %612 }
 0x250   :  { %5533 = vst [vmem:[#allocation17_spill] sm:$0xff] %v4236_v63 }
 0x253   :  { %v4242_v61 = vpop.xlane.xlu1 %618 }
 0x254   :  { %5536 = vst [vmem:[#allocation20_spill] sm:$0xff] %v4242_v61  ;;  %v4303_v61 = vld [vmem:[%s5512_s3 + $0x8] sm:$0xff] }
 0x257   :  { %v4246_v58 = vpop.xlane.xlu1 %624 }
 0x258   :  { %5538 = vst [vmem:[#allocation22_spill] sm:$0xff] %v4246_v58 }
 0x25b   :  { %v4252_v52 = vpop.xlane.xlu1 %630 }
 0x25c   :  { %5541 = vst [vmem:[#allocation25_spill] sm:$0xff] %v4252_v52 }
 0x25f   :  { %v4256_v37 = vpop.xlane.xlu1 %636 }
 0x260   :  { %5543 = vst [vmem:[#allocation27_spill] sm:$0xff] %v4256_v37 }
 0x265   :  { %1789 = vperm.xlu0 %3256, %v1759_v23  }
 0x269   :  { %2460 = vrot.lane.b32.xlu0 %v2456_v39, %s3562_s19  ;;  %v4262_v39 = vpop.xlane.xlu1 %642 }
 0x26a   :  { %5546 = vst [vmem:[#allocation30_spill] sm:$0xff] %v4262_v39 }
 0x26d   :  { %2462 = vrot.lane.b32.xlu0 %v2457_v49, %s3562_s19  ;;  %v4266_v50 = vpop.xlane.xlu1 %648 }
 0x26e   :  { %5548 = vst [vmem:[#allocation32_spill] sm:$0xff] %v4266_v50 }
 0x271   :  { %1797 = vperm.xlu0 %3256, %v1767_v48   ;;  %v1114_v48 = vpop.xlane.xlu1 %1113 }
 0x275   :  { %1801 = vperm.xlu0 %3256, %v1771_v25  }
 0x278   :  { %v4222_v36 = vpop.xlane.xlu0 %439 }
 0x279   :  { %5527 = vst [vmem:[#allocation11_spill] sm:$0xff] %v4222_v36  ;;  %1805 = vperm.xlu0 %3256, %v1775_v32  }
 0x27c   :  { %v4227_v55 = vpop.xlane.xlu0 %445 }
 0x27d   :  { %5529 = vst [vmem:[#allocation13_spill] sm:$0xff] %v4227_v55  ;;  %1809 = vperm.xlu0 %3256, %v1779_v53  }
 0x280   :  { %v4230_v18 = vpop.xlane.xlu0 %451 }
 0x281   :  { %5530 = vst [vmem:[#allocation14_spill] sm:$0xff] %v4230_v18  ;;  %1817 = vperm.xlu0 %3256, %v1787_v3  }
 0x284   :  { %v4234_v20 = vpop.xlane.xlu0 %457 }
 0x285   :  { %5532 = vst [vmem:[#allocation16_spill] sm:$0xff] %v4234_v20 }
 0x288   :  { %v4238_v56 = vpop.xlane.xlu0 %463 }
 0x289   :  { %5534 = vst [vmem:[#allocation18_spill] sm:$0xff] %v4238_v56 }
 0x28b   :  { %v4274_v15 = vpop.xlane.xlu1 %1122 }
 0x28c   :  { %v4240_v47 = vpop.xlane.xlu0 %469 }
 0x28d   :  { %5535 = vst [vmem:[#allocation19_spill] sm:$0xff] %v4240_v47 }
 0x28f   :  { %v4278_v21 = vpop.xlane.xlu1 %1128 }
 0x290   :  { %v4244_v54 = vpop.xlane.xlu0 %475 }
 0x291   :  { %5537 = vst [vmem:[#allocation21_spill] sm:$0xff] %v4244_v54 }
 0x293   :  { %v4282_v3 = vpop.xlane.xlu1 %1134 }
 0x294   :  { %v4248_v28 = vpop.xlane.xlu0 %481 }
 0x295   :  { %5539 = vst [vmem:[#allocation23_spill] sm:$0xff] %v4248_v28 }
 0x297   :  { %v4284_v50 = vpop.xlane.xlu1 %1140 }
 0x298   :  { %v4250_v59 = vpop.xlane.xlu0 %609 }
 0x299   :  { %5540 = vst [vmem:[#allocation24_spill] sm:$0xff] %v4250_v59 }
 0x29c   :  { %v4254_v2 = vpop.xlane.xlu0 %615 }
 0x29d   :  { %5542 = vst [vmem:[#allocation26_spill] sm:$0xff] %v4254_v2 }
 0x2a0   :  { %v4258_v23 = vpop.xlane.xlu0 %621 }
 0x2a1   :  { %5544 = vst [vmem:[#allocation28_spill] sm:$0xff] %v4258_v23  ;;  %v1700_v23 = vrot.slane %v4124_v45, %v3638_v9 }
 0x2a4   :  { %v4260_v30 = vpop.xlane.xlu0 %627 }
 0x2a5   :  { %5545 = vst [vmem:[#allocation29_spill] sm:$0xff] %v4260_v30 }
 0x2a8   :  { %v4264_v22 = vpop.xlane.xlu0 %633 }
 0x2a9   :  { %5547 = vst [vmem:[#allocation31_spill] sm:$0xff] %v4264_v22 }
 0x2ac   :  { %v4268_v49 = vpop.xlane.xlu0 %639 }
 0x2ad   :  { %5549 = vst [vmem:[#allocation33_spill] sm:$0xff] %v4268_v49 }
 0x2b0   :  { %v4270_v41 = vpop.xlane.xlu0 %645 }
 0x2b1   :  { %5550 = vst [vmem:[#allocation34_spill] sm:$0xff] %v4270_v41  ;;  %v4288_v41 = vpop.xlane.xlu1 %1146 }
 0x2b4   :  { %v4272_v25 = vpop.xlane.xlu0 %651 }
 0x2b5   :  { %5551 = vst [vmem:[#allocation35_spill] sm:$0xff] %v4272_v25  ;;  %v4292_v30 = vpop.xlane.xlu1 %1152 }
 0x2b8   :  { %v4276_v32 = vpop.xlane.xlu0 %1110 }
 0x2b9   :  { %v1696_v59 = vpop.xlane.xlu1 %1695 }
 0x2ba   :  { %v1702_v37 = vadd.f32 %v1700_v23, %v1696_v59 }
 0x2bc   :  { %v4280_v53 = vpop.xlane.xlu0 %1116  ;;  %v4306_v63 = vmul.f32 %v4303_v61, %v1702_v37 }
 0x2bd   :  { %v1794_v19 = vpop.permute.xlu1 %1793 }
 0x2be   :  { %v1823_v59 = vmul.f32 %v1794_v19, %v4306_v63 }
 0x2c0   :  { %v1120_v14 = vpop.xlane.xlu0 %1119  ;;  %v1839_v56 = vmul.f32 0.2, %v1823_v59 }
 0x2c1   :  { %v1160_v20 = vsub.f32 %v4145_v12, %v1120_v14 }
 0x2c2   :  { %v1855_v33 = vmax.f32 %v1823_v59, %v1839_v56 }
 0x2c4   :  { %v1126_v1 = vpop.xlane.xlu0 %1125 }
 0x2c8   :  { %v1132_v49 = vpop.xlane.xlu0 %1131 }
 0x2cc   :  { %v4286_v22 = vpop.xlane.xlu0 %1137 }
 0x2d0   :  { %v4290_v25 = vpop.xlane.xlu0 %1143 }
 0x2d4   :  { %v4294_v39 = vpop.xlane.xlu0 %1149 }
 0x2d8   :  { %v4298_v2 = vpop.xlane.xlu0 %1155 }
 0x2dc   :  { %v1693_v52 = vpop.xlane.xlu0 %1692 }
 0x2dd   :  { %v1701_v58 = vadd.f32 %v1700_v23, %v1693_v52  ;;  %v1158_v23 = vsub.f32 %v3973_v16, %v1114_v48  ;;  %v1179_v48 = vmul.f32 1.442695, %v1160_v20 }
 0x2df   :  { %v4314_v45 = vmul.f32 %v4311_v6, %v1701_v58  ;;  %v1175_v55 = vmul.f32 1.442695, %v1158_v23 }
 0x2e1   :  { %v1822_v37 = vmul.f32 %v1794_v19, %v4314_v45  ;;  %3297 = vpow2.f32 %v1175_v55 }
 0x2e2   :  { %3299 = vpow2.f32 %v1179_v48 }
 0x2e3   :  { %v1838_v24 = vmul.f32 0.2, %v1822_v37 }
 0x2e4   :  { %v1790_v52 = vpop.permute.xlu0 %1789 }
 0x2e5   :  { %v1820_v10 = vmul.f32 %v1790_v52, %v4314_v45  ;;  %v1821_v28 = vmul.f32 %v1790_v52, %v4306_v63  ;;  %v1162_v52 = vsub.f32 %v4153_v62, %v1126_v1  ;;  %v4337_v1 = vadd.f32 %v1855_v33, %v3757_v51 }
 0x2e6   :  { %v1166_v33 = vsub.f32 %v4167_v17, %v4286_v22  ;;  %v1168_v17 = vsub.f32 %v4172_v40, %v4290_v25 }
 0x2e7   :  { %v1836_v54 = vmul.f32 0.2, %v1820_v10  ;;  %v1837_v47 = vmul.f32 0.2, %v1821_v28 }
 0x2e8   :  { %v2461_v18 = vpop.permute.xlu0 %2460 }
 0x2e9   :  { %v1853_v58 = vmax.f32 %v1821_v28, %v1837_v47  ;;  %v1852_v36 = vmax.f32 %v1820_v10, %v1836_v54  ;;  %v1854_v10 = vmax.f32 %v1822_v37, %v1838_v24  ;;  %v1164_v54 = vsub.f32 %v4160_v43, %v1132_v49  ;;  %v4358_v37 = vld [vmem:[%s5515_s6 + $0x18] sm:$0xff] }
 0x2ea   :  { %v2466_v20 = vsel %vm49_vm1, %v2461_v18, 0.0  ;;  %v1893_v43 = vsel %vm322_vm4, %v4337_v1, -inf }
 0x2eb   :  { %v4323_v7 = vadd.f32 %v1852_v36, %v3749_v42  ;;  %v4326_v16 = vadd.f32 %v1853_v58, %v3757_v51  ;;  %v1183_v36 = vmul.f32 1.442695, %v1162_v52  ;;  %v4344_v24 = vadd.f32 %v1854_v10, %v3749_v42  ;;  %v3298_v18 = vpop.eup %3297 }
 0x2ec   :  { %v2463_v19 = vpop.permute.xlu0 %2462  ;;  %v1187_v49 = vmul.f32 1.442695, %v1164_v54  ;;  %v1191_v58 = vmul.f32 1.442695, %v1166_v33  ;;  %v3300_v22 = vpop.eup %3299  ;;  %v1206_v52 = vmul.f32 %v3298_v18, %v3745_v38 }
 0x2ed   :  { %v1884_v12 = vsel %vm322_vm4, %v4323_v7, -inf  ;;  %v1887_v47 = vsel %vm322_vm4, %v4326_v16, -inf  ;;  %v2469_v55 = vsel %vm49_vm1, %v2463_v19, 0.0  ;;  %3301 = vpow2.f32 %v1183_v36 }
 0x2ee   :  { %1885 = vmax.xlane.f32.xlu1 %v1884_v12  ;;  %1888 = vmax.xlane.f32.xlu0 %v1887_v47  ;;  %v1890_v59 = vsel %vm322_vm4, %v4344_v24, -inf  ;;  %3303 = vpow2.f32 %v1187_v49  ;;  %v4367_v19 = vrot.slane %v4358_v37, %v3645_v11  ;;  %v1195_v12 = vmul.f32 1.442695, %v1168_v17 }
 0x2ef   :  { %3305 = vpow2.f32 %v1191_v58  ;;  %v1170_v47 = vsub.f32 %v4177_v35, %v4294_v39  ;;  %v1224_v36 = vsel %vm322_vm4, %v1206_v52, 0.0  ;;  %v1208_v40 = vmul.f32 %v3300_v22, %v3745_v38  ;;  %v4381_v35 = vpop.f32.mrb[2].mxu1  ;;  %v3526_v58 = vld [vmem:[%s5509_s0 + $0x8] sm:$0xff] }
 0x2f0   :  { %v4334_v28 = vpop.permute.xlu0 %1797  ;;  %v4375_v25 = vrot.slane %v4367_v19, %v3645_v11  ;;  %3307 = vpow2.f32 %v1195_v12  ;;  %v1293_v17 = vrot.slane %v3526_v58, %v3645_v11 }
 0x2f1   :  { %v1824_v62 = vmul.f32 %v4334_v28, %v4314_v45  ;;  %v1199_v54 = vmul.f32 1.442695, %v1170_v47  ;;  %v1157_v47 = vsub.f32 %v4122_v29, %v4276_v32 }
 0x2f2   :  { %2470 = vadd.xlane.f32.xlu1 %v2469_v55  ;;  %2467 = vadd.xlane.f32.xlu0 %v2466_v20  ;;  %v1230_v55 = vsel %vm322_vm4, %v1208_v40, 0.0 }
 0x2f3   :  { %v1840_v56 = vmul.f32 0.2, %v1824_v62  ;;  %3309 = vpow2.f32 %v1199_v54 }
 0x2f5   :  { %v1856_v14 = vmax.f32 %v1824_v62, %v1840_v56  ;;  %v1172_v62 = vsub.f32 %v4182_v8, %v4298_v2  ;;  %v2534_v56 = vrot.slane %v4375_v25, %v3638_v9 }
 0x2f6   :  { %1894 = vmax.xlane.f32.xlu1 %v1893_v43  ;;  %1891 = vmax.xlane.f32.xlu0 %v1890_v59  ;;  %v3242_v43 = vpop.f32.mrb[3].mxu1 }
 0x2f7   :  { %v4353_v23 = vadd.f32 %v1856_v14, %v3749_v42  ;;  %v3302_v10 = vpop.eup %3301  ;;  %v1203_v49 = vmul.f32 1.442695, %v1172_v62 }
 0x2f8   :  { %v1210_v20 = vmul.f32 %v3302_v10, %v3745_v38  ;;  %v3304_v39 = vpop.eup %3303  ;;  %v1309_v10 = vrot.slane %v1293_v17, %v3645_v11 }
 0x2f9   :  { %v1896_v48 = vsel %vm322_vm4, %v4353_v23, -inf  ;;  %v1212_v14 = vmul.f32 %v3304_v39, %v3745_v38  ;;  %v3306_v59 = vpop.eup %3305  ;;  %3311 = vpow2.f32 %v1203_v49  ;;  %v1159_v39 = vsub.f32 %v4132_v5, %v4280_v53 }
 0x2fa   :  { %1897 = vmax.xlane.f32.xlu0 %v1896_v48  ;;  %v1236_v33 = vsel %vm322_vm4, %v1210_v20, 0.0  ;;  %v4389_v2 = vmul.f32 %v3306_v59, %v3745_v38  ;;  %v3308_v18 = vpop.eup %3307  ;;  %v4416_v32 = vrot.slane %v1309_v10, %v3638_v9  ;;  %v1161_v49 = vsub.f32 %v4030_v26, %v4274_v15 }
 0x2fb   :  { %v1242_v8 = vsel %vm322_vm4, %v1212_v14, 0.0  ;;  %v4398_v48 = vmul.f32 %v3308_v18, %v3745_v38 }
 0x2fc   :  { %v1248_v22 = vsel %vm322_vm4, %v4389_v2, 0.0  ;;  %v1376_v5 = vmul.f32 %v4416_v32, %v1206_v52 }
 0x2fd   :  { %v3310_v12 = vpop.eup %3309 }
 0x2fe   :  { %1225 = vadd.xlane.f32.xlu0 %v1224_v36  ;;  %v1254_v36 = vsel %vm322_vm4, %v4398_v48, 0.0  ;;  %v4406_v54 = vmul.f32 %v3310_v12, %v3745_v38  ;;  %v1163_v12 = vsub.f32 %v4037_v44, %v4278_v21  ;;  %v1394_v26 = vsel %vm322_vm4, %v1376_v5, 0.0 }
 0x300   :  { %v1260_v43 = vsel %vm322_vm4, %v4406_v54, 0.0 }
 0x302   :  { %1231 = vadd.xlane.f32.xlu0 %v1230_v55  ;;  %v1173_v55 = vmul.f32 1.442695, %v1157_v47 }
 0x303   :  { %v3312_v62 = vpop.eup %3311 }
 0x304   :  { %v4413_v29 = vmul.f32 %v3312_v62, %v3745_v38  ;;  %3313 = vpow2.f32 %v1173_v55 }
 0x306   :  { %1237 = vadd.xlane.f32.xlu0 %v1236_v33  ;;  %v1177_v33 = vmul.f32 1.442695, %v1159_v39  ;;  %v1266_v59 = vsel %vm322_vm4, %v4413_v29, 0.0 }
 0x307   :  { %2564 = vperm.xlu1 %3255, %v2534_v56   ;;  %v1301_v56 = vcombine.high %v1293_v17, %v1293_v17  ;;  %v1331_v17 = vcombine.high %v1309_v10, %v1309_v10  ;;  %v1165_v10 = vsub.f32 %v4046_v0, %v4282_v3 }
 0x308   :  { %3315 = vpow2.f32 %v1177_v33 }
 0x309   :  { %v1323_v53 = vrot.slane %v1301_v56, %v3645_v11  ;;  %v4433_v47 = vrot.slane %v1331_v17, %v3638_v9  ;;  %v1189_v56 = vmul.f32 1.442695, %v1165_v10 }
 0x30a   :  { %1243 = vadd.xlane.f32.xlu0 %v1242_v8  ;;  %v1286_v8 = vcombine.high %v3526_v58, %v3526_v58 }
 0x30b   :  { %v4425_v18 = vrot.slane %v1323_v53, %v3638_v9  ;;  %v1333_v58 = vcombine.high %v1323_v53, %v1323_v53  ;;  %v1380_v44 = vmul.f32 %v4433_v47, %v1210_v20  ;;  %v1169_v53 = vsub.f32 %v4061_v60, %v4288_v41 }
 0x30c   :  { %v1300_v52 = vrot.slane %v1286_v8, %v3645_v11  ;;  %v1171_v60 = vsub.f32 %v4069_v46, %v4292_v30 }
 0x30d   :  { %v1378_v15 = vmul.f32 %v4425_v18, %v1208_v40  ;;  %v4440_v40 = vrot.slane %v1333_v58, %v3638_v9 }
 0x30e   :  { %1249 = vadd.xlane.f32.xlu0 %v1248_v22  ;;  %v1181_v22 = vmul.f32 1.442695, %v1161_v49  ;;  %v3314_v21 = vpop.eup %3313  ;;  %v1302_v55 = vcombine.high %v1300_v52, %v1300_v52  ;;  %v1316_v39 = vrot.slane %v1300_v52, %v3645_v11  ;;  %v1406_v49 = vsel %vm322_vm4, %v1380_v44, 0.0 }
 0x30f   :  { %v1400_v62 = vsel %vm322_vm4, %v1378_v15, 0.0  ;;  %v1382_v0 = vmul.f32 %v4440_v40, %v1212_v14  ;;  %v4448_v3 = vmul.f32 %v3314_v21, %v3735_v31 }
 0x310   :  { %3317 = vpow2.f32 %v1181_v22  ;;  %v4451_v33 = vrot.slane %v1316_v39, %v3638_v9 }
 0x312   :  { %1255 = vadd.xlane.f32.xlu0 %v1254_v36  ;;  %v1185_v36 = vmul.f32 1.442695, %v1163_v12  ;;  %v3316_v20 = vpop.eup %3315  ;;  %v1384_v14 = vmul.f32 %v4451_v33, %v4389_v2  ;;  %v1332_v12 = vcombine.high %v1316_v39, %v1316_v39 }
 0x313   :  { %v1207_v8 = vmul.f32 %v3316_v20, %v3735_v31 }
 0x314   :  { %3319 = vpow2.f32 %v1185_v36  ;;  %v1418_v41 = vsel %vm322_vm4, %v1384_v14, 0.0  ;;  %v4473_v36 = vrot.slane %v1332_v12, %v3638_v9  ;;  %v2497_v12 = vcombine.high %v4367_v19, %v4367_v19 }
 0x315   :  { %3321 = vpow2.f32 %v1189_v56  ;;  %v1227_v15 = vsel %vm322_vm4, %v1207_v8, 0.0 }
 0x316   :  { %1261 = vadd.xlane.f32.xlu0 %v1260_v43  ;;  %v1167_v43 = vsub.f32 %v4053_v57, %v4284_v50  ;;  %v1412_v57 = vsel %vm322_vm4, %v1382_v0, 0.0  ;;  %v1221_v50 = vsel %vm322_vm4, %v4448_v3, 0.0  ;;  %v1388_v44 = vmul.f32 %v4473_v36, %v4406_v54 }
 0x318   :  { %v1193_v5 = vmul.f32 1.442695, %v1167_v43  ;;  %v1430_v39 = vsel %vm322_vm4, %v1388_v44, 0.0 }
 0x31a   :  { %1267 = vadd.xlane.f32.xlu0 %v1266_v59  ;;  %v1330_v59 = vrot.slane %v1302_v55, %v3645_v11  ;;  %v3318_v17 = vpop.eup %3317  ;;  %3323 = vpow2.f32 %v1193_v5 }
 0x31b   :  { %v1209_v52 = vmul.f32 %v3318_v17, %v3735_v31  ;;  %v2482_v17 = vcombine.high %v4358_v37, %v4358_v37 }
 0x31c   :  { %v4463_v22 = vrot.slane %v1330_v59, %v3638_v9  ;;  %v1334_v10 = vcombine.high %v1330_v59, %v1330_v59 }
 0x31d   :  { %v1233_v30 = vsel %vm322_vm4, %v1209_v52, 0.0 }
 0x31e   :  { %1395 = vadd.xlane.f32.xlu0 %v1394_v26  ;;  %v1197_v26 = vmul.f32 1.442695, %v1169_v53  ;;  %v1386_v2 = vmul.f32 %v4463_v22, %v4398_v48  ;;  %v3320_v58 = vpop.eup %3319  ;;  %v1366_v55 = vrot.slane %v1334_v10, %v3638_v9 }
 0x31f   :  { %v1211_v48 = vmul.f32 %v3320_v58, %v3735_v31  ;;  %v3322_v21 = vpop.eup %3321  ;;  %v1377_v58 = vmul.f32 %v4425_v18, %v1207_v8 }
 0x320   :  { %3325 = vpow2.f32 %v1197_v26  ;;  %v1424_v46 = vsel %vm322_vm4, %v1386_v2, 0.0  ;;  %v1390_v43 = vmul.f32 %v1366_v55, %v4413_v29 }
 0x321   :  { %v1239_v56 = vsel %vm322_vm4, %v1211_v48, 0.0  ;;  %v1397_v19 = vsel %vm322_vm4, %v1377_v58, 0.0 }
 0x322   :  { %1401 = vadd.xlane.f32.xlu0 %v1400_v62  ;;  %v1201_v62 = vmul.f32 1.442695, %v1171_v60  ;;  %v1436_v54 = vsel %vm322_vm4, %v1390_v43, 0.0  ;;  %v1375_v60 = vmul.f32 %v4416_v32, %v4448_v3  ;;  %v1825_v43 = vmul.f32 %v4334_v28, %v4306_v63 }
 0x324   :  { %3327 = vpow2.f32 %v1201_v62  ;;  %v3324_v0 = vpop.eup %3323  ;;  %v1391_v2 = vsel %vm322_vm4, %v1375_v60, 0.0  ;;  %v1379_v62 = vmul.f32 %v4433_v47, %v1209_v52 }
 0x325   :  { %v1215_v59 = vmul.f32 %v3324_v0, %v3735_v31 }
 0x326   :  { %1407 = vadd.xlane.f32.xlu0 %v1406_v49  ;;  %v1213_v49 = vmul.f32 %v3322_v21, %v3735_v31 }
 0x327   :  { %v1251_v53 = vsel %vm322_vm4, %v1215_v59, 0.0  ;;  %v1385_v52 = vmul.f32 %v4463_v22, %v1215_v59 }
 0x328   :  { %v1245_v20 = vsel %vm322_vm4, %v1213_v49, 0.0  ;;  %v1383_v44 = vmul.f32 %v4451_v33, %v1213_v49  ;;  %v1841_v49 = vmul.f32 0.2, %v1825_v43 }
 0x329   :  { %v1421_v21 = vsel %vm322_vm4, %v1385_v52, 0.0 }
 0x32a   :  { %1413 = vadd.xlane.f32.xlu0 %v1412_v57  ;;  %v3326_v5 = vpop.eup %3325  ;;  %v1415_v47 = vsel %vm322_vm4, %v1383_v44, 0.0 }
 0x32b   :  { %1222 = vadd.xlane.f32.xlu1 %v1221_v50  ;;  %v1217_v57 = vmul.f32 %v3326_v5, %v3735_v31 }
 0x32d   :  { %v1257_v29 = vsel %vm322_vm4, %v1217_v57, 0.0 }
 0x32e   :  { %1419 = vadd.xlane.f32.xlu0 %v1418_v41  ;;  %v3328_v50 = vpop.eup %3327  ;;  %v2519_v41 = vrot.slane %v2497_v12, %v3645_v11 }
 0x32f   :  { %1228 = vadd.xlane.f32.xlu1 %v1227_v15  ;;  %v1219_v14 = vmul.f32 %v3328_v50, %v3735_v31  ;;  %v2496_v15 = vrot.slane %v2482_v17, %v3645_v11 }
 0x330   :  { %v2538_v37 = vrot.slane %v2519_v41, %v3638_v9 }
 0x331   :  { %v1263_v26 = vsel %vm322_vm4, %v1219_v14, 0.0  ;;  %v2512_v10 = vrot.slane %v2496_v15, %v3645_v11 }
 0x332   :  { %1425 = vadd.xlane.f32.xlu0 %v1424_v46  ;;  %v1403_v46 = vsel %vm322_vm4, %v1379_v62, 0.0 }
 0x333   :  { %1234 = vadd.xlane.f32.xlu1 %v1233_v30  ;;  %v2550_v32 = vrot.slane %v2512_v10, %v3638_v9  ;;  %v2528_v3 = vcombine.high %v2512_v10, %v2512_v10  ;;  %v1381_v30 = vmul.f32 %v4440_v40, %v1211_v48  ;;  %v1389_v48 = vmul.f32 %v1366_v55, %v1219_v14  ;;  %v4537_v14 = vpop.permute.xlu1 %1813 }
 0x335   :  { %v2558_v18 = vrot.slane %v2528_v3, %v3638_v9  ;;  %v1409_v8 = vsel %vm322_vm4, %v1381_v30, 0.0  ;;  %v1433_v33 = vsel %vm322_vm4, %v1389_v48, 0.0  ;;  %v2475_v30 = vrot.slane %v4381_v35, %v3638_v9 }
 0x336   :  { %1431 = vadd.xlane.f32.xlu0 %v1430_v39  ;;  %v1387_v39 = vmul.f32 %v4473_v36, %v1217_v57  ;;  %v1857_v36 = vmax.f32 %v1825_v43, %v1841_v49  ;;  %v2498_v57 = vcombine.high %v2496_v15, %v2496_v15 }
 0x337   :  { %1240 = vadd.xlane.f32.xlu1 %v1239_v56  ;;  %v4518_v56 = vpop.permute.xlu0 %1801 }
 0x338   :  { %v1427_v40 = vsel %vm322_vm4, %v1387_v39, 0.0  ;;  %v1827_v22 = vmul.f32 %v4518_v56, %v4306_v63  ;;  %v4534_v28 = vadd.f32 %v1857_v36, %v3757_v51  ;;  %v2526_v60 = vrot.slane %v2498_v57, %v3645_v11 }
 0x33a   :  { %1437 = vadd.xlane.f32.xlu0 %v1436_v54  ;;  %v1843_v54 = vmul.f32 0.2, %v1827_v22  ;;  %v2554_v10 = vrot.slane %v2526_v60, %v3638_v9 }
 0x33b   :  { %1246 = vadd.xlane.f32.xlu1 %v1245_v20  ;;  %v4525_v0 = vpop.permute.xlu0 %1805  ;;  %v2527_v20 = vcombine.high %v4375_v25, %v4375_v25 }
 0x33c   :  { %v1828_v55 = vmul.f32 %v4525_v0, %v4314_v45  ;;  %v1859_v5 = vmax.f32 %v1827_v22, %v1843_v54 }
 0x33d   :  { %v2542_v50 = vrot.slane %v2527_v20, %v3638_v9 }
 0x33e   :  { %v4544_v25 = vadd.f32 %v1859_v5, %v3757_v51 }
 0x33f   :  { %1252 = vadd.xlane.f32.xlu1 %v1251_v53  ;;  %v4531_v59 = vpop.permute.xlu0 %1809  ;;  %v1844_v53 = vmul.f32 0.2, %v1828_v55 }
 0x341   :  { %v1860_v17 = vmax.f32 %v1828_v55, %v1844_v53 }
 0x343   :  { %1258 = vadd.xlane.f32.xlu1 %v1257_v29  ;;  %v2529_v29 = vcombine.high %v2519_v41, %v2519_v41  ;;  %v4539_v12 = vpop.permute.xlu0 %1817  ;;  %v1905_v41 = vsel %vm322_vm4, %v4544_v25, -inf }
 0x345   :  { %v2546_v15 = vrot.slane %v2529_v29, %v3638_v9 }
 0x347   :  { %1264 = vadd.xlane.f32.xlu1 %v1263_v26  ;;  %v1899_v26 = vsel %vm322_vm4, %v4534_v28, -inf }
 0x34b   :  { %1392 = vadd.xlane.f32.xlu1 %v1391_v2 }
 0x34f   :  { %1398 = vadd.xlane.f32.xlu1 %v1397_v19 }
 0x350   :  { %2568 = vperm.xlu0 %3256, %v2538_v37   ;;  %v4551_v37 = vadd.f32 %v1860_v17, %v3749_v42 }
 0x353   :  { %1404 = vadd.xlane.f32.xlu1 %v1403_v46 }
 0x354   :  { %2580 = vperm.xlu0 %3256, %v2550_v32   ;;  %v2530_v32 = vcombine.high %v2526_v60, %v2526_v60 }
 0x357   :  { %1410 = vadd.xlane.f32.xlu1 %v1409_v8  ;;  %v1908_v8 = vsel %vm322_vm4, %v4551_v37, -inf }
 0x358   :  { %2588 = vperm.xlu0 %3256, %v2558_v18  }
 0x35b   :  { %1416 = vadd.xlane.f32.xlu1 %v1415_v47 }
 0x35f   :  { %1422 = vadd.xlane.f32.xlu1 %v1421_v21 }
 0x363   :  { %1428 = vadd.xlane.f32.xlu1 %v1427_v40 }
 0x367   :  { %1434 = vadd.xlane.f32.xlu1 %v1433_v33 }
 0x377   :  { %1900 = vmax.xlane.f32.xlu0 %v1899_v26 }
 0x378   :  { %2572 = vperm.xlu1 %3255, %v2542_v50  }
 0x37b   :  { %v1889_v2 = vpop.xlane.xlu0 %1888  ;;  %v1886_v58 = vpop.xlane.xlu1 %1885  ;;  %1906 = vmax.xlane.f32.xlu0 %v1905_v41 }
 0x37c   :  { %v1933_v19 = vsub.f32 %v4326_v16, %v1889_v2  ;;  %v1932_v62 = vsub.f32 %v4323_v7, %v1886_v58  ;;  %2576 = vperm.xlu1 %3255, %v2546_v15   ;;  %v2562_v16 = vrot.slane %v2530_v32, %v3638_v9  ;;  %v4564_v7 = vld [vmem:[%s5509_s0 + $0x10] sm:$0xff] }
 0x37d   :  { %v2068_v47 = vrot.slane %v4564_v7, %v3645_v11 }
 0x37e   :  { %v1950_v3 = vmul.f32 1.442695, %v1933_v19  ;;  %v1948_v46 = vmul.f32 1.442695, %v1932_v62 }
 0x37f   :  { %v2468_v18 = vpop.xlane.xlu0 %2467  ;;  %v2471_v44 = vpop.xlane.xlu1 %2470  ;;  %1909 = vmax.xlane.f32.xlu0 %v1908_v8  ;;  %v2084_v48 = vrot.slane %v2068_v47, %v3645_v11  ;;  %v2076_v55 = vcombine.high %v2068_v47, %v2068_v47 }
 0x380   :  { %3329 = vpow2.f32 %v1950_v3  ;;  %2584 = vperm.xlu1 %3255, %v2554_v10   ;;  %v2476_v35 = vadd.f32 %v2475_v30, %v2468_v18 }
 0x381   :  { %3331 = vpow2.f32 %v1948_v46  ;;  %v2106_v19 = vcombine.high %v2084_v48, %v2084_v48 }
 0x382   :  { %v4572_v33 = vmul.f32 %v4311_v6, %v2476_v35  ;;  %v1826_v35 = vmul.f32 %v4518_v56, %v4314_v45 }
 0x383   :  { %v1892_v52 = vpop.xlane.xlu0 %1891  ;;  %v1895_v21 = vpop.xlane.xlu1 %1894 }
 0x384   :  { %v1934_v39 = vsub.f32 %v4344_v24, %v1892_v52  ;;  %v1935_v40 = vsub.f32 %v4337_v1, %v1895_v21  ;;  %2592 = vperm.xlu1 %3255, %v2562_v16   ;;  %v2113_v24 = vrot.slane %v2084_v48, %v3638_v9  ;;  %v4618_v16 = vrot.slane %v2106_v19, %v3638_v9 }
 0x385   :  { %v1842_v48 = vmul.f32 0.2, %v1826_v35 }
 0x386   :  { %v1952_v43 = vmul.f32 1.442695, %v1934_v39  ;;  %v1954_v49 = vmul.f32 1.442695, %v1935_v40  ;;  %v2477_v39 = vadd.f32 %v2475_v30, %v2471_v44 }
 0x387   :  { %v2565_v22 = vpop.permute.xlu1 %2564  ;;  %v1898_v36 = vpop.xlane.xlu0 %1897  ;;  %v1858_v56 = vmax.f32 %v1826_v35, %v1842_v48 }
 0x388   :  { %3333 = vpow2.f32 %v1952_v43  ;;  %v2595_v54 = vmul.f32 %v2565_v22, %v4572_v33  ;;  %v1936_v20 = vsub.f32 %v4353_v23, %v1898_v36  ;;  %v4589_v23 = vrot.slane %v2076_v55, %v3645_v11 }
 0x389   :  { %3335 = vpow2.f32 %v1954_v49  ;;  %v1829_v43 = vmul.f32 %v4525_v0, %v4306_v63  ;;  %v4636_v36 = vmul.f32 %v4303_v61, %v2477_v39 }
 0x38a   :  { %v3330_v1 = vpop.eup %3329  ;;  %v2611_v5 = vmul.f32 0.2, %v2595_v54  ;;  %v1956_v57 = vmul.f32 1.442695, %v1936_v20  ;;  %v2117_v58 = vrot.slane %v4589_v23, %v3638_v9 }
 0x38b   :  { %v3332_v53 = vpop.eup %3331  ;;  %v4578_v6 = vmul.f32 %v3330_v1, %v3745_v38  ;;  %v4580_v29 = vpop.xlane.xlu0 %1225  ;;  %v2596_v55 = vmul.f32 %v2565_v22, %v4636_v36 }
 0x38c   :  { %v2627_v50 = vmax.f32 %v2595_v54, %v2611_v5  ;;  %5552 = vst [vmem:[#allocation36_spill] sm:$0xff] %v4580_v29  ;;  %v4583_v17 = vmul.f32 %v3332_v53, %v3735_v31  ;;  %3337 = vpow2.f32 %v1956_v57  ;;  %v1845_v54 = vmul.f32 0.2, %v1829_v43 }
 0x38d   :  { %v4586_v26 = vmul.f32 %v2113_v24, %v4578_v6  ;;  %v2612_v44 = vmul.f32 0.2, %v2596_v55 }
 0x38e   :  { %v4592_v60 = vadd.f32 %v2627_v50, %v3749_v42  ;;  %v4595_v15 = vmul.f32 %v2113_v24, %v4583_v17  ;;  %v1861_v30 = vmax.f32 %v1829_v43, %v1845_v54  ;;  %v4642_v24 = vadd.f32 %v1858_v56, %v3749_v42 }
 0x38f   :  { %v4597_v2 = vpop.xlane.xlu0 %1231  ;;  %v2628_v5 = vmax.f32 %v2596_v55, %v2612_v44 }
 0x390   :  { %5553 = vst [vmem:[#allocation37_spill] sm:$0xff] %v4597_v2  ;;  %v2659_v41 = vsel %vm322_vm4, %v4592_v60, -inf  ;;  %v1902_v0 = vsel %vm322_vm4, %v4642_v24, -inf  ;;  %v4649_v61 = vadd.f32 %v1861_v30, %v3757_v51 }
 0x391   :  { %2660 = vmax.xlane.f32.xlu0 %v2659_v41  ;;  %v4656_v57 = vadd.f32 %v2628_v5, %v3757_v51 }
 0x392   :  { %v3334_v10 = vpop.eup %3333  ;;  %v1911_v22 = vsel %vm322_vm4, %v4649_v61, -inf }
 0x393   :  { %v3336_v62 = vpop.eup %3335  ;;  %v4604_v32 = vmul.f32 %v3334_v10, %v3735_v31  ;;  %v4606_v3 = vpop.xlane.xlu0 %1237  ;;  %v2662_v41 = vsel %vm322_vm4, %v4656_v57, -inf }
 0x394   :  { %5554 = vst [vmem:[#allocation38_spill] sm:$0xff] %v4606_v3  ;;  %v4609_v46 = vmul.f32 %v3336_v62, %v3745_v38 }
 0x395   :  { %v4612_v18 = vmul.f32 %v2117_v58, %v4604_v32 }
 0x396   :  { %v4615_v8 = vmul.f32 %v2117_v58, %v4609_v46  ;;  %v3338_v47 = vpop.eup %3337 }
 0x397   :  { %v4622_v52 = vpop.xlane.xlu0 %1243  ;;  %v4625_v21 = vmul.f32 %v3338_v47, %v3735_v31 }
 0x398   :  { %5555 = vst [vmem:[#allocation39_spill] sm:$0xff] %v4622_v52 }
 0x399   :  { %v4629_v40 = vmul.f32 %v4618_v16, %v4625_v21 }
 0x39b   :  { %v4633_v49 = vpop.xlane.xlu0 %1249 }
 0x39c   :  { %5556 = vst [vmem:[#allocation40_spill] sm:$0xff] %v4633_v49 }
 0x39f   :  { %v4639_v20 = vpop.xlane.xlu0 %1255 }
 0x3a0   :  { %5557 = vst [vmem:[#allocation41_spill] sm:$0xff] %v4639_v20 }
 0x3a3   :  { %v4644_v1 = vpop.xlane.xlu0 %1261 }
 0x3a4   :  { %5558 = vst [vmem:[#allocation42_spill] sm:$0xff] %v4644_v1 }
 0x3a7   :  { %v4651_v53 = vpop.xlane.xlu0 %1267 }
 0x3a8   :  { %5559 = vst [vmem:[#allocation43_spill] sm:$0xff] %v4651_v53  ;;  %1903 = vmax.xlane.f32.xlu1 %v1902_v0 }
 0x3ab   :  { %v4658_v50 = vpop.xlane.xlu0 %1395 }
 0x3ac   :  { %5560 = vst [vmem:[#allocation44_spill] sm:$0xff] %v4658_v50  ;;  %1912 = vmax.xlane.f32.xlu1 %v1911_v22 }
 0x3af   :  { %v4662_v58 = vpop.xlane.xlu0 %1401 }
 0x3b0   :  { %5561 = vst [vmem:[#allocation45_spill] sm:$0xff] %v4662_v58  ;;  %2663 = vmax.xlane.f32.xlu1 %v2662_v41 }
 0x3b3   :  { %v4664_v10 = vpop.xlane.xlu0 %1407 }
 0x3b4   :  { %5562 = vst [vmem:[#allocation46_spill] sm:$0xff] %v4664_v10 }
 0x3b7   :  { %v4666_v19 = vpop.xlane.xlu0 %1413 }
 0x3b8   :  { %5563 = vst [vmem:[#allocation47_spill] sm:$0xff] %v4666_v19  ;;  %v4668_v62 = vpop.xlane.xlu1 %1222 }
 0x3b9   :  { %5564 = vst [vmem:[#allocation48_spill] sm:$0xff] %v4668_v62 }
 0x3bb   :  { %v4670_v47 = vpop.xlane.xlu0 %1419 }
 0x3bc   :  { %5565 = vst [vmem:[#allocation49_spill] sm:$0xff] %v4670_v47  ;;  %v4672_v35 = vpop.xlane.xlu1 %1228 }
 0x3bd   :  { %5566 = vst [vmem:[#allocation50_spill] sm:$0xff] %v4672_v35  ;;  %v1833_v35 = vmul.f32 %v4537_v14, %v4306_v63 }
 0x3bf   :  { %v4674_v39 = vpop.xlane.xlu0 %1425  ;;  %v1849_v29 = vmul.f32 0.2, %v1833_v35 }
 0x3c0   :  { %5567 = vst [vmem:[#allocation51_spill] sm:$0xff] %v4674_v39  ;;  %v4676_v48 = vpop.xlane.xlu1 %1234 }
 0x3c1   :  { %5568 = vst [vmem:[#allocation52_spill] sm:$0xff] %v4676_v48 }
 0x3c3   :  { %v4680_v56 = vpop.xlane.xlu0 %1431 }
 0x3c4   :  { %v4678_v43 = vpop.xlane.xlu1 %1240  ;;  %5570 = vst [vmem:[#allocation54_spill] sm:$0xff] %v4680_v56 }
 0x3c5   :  { %5569 = vst [vmem:[#allocation53_spill] sm:$0xff] %v4678_v43 }
 0x3c7   :  { %v4684_v55 = vpop.xlane.xlu0 %1437 }
 0x3c8   :  { %v4682_v54 = vpop.xlane.xlu1 %1246  ;;  %5572 = vst [vmem:[#allocation56_spill] sm:$0xff] %v4684_v55 }
 0x3c9   :  { %5571 = vst [vmem:[#allocation55_spill] sm:$0xff] %v4682_v54 }
 0x3cc   :  { %v4686_v30 = vpop.xlane.xlu1 %1252 }
 0x3cd   :  { %5573 = vst [vmem:[#allocation57_spill] sm:$0xff] %v4686_v30 }
 0x3cf   :  { %v2569_v44 = vpop.permute.xlu0 %2568 }
 0x3d0   :  { %v4688_v5 = vpop.xlane.xlu1 %1258  ;;  %v2597_v0 = vmul.f32 %v2569_v44, %v4572_v33  ;;  %v2598_v22 = vmul.f32 %v2569_v44, %v4636_v36 }
 0x3d1   :  { %5574 = vst [vmem:[#allocation58_spill] sm:$0xff] %v4688_v5 }
 0x3d2   :  { %v2613_v41 = vmul.f32 0.2, %v2597_v0  ;;  %v2614_v39 = vmul.f32 0.2, %v2598_v22 }
 0x3d4   :  { %v4692_v47 = vpop.xlane.xlu1 %1264  ;;  %v2629_v19 = vmax.f32 %v2597_v0, %v2613_v41  ;;  %v2630_v10 = vmax.f32 %v2598_v22, %v2614_v39 }
 0x3d5   :  { %5575 = vst [vmem:[#allocation59_spill] sm:$0xff] %v4692_v47 }
 0x3d6   :  { %v4695_v56 = vadd.f32 %v2630_v10, %v3757_v51  ;;  %v4698_v55 = vadd.f32 %v2629_v19, %v3749_v42 }
 0x3d8   :  { %v4700_v58 = vpop.xlane.xlu1 %1392  ;;  %v2668_v50 = vsel %vm322_vm4, %v4695_v56, -inf  ;;  %v2665_v44 = vsel %vm322_vm4, %v4698_v55, -inf }
 0x3d9   :  { %5576 = vst [vmem:[#allocation60_spill] sm:$0xff] %v4700_v58  ;;  %2669 = vmax.xlane.f32.xlu1 %v2668_v50  ;;  %2666 = vmax.xlane.f32.xlu0 %v2665_v44  ;;  %v1830_v58 = vmul.f32 %v4531_v59, %v4314_v45  ;;  %v1831_v50 = vmul.f32 %v4531_v59, %v4306_v63 }
 0x3db   :  { %v1846_v5 = vmul.f32 0.2, %v1830_v58 }
 0x3dc   :  { %v4706_v53 = vpop.xlane.xlu1 %1398 }
 0x3dd   :  { %5577 = vst [vmem:[#allocation61_spill] sm:$0xff] %v4706_v53  ;;  %v2581_v53 = vpop.permute.xlu0 %2580  ;;  %v1862_v49 = vmax.f32 %v1830_v58, %v1846_v5 }
 0x3e0   :  { %v4708_v0 = vpop.xlane.xlu1 %1404 }
 0x3e1   :  { %5578 = vst [vmem:[#allocation62_spill] sm:$0xff] %v4708_v0 }
 0x3e4   :  { %v4710_v39 = vpop.xlane.xlu1 %1410 }
 0x3e5   :  { %5579 = vst [vmem:[#allocation63_spill] sm:$0xff] %v4710_v39 }
 0x3e8   :  { %v4712_v10 = vpop.xlane.xlu1 %1416 }
 0x3e9   :  { %5580 = vst [vmem:[#allocation64_spill] sm:$0xff] %v4712_v10 }
 0x3ec   :  { %v4714_v19 = vpop.xlane.xlu1 %1422 }
 0x3ed   :  { %5581 = vst [vmem:[#allocation65_spill] sm:$0xff] %v4714_v19  ;;  %v1847_v19 = vmul.f32 0.2, %v1831_v50 }
 0x3f0   :  { %v4716_v22 = vpop.xlane.xlu1 %1428 }
 0x3f1   :  { %5582 = vst [vmem:[#allocation66_spill] sm:$0xff] %v4716_v22  ;;  %v2603_v22 = vmul.f32 %v2581_v53, %v4572_v33 }
 0x3f4   :  { %v4718_v41 = vpop.xlane.xlu1 %1434 }
 0x3f5   :  { %5583 = vst [vmem:[#allocation67_spill] sm:$0xff] %v4718_v41  ;;  %v2604_v41 = vmul.f32 %v2581_v53, %v4636_v36  ;;  %v1863_v53 = vmax.f32 %v1831_v50, %v1847_v19 }
 0x3f8   :  { %v2573_v44 = vpop.permute.xlu1 %2572 }
 0x3f9   :  { %v2599_v0 = vmul.f32 %v2573_v44, %v4572_v33  ;;  %v2600_v39 = vmul.f32 %v2573_v44, %v4636_v36 }
 0x3fb   :  { %v2615_v47 = vmul.f32 0.2, %v2599_v0  ;;  %v2616_v10 = vmul.f32 0.2, %v2600_v39 }
 0x3fc   :  { %v2577_v30 = vpop.permute.xlu1 %2576 }
 0x3fd   :  { %v2631_v54 = vmax.f32 %v2599_v0, %v2615_v47  ;;  %v2632_v43 = vmax.f32 %v2600_v39, %v2616_v10  ;;  %v2601_v48 = vmul.f32 %v2577_v30, %v4572_v33  ;;  %v2602_v59 = vmul.f32 %v2577_v30, %v4636_v36  ;;  %v2589_v10 = vpop.permute.xlu0 %2588 }
 0x3fe   :  { %v1832_v47 = vmul.f32 %v4537_v14, %v4314_v45  ;;  %v2619_v0 = vmul.f32 0.2, %v2603_v22  ;;  %v2620_v39 = vmul.f32 0.2, %v2604_v41 }
 0x3ff   :  { %v2617_v62 = vmul.f32 0.2, %v2601_v48  ;;  %v2618_v44 = vmul.f32 0.2, %v2602_v59  ;;  %v4733_v1 = vadd.f32 %v2632_v43, %v3757_v51  ;;  %v4736_v20 = vadd.f32 %v2631_v54, %v3749_v42 }
 0x400   :  { %v2585_v3 = vpop.permute.xlu1 %2584  ;;  %v4751_v54 = vadd.f32 %v1863_v53, %v3757_v51  ;;  %v2636_v5 = vmax.f32 %v2604_v41, %v2620_v39 }
 0x401   :  { %v2633_v30 = vmax.f32 %v2601_v48, %v2617_v62  ;;  %v2634_v52 = vmax.f32 %v2602_v59, %v2618_v44  ;;  %v2674_v2 = vsel %vm322_vm4, %v4733_v1, -inf  ;;  %v2671_v43 = vsel %vm322_vm4, %v4736_v20, -inf }
 0x402   :  { %2675 = vmax.xlane.f32.xlu1 %v2674_v2  ;;  %2672 = vmax.xlane.f32.xlu0 %v2671_v43  ;;  %v1848_v62 = vmul.f32 0.2, %v1832_v47  ;;  %v2635_v48 = vmax.f32 %v2603_v22, %v2619_v0  ;;  %v2605_v19 = vmul.f32 %v2585_v3, %v4572_v33  ;;  %v4755_v59 = vadd.f32 %v1862_v49, %v3749_v42 }
 0x403   :  { %v4745_v58 = vadd.f32 %v2634_v52, %v3757_v51  ;;  %v4748_v14 = vadd.f32 %v2633_v30, %v3749_v42  ;;  %v2606_v2 = vmul.f32 %v2585_v3, %v4636_v36  ;;  %v1865_v30 = vmax.f32 %v1833_v35, %v1849_v29 }
 0x404   :  { %v1901_v50 = vpop.xlane.xlu0 %1900  ;;  %v1834_v22 = vmul.f32 %v4539_v12, %v4314_v45  ;;  %v1835_v49 = vmul.f32 %v4539_v12, %v4306_v63  ;;  %v1864_v0 = vmax.f32 %v1832_v47, %v1848_v62  ;;  %v1914_v39 = vsel %vm322_vm4, %v4755_v59, -inf }
 0x405   :  { %v1937_v52 = vsub.f32 %v4534_v28, %v1901_v50  ;;  %v2680_v44 = vsel %vm322_vm4, %v4745_v58, -inf  ;;  %v2677_v53 = vsel %vm322_vm4, %v4748_v14, -inf  ;;  %v1917_v28 = vsel %vm322_vm4, %v4751_v54, -inf }
 0x406   :  { %2681 = vmax.xlane.f32.xlu1 %v2680_v44  ;;  %2678 = vmax.xlane.f32.xlu0 %v2677_v53  ;;  %v4772_v43 = vadd.f32 %v2636_v5, %v3757_v51  ;;  %v4775_v29 = vadd.f32 %v2635_v48, %v3749_v42  ;;  %v2621_v35 = vmul.f32 0.2, %v2605_v19  ;;  %v2622_v45 = vmul.f32 0.2, %v2606_v2 }
 0x407   :  { %v1958_v41 = vmul.f32 1.442695, %v1937_v52  ;;  %v4779_v12 = vadd.f32 %v1865_v30, %v3757_v51  ;;  %v1850_v47 = vmul.f32 0.2, %v1834_v22  ;;  %v1851_v62 = vmul.f32 0.2, %v1835_v49 }
 0x408   :  { %v1907_v3 = vpop.xlane.xlu0 %1906  ;;  %v4782_v52 = vadd.f32 %v1864_v0, %v3749_v42  ;;  %v2607_v5 = vmul.f32 %v2589_v10, %v4572_v33  ;;  %v2608_v48 = vmul.f32 %v2589_v10, %v4636_v36  ;;  %v2686_v53 = vsel %vm322_vm4, %v4772_v43, -inf }
 0x409   :  { %3339 = vpow2.f32 %v1958_v41  ;;  %v1939_v63 = vsub.f32 %v4544_v25, %v1907_v3  ;;  %v2683_v25 = vsel %vm322_vm4, %v4775_v29, -inf  ;;  %v2637_v41 = vmax.f32 %v2605_v19, %v2621_v35  ;;  %v2593_v3 = vpop.permute.xlu1 %2592 }
 0x40a   :  { %1918 = vmax.xlane.f32.xlu1 %v1917_v28  ;;  %1915 = vmax.xlane.f32.xlu0 %v1914_v39  ;;  %v2638_v30 = vmax.f32 %v2606_v2, %v2622_v45  ;;  %v2061_v0 = vcombine.high %v4564_v7, %v4564_v7  ;;  %v1867_v39 = vmax.f32 %v1835_v49, %v1851_v62  ;;  %v1920_v4 = vsel %vm322_vm4, %v4782_v52, -inf }
 0x40b   :  { %v1962_v50 = vmul.f32 1.442695, %v1939_v63  ;;  %v1923_v63 = vsel %vm322_vm4, %v4779_v12, -inf  ;;  %v1866_v34 = vmax.f32 %v1834_v22, %v1850_v47  ;;  %v2623_v19 = vmul.f32 0.2, %v2607_v5 }
 0x40c   :  { %v1910_v44 = vpop.xlane.xlu0 %1909  ;;  %v2624_v2 = vmul.f32 0.2, %v2608_v48  ;;  %v2609_v35 = vmul.f32 %v2593_v3, %v4572_v33  ;;  %v4800_v7 = vadd.f32 %v2638_v30, %v3757_v51  ;;  %v4803_v49 = vadd.f32 %v2637_v41, %v3749_v42 }
 0x40d   :  { %3341 = vpow2.f32 %v1962_v50  ;;  %v1940_v28 = vsub.f32 %v4551_v37, %v1910_v44  ;;  %v2610_v37 = vmul.f32 %v2593_v3, %v4636_v36  ;;  %v4806_v45 = vrot.slane %v2061_v0, %v3645_v11 }
 0x40e   :  { %2687 = vmax.xlane.f32.xlu1 %v2686_v53  ;;  %2684 = vmax.xlane.f32.xlu0 %v2683_v25  ;;  %v2108_v22 = vcombine.high %v4589_v23, %v4589_v23  ;;  %v4811_v33 = vadd.f32 %v1867_v39, %v3757_v51  ;;  %v2639_v36 = vmax.f32 %v2607_v5, %v2623_v19  ;;  %v2625_v53 = vmul.f32 0.2, %v2609_v35 }
 0x40f   :  { %v1964_v10 = vmul.f32 1.442695, %v1940_v28  ;;  %v2640_v62 = vmax.f32 %v2608_v48, %v2624_v2  ;;  %v4814_v50 = vadd.f32 %v1866_v34, %v3749_v42  ;;  %v2626_v25 = vmul.f32 0.2, %v2610_v37 }
 0x410   :  { %v2692_v41 = vsel %vm322_vm4, %v4800_v7, -inf  ;;  %v2125_v5 = vrot.slane %v2108_v22, %v3638_v9  ;;  %v4827_v34 = vrot.slane %v4806_v45, %v3645_v11  ;;  %v1929_v30 = vsel %vm322_vm4, %v4811_v33, -inf }
 0x411   :  { %3343 = vpow2.f32 %v1964_v10  ;;  %v1926_v3 = vsel %vm322_vm4, %v4814_v50, -inf  ;;  %v2641_v0 = vmax.f32 %v2609_v35, %v2625_v53  ;;  %v2642_v39 = vmax.f32 %v2610_v37, %v2626_v25 }
 0x412   :  { %1924 = vmax.xlane.f32.xlu1 %v1923_v63  ;;  %1921 = vmax.xlane.f32.xlu0 %v1920_v4  ;;  %v2689_v4 = vsel %vm322_vm4, %v4803_v49, -inf  ;;  %v4838_v10 = vadd.f32 %v2639_v36, %v3749_v42  ;;  %v2129_v19 = vrot.slane %v4827_v34, %v3638_v9 }
 0x413   :  { %v3340_v47 = vpop.eup %3339  ;;  %v4853_v36 = vadd.f32 %v2641_v0, %v3749_v42  ;;  %v2005_v42 = vsel %vm322_vm4, %v4609_v46, 0.0 }
 0x414   :  { %v1985_v44 = vmul.f32 %v3340_v47, %v3745_v38  ;;  %v2695_v37 = vsel %vm322_vm4, %v4838_v10, -inf  ;;  %v4850_v47 = vadd.f32 %v2642_v39, %v3757_v51 }
 0x415   :  { %v2701_v25 = vsel %vm322_vm4, %v4853_v36, -inf }
 0x416   :  { %2693 = vmax.xlane.f32.xlu1 %v2692_v41  ;;  %2690 = vmax.xlane.f32.xlu0 %v2689_v4  ;;  %v4822_v23 = vmul.f32 %v4618_v16, %v1985_v44  ;;  %v4835_v16 = vadd.f32 %v2640_v62, %v3757_v51  ;;  %v2704_v53 = vsel %vm322_vm4, %v4850_v47, -inf  ;;  %v1999_v41 = vsel %vm322_vm4, %v4578_v6, 0.0 }
 0x417   :  { %v3342_v48 = vpop.eup %3341  ;;  %v1996_v51 = vsel %vm322_vm4, %v4583_v17, 0.0  ;;  %v2002_v4 = vsel %vm322_vm4, %v4604_v32, 0.0 }
 0x418   :  { %v1987_v28 = vmul.f32 %v3342_v48, %v3745_v38  ;;  %v2698_v35 = vsel %vm322_vm4, %v4835_v16, -inf  ;;  %v2011_v48 = vsel %vm322_vm4, %v1985_v44, 0.0 }
 0x41a   :  { %1930 = vmax.xlane.f32.xlu1 %v1929_v30  ;;  %1927 = vmax.xlane.f32.xlu0 %v1926_v3  ;;  %v4840_v63 = vmul.f32 %v2125_v5, %v1987_v28  ;;  %v2008_v30 = vsel %vm322_vm4, %v4625_v21, 0.0  ;;  %v2017_v6 = vsel %vm322_vm4, %v1987_v28, 0.0 }
 0x41b   :  { %v3344_v2 = vpop.eup %3343 }
 0x41c   :  { %v1988_v22 = vmul.f32 %v3344_v2, %v3735_v31 }
 0x41e   :  { %2699 = vmax.xlane.f32.xlu1 %v2698_v35  ;;  %2696 = vmax.xlane.f32.xlu0 %v2695_v37  ;;  %v4855_v62 = vmul.f32 %v2129_v19, %v1988_v22 }
 0x422   :  { %2705 = vmax.xlane.f32.xlu1 %v2704_v53  ;;  %2702 = vmax.xlane.f32.xlu0 %v2701_v25 }
 0x426   :  { %2000 = vadd.xlane.f32.xlu1 %v1999_v41  ;;  %1997 = vadd.xlane.f32.xlu0 %v1996_v51 }
 0x42a   :  { %2006 = vadd.xlane.f32.xlu1 %v2005_v42  ;;  %2003 = vadd.xlane.f32.xlu0 %v2002_v4 }
 0x42e   :  { %2012 = vadd.xlane.f32.xlu1 %v2011_v48  ;;  %2009 = vadd.xlane.f32.xlu0 %v2008_v30 }
 0x432   :  { %2018 = vadd.xlane.f32.xlu1 %v2017_v6 }
 0x435   :  { %v1904_v17 = vpop.xlane.xlu1 %1903 }
 0x436   :  { %v1938_v3 = vsub.f32 %v4642_v24, %v1904_v17  ;;  %v2020_v24 = vsel %vm322_vm4, %v1988_v22, 0.0 }
 0x438   :  { %v1960_v0 = vmul.f32 1.442695, %v1938_v3 }
 0x439   :  { %v1913_v46 = vpop.xlane.xlu1 %1912 }
 0x43a   :  { %3345 = vpow2.f32 %v1960_v0  ;;  %v1941_v32 = vsub.f32 %v4649_v61, %v1913_v46  ;;  %v4884_v61 = vpop.xlane.xlu0 %2660 }
 0x43c   :  { %v1966_v39 = vmul.f32 1.442695, %v1941_v32 }
 0x43d   :  { %v4886_v41 = vpop.xlane.xlu1 %2663 }
 0x43e   :  { %3347 = vpow2.f32 %v1966_v39  ;;  %v2077_v39 = vcombine.high %v4806_v45, %v4806_v45 }
 0x444   :  { %v3346_v2 = vpop.eup %3345 }
 0x445   :  { %v1986_v44 = vmul.f32 %v3346_v2, %v3735_v31 }
 0x447   :  { %v2014_v21 = vsel %vm322_vm4, %v1986_v44, 0.0  ;;  %v4877_v35 = vmul.f32 %v2125_v5, %v1986_v44 }
 0x448   :  { %v3348_v37 = vpop.eup %3347  ;;  %2015 = vadd.xlane.f32.xlu0 %v2014_v21 }
 0x449   :  { %v1989_v28 = vmul.f32 %v3348_v37, %v3745_v38 }
 0x44b   :  { %v2023_v53 = vsel %vm322_vm4, %v1989_v28, 0.0  ;;  %v4882_v25 = vmul.f32 %v2129_v19, %v1989_v28 }
 0x44c   :  { %2021 = vadd.xlane.f32.xlu0 %v2020_v24  ;;  %2024 = vadd.xlane.f32.xlu1 %v2023_v53 }
 0x466   :  { %v4888_v51 = vpop.xlane.xlu0 %2666  ;;  %v4890_v5 = vpop.xlane.xlu1 %2669 }
 0x48f   :  { %v4892_v42 = vpop.xlane.xlu0 %2672  ;;  %v4894_v4 = vpop.xlane.xlu1 %2675 }
 0x493   :  { %v4896_v48 = vpop.xlane.xlu0 %2678  ;;  %v4898_v22 = vpop.xlane.xlu1 %2681 }
 0x497   :  { %v1916_v19 = vpop.xlane.xlu0 %1915  ;;  %v1919_v30 = vpop.xlane.xlu1 %1918 }
 0x498   :  { %v1942_v6 = vsub.f32 %v4755_v59, %v1916_v19  ;;  %v1943_v17 = vsub.f32 %v4751_v54, %v1919_v30  ;;  %v2105_v59 = vrot.slane %v2077_v39, %v3645_v11 }
 0x49a   :  { %v1968_v3 = vmul.f32 1.442695, %v1942_v6  ;;  %v1970_v0 = vmul.f32 1.442695, %v1943_v17  ;;  %v2133_v19 = vrot.slane %v2105_v59, %v3638_v9 }
 0x49b   :  { %v4902_v46 = vpop.xlane.xlu0 %2684  ;;  %v4904_v32 = vpop.xlane.xlu1 %2687 }
 0x49c   :  { %3349 = vpow2.f32 %v1968_v3 }
 0x49d   :  { %3351 = vpow2.f32 %v1970_v0 }
 0x49f   :  { %v1922_v2 = vpop.xlane.xlu0 %1921  ;;  %v1925_v44 = vpop.xlane.xlu1 %1924 }
 0x4a0   :  { %v1944_v21 = vsub.f32 %v4782_v52, %v1922_v2  ;;  %v1945_v37 = vsub.f32 %v4779_v12, %v1925_v44  ;;  %v2107_v44 = vcombine.high %v4827_v34, %v4827_v34 }
 0x4a2   :  { %v1972_v54 = vmul.f32 1.442695, %v1944_v21  ;;  %v1974_v28 = vmul.f32 1.442695, %v1945_v37 }
 0x4a3   :  { %v4911_v24 = vpop.xlane.xlu0 %2690  ;;  %v4913_v53 = vpop.xlane.xlu1 %2693 }
 0x4a4   :  { %3353 = vpow2.f32 %v1972_v54 }
 0x4a5   :  { %3355 = vpow2.f32 %v1974_v28 }
 0x4a6   :  { %v3350_v30 = vpop.eup %3349 }
 0x4a7   :  { %v3352_v45 = vpop.eup %3351  ;;  %v1928_v6 = vpop.xlane.xlu0 %1927  ;;  %v1990_v52 = vmul.f32 %v3350_v30, %v3735_v31 }
 0x4a8   :  { %v1931_v17 = vpop.xlane.xlu1 %1930  ;;  %v1946_v12 = vsub.f32 %v4814_v50, %v1928_v6  ;;  %v1991_v0 = vmul.f32 %v3352_v45, %v3745_v38  ;;  %v2707_v6 = vsub.f32 %v4592_v60, %v4884_v61  ;;  %v2709_v60 = vsub.f32 %v4698_v55, %v4888_v51 }
 0x4a9   :  { %v1947_v3 = vsub.f32 %v4811_v33, %v1931_v17  ;;  %v2026_v39 = vsel %vm322_vm4, %v1990_v52, 0.0  ;;  %v4921_v2 = vmul.f32 %v2133_v19, %v1990_v52  ;;  %v2137_v33 = vrot.slane %v2107_v44, %v3638_v9 }
 0x4aa   :  { %v1976_v21 = vmul.f32 1.442695, %v1946_v12  ;;  %2027 = vadd.xlane.f32.xlu0 %v2026_v39  ;;  %v2029_v54 = vsel %vm322_vm4, %v1991_v0, 0.0  ;;  %v4926_v28 = vmul.f32 %v2133_v19, %v1991_v0  ;;  %v2109_v19 = vcombine.high %v2105_v59, %v2105_v59 }
 0x4ab   :  { %v1978_v37 = vmul.f32 1.442695, %v1947_v3  ;;  %2030 = vadd.xlane.f32.xlu1 %v2029_v54  ;;  %v2708_v0 = vsub.f32 %v4656_v57, %v4886_v41  ;;  %v2723_v39 = vmul.f32 1.442695, %v2707_v6  ;;  %v2710_v54 = vsub.f32 %v4695_v56, %v4890_v5 }
 0x4ac   :  { %3357 = vpow2.f32 %v1976_v21  ;;  %v2141_v61 = vrot.slane %v2109_v19, %v3638_v9  ;;  %v2711_v57 = vsub.f32 %v4736_v20, %v4892_v42  ;;  %v2712_v56 = vsub.f32 %v4733_v1, %v4894_v4 }
 0x4ad   :  { %3359 = vpow2.f32 %v1978_v37  ;;  %v2725_v37 = vmul.f32 1.442695, %v2708_v0  ;;  %v2713_v20 = vsub.f32 %v4748_v14, %v4896_v48  ;;  %v2166_v42 = vsel %vm322_vm4, %v4595_v15, 0.0 }
 0x4ae   :  { %v3354_v50 = vpop.eup %3353  ;;  %3361 = vpow2.f32 %v2723_v39  ;;  %v2731_v5 = vmul.f32 1.442695, %v2711_v57  ;;  %v2169_v6 = vsel %vm322_vm4, %v4586_v26, 0.0  ;;  %v2715_v4 = vsub.f32 %v4775_v29, %v4902_v46  ;;  %v2700_v39 = vpop.xlane.xlu1 %2699 }
 0x4af   :  { %v3356_v30 = vpop.eup %3355  ;;  %v1992_v45 = vmul.f32 %v3354_v50, %v3735_v31  ;;  %v2727_v50 = vmul.f32 1.442695, %v2709_v60  ;;  %3363 = vpow2.f32 %v2725_v37  ;;  %v2735_v1 = vmul.f32 1.442695, %v2713_v20 }
 0x4b0   :  { %v1993_v34 = vmul.f32 %v3356_v30, %v3745_v38  ;;  %v2172_v14 = vsel %vm322_vm4, %v4612_v18, 0.0  ;;  %v2175_v15 = vsel %vm322_vm4, %v4615_v8, 0.0  ;;  %v2716_v19 = vsub.f32 %v4772_v43, %v4904_v32 }
 0x4b1   :  { %v2032_v17 = vsel %vm322_vm4, %v1992_v45, 0.0  ;;  %v4934_v52 = vmul.f32 %v2137_v33, %v1992_v45  ;;  %v2729_v45 = vmul.f32 1.442695, %v2710_v54  ;;  %3365 = vpow2.f32 %v2727_v50 }
 0x4b2   :  { %2033 = vadd.xlane.f32.xlu0 %v2032_v17  ;;  %v2035_v12 = vsel %vm322_vm4, %v1993_v34, 0.0  ;;  %v4937_v3 = vmul.f32 %v2137_v33, %v1993_v34  ;;  %v2733_v34 = vmul.f32 1.442695, %v2712_v56  ;;  %v2714_v17 = vsub.f32 %v4745_v58, %v4898_v22  ;;  %v2697_v58 = vpop.xlane.xlu0 %2696  ;;  %v2706_v54 = vpop.xlane.xlu1 %2705 }
 0x4b3   :  { %2036 = vadd.xlane.f32.xlu1 %v2035_v12  ;;  %3367 = vpow2.f32 %v2729_v45  ;;  %v2739_v12 = vmul.f32 1.442695, %v2715_v4  ;;  %v2717_v29 = vsub.f32 %v4803_v49, %v4911_v24  ;;  %v2178_v18 = vsel %vm322_vm4, %v4629_v40, 0.0 }
 0x4b4   :  { %3369 = vpow2.f32 %v2731_v5  ;;  %v2737_v26 = vmul.f32 1.442695, %v2714_v17  ;;  %v2181_v8 = vsel %vm322_vm4, %v4822_v23, 0.0  ;;  %v2741_v43 = vmul.f32 1.442695, %v2716_v19 }
 0x4b5   :  { %3371 = vpow2.f32 %v2733_v34  ;;  %v2718_v32 = vsub.f32 %v4800_v7, %v4913_v53  ;;  %v2743_v40 = vmul.f32 1.442695, %v2717_v29  ;;  %v2719_v24 = vsub.f32 %v4838_v10, %v2697_v58 }
 0x4b6   :  { %v3358_v44 = vpop.eup %3357  ;;  %3373 = vpow2.f32 %v2735_v1  ;;  %v2184_v23 = vsel %vm322_vm4, %v4877_v35, 0.0  ;;  %v2720_v37 = vsub.f32 %v4835_v16, %v2700_v39  ;;  %v2722_v45 = vsub.f32 %v4850_v47, %v2706_v54 }
 0x4b7   :  { %v3360_v21 = vpop.eup %3359  ;;  %v1994_v59 = vmul.f32 %v3358_v44, %v3735_v31  ;;  %3375 = vpow2.f32 %v2737_v26  ;;  %v2745_v53 = vmul.f32 1.442695, %v2718_v32  ;;  %v2747_v35 = vmul.f32 1.442695, %v2719_v24 }
 0x4b8   :  { %v1995_v33 = vmul.f32 %v3360_v21, %v3745_v38  ;;  %v3362_v48 = vpop.eup %3361  ;;  %3377 = vpow2.f32 %v2739_v12  ;;  %v2753_v47 = vmul.f32 1.442695, %v2722_v45 }
 0x4b9   :  { %v2038_v41 = vsel %vm322_vm4, %v1994_v59, 0.0  ;;  %v4951_v55 = vmul.f32 %v2141_v61, %v1994_v59  ;;  %v3364_v22 = vpop.eup %3363  ;;  %v4981_v46 = vmul.f32 %v3362_v48, %v3735_v31  ;;  %3379 = vpow2.f32 %v2741_v43 }
 0x4ba   :  { %2039 = vadd.xlane.f32.xlu0 %v2038_v41  ;;  %v2041_v51 = vsel %vm322_vm4, %v1995_v33, 0.0  ;;  %v4954_v30 = vmul.f32 %v2141_v61, %v1995_v33  ;;  %v4986_v49 = vmul.f32 %v3364_v22, %v3745_v38  ;;  %v2703_v61 = vpop.xlane.xlu0 %2702  ;;  %3381 = vpow2.f32 %v2743_v40  ;;  %v3528_v22 = vld [vmem:[%s5509_s0 + $0x18] sm:$0xff] }
 0x4bb   :  { %2042 = vadd.xlane.f32.xlu1 %v2041_v51  ;;  %v3366_v0 = vpop.eup %3365  ;;  %v2771_v44 = vsel %vm322_vm4, %v4981_v46, 0.0  ;;  %v2721_v59 = vsub.f32 %v4853_v36, %v2703_v61  ;;  %3383 = vpow2.f32 %v2745_v53  ;;  %v2749_v51 = vmul.f32 1.442695, %v2720_v37 }
 0x4bc   :  { %v4994_v21 = vmul.f32 %v3366_v0, %v3735_v31  ;;  %v2774_v10 = vsel %vm322_vm4, %v4986_v49, 0.0  ;;  %3385 = vpow2.f32 %v2747_v35  ;;  %v2843_v12 = vrot.slane %v3528_v22, %v3645_v11 }
 0x4bd   :  { %v3368_v60 = vpop.eup %3367  ;;  %v2751_v36 = vmul.f32 1.442695, %v2721_v59  ;;  %3387 = vpow2.f32 %v2749_v51 }
 0x4be   :  { %2167 = vadd.xlane.f32.xlu0 %v2166_v42  ;;  %v3370_v7 = vpop.eup %3369  ;;  %v5001_v33 = vmul.f32 %v3368_v60, %v3745_v38  ;;  %v2777_v57 = vsel %vm322_vm4, %v4994_v21, 0.0  ;;  %v2851_v32 = vcombine.high %v2843_v12, %v2843_v12 }
 0x4bf   :  { %2170 = vadd.xlane.f32.xlu1 %v2169_v6  ;;  %v3372_v50 = vpop.eup %3371  ;;  %v5006_v41 = vmul.f32 %v3370_v7, %v3735_v31  ;;  %3389 = vpow2.f32 %v2751_v36 }
 0x4c0   :  { %v3374_v16 = vpop.eup %3373  ;;  %v2780_v56 = vsel %vm322_vm4, %v5001_v33, 0.0  ;;  %v5012_v5 = vmul.f32 %v3372_v50, %v3745_v38  ;;  %3391 = vpow2.f32 %v2753_v47  ;;  %v2873_v35 = vrot.slane %v2851_v32, %v3645_v11 }
 0x4c1   :  { %v3376_v20 = vpop.eup %3375  ;;  %v2783_v42 = vsel %vm322_vm4, %v5006_v41, 0.0  ;;  %v5017_v6 = vmul.f32 %v3374_v16, %v3735_v31 }
 0x4c2   :  { %2173 = vadd.xlane.f32.xlu0 %v2172_v14  ;;  %v3378_v34 = vpop.eup %3377  ;;  %v2786_v17 = vsel %vm322_vm4, %v5012_v5, 0.0  ;;  %v5022_v1 = vmul.f32 %v3376_v20, %v3745_v38 }
 0x4c3   :  { %2176 = vadd.xlane.f32.xlu1 %v2175_v15  ;;  %v3380_v4 = vpop.eup %3379  ;;  %v2789_v14 = vsel %vm322_vm4, %v5017_v6, 0.0  ;;  %v5027_v48 = vmul.f32 %v3378_v34, %v3735_v31  ;;  %v2836_v34 = vcombine.high %v3528_v22, %v3528_v22 }
 0x4c4   :  { %v3382_v15 = vpop.eup %3381  ;;  %v2792_v26 = vsel %vm322_vm4, %v5022_v1, 0.0  ;;  %v5032_v19 = vmul.f32 %v3380_v4, %v3745_v38 }
 0x4c5   :  { %v3384_v58 = vpop.eup %3383  ;;  %v2795_v29 = vsel %vm322_vm4, %v5027_v48, 0.0 }
 0x4c6   :  { %2179 = vadd.xlane.f32.xlu0 %v2178_v18  ;;  %v5041_v18 = vmul.f32 %v3382_v15, %v3735_v31  ;;  %v2798_v0 = vsel %vm322_vm4, %v5032_v19, 0.0  ;;  %v5046_v39 = vmul.f32 %v3384_v58, %v3745_v38 }
 0x4c7   :  { %2182 = vadd.xlane.f32.xlu1 %v2181_v8  ;;  %v3386_v8 = vpop.eup %3385 }
 0x4c8   :  { %v3388_v43 = vpop.eup %3387  ;;  %v2801_v40 = vsel %vm322_vm4, %v5041_v18, 0.0  ;;  %v5051_v24 = vmul.f32 %v3386_v8, %v3735_v31  ;;  %v2804_v61 = vsel %vm322_vm4, %v5046_v39, 0.0 }
 0x4c9   :  { %v3390_v60 = vpop.eup %3389 }
 0x4ca   :  { %2185 = vadd.xlane.f32.xlu0 %v2184_v23  ;;  %v2859_v23 = vrot.slane %v2843_v12, %v3645_v11  ;;  %v3392_v7 = vpop.eup %3391  ;;  %v2807_v53 = vsel %vm322_vm4, %v5051_v24, 0.0  ;;  %v5062_v37 = vmul.f32 %v3390_v60, %v3735_v31  ;;  %v2892_v31 = vrot.slane %v2873_v35, %v3638_v9 }
 0x4cb   :  { %2772 = vadd.xlane.f32.xlu1 %v2771_v44  ;;  %v5057_v44 = vmul.f32 %v3388_v43, %v3745_v38  ;;  %v5069_v54 = vmul.f32 %v3392_v7, %v3745_v38 }
 0x4cc   :  { %v2813_v50 = vsel %vm322_vm4, %v5062_v37, 0.0  ;;  %v2881_v45 = vcombine.high %v2859_v23, %v2859_v23  ;;  %v2927_v38 = vmul.f32 %v2892_v31, %v4994_v21  ;;  %v2928_v20 = vmul.f32 %v2892_v31, %v5001_v33 }
 0x4cd   :  { %v2810_v59 = vsel %vm322_vm4, %v5057_v44, 0.0  ;;  %v2816_v16 = vsel %vm322_vm4, %v5069_v54, 0.0  ;;  %v2187_v21 = vsel %vm322_vm4, %v4840_v63, 0.0  ;;  %v2850_v33 = vrot.slane %v2836_v34, %v3645_v11 }
 0x4ce   :  { %2775 = vadd.xlane.f32.xlu0 %v2774_v10  ;;  %v2888_v10 = vrot.slane %v2859_v23, %v3638_v9 }
 0x4cf   :  { %2778 = vadd.xlane.f32.xlu1 %v2777_v57  ;;  %v2866_v63 = vrot.slane %v2850_v33, %v3645_v11  ;;  %v2852_v8 = vcombine.high %v2850_v33, %v2850_v33 }
 0x4d0   :  { %v2925_v57 = vmul.f32 %v2888_v10, %v4981_v46  ;;  %v2926_v51 = vmul.f32 %v2888_v10, %v4986_v49  ;;  %v2896_v46 = vrot.slane %v2881_v45, %v3638_v9  ;;  %v2950_v49 = vsel %vm322_vm4, %v2928_v20, 0.0  ;;  %v5590_v20 = vld [vmem:[#allocation13_spill] sm:$0xff] }
 0x4d2   :  { %2781 = vadd.xlane.f32.xlu0 %v2780_v56  ;;  %v2941_v36 = vsel %vm322_vm4, %v2925_v57, 0.0  ;;  %v2944_v56 = vsel %vm322_vm4, %v2926_v51, 0.0  ;;  %v2929_v47 = vmul.f32 %v2896_v46, %v5006_v41  ;;  %v2930_v4 = vmul.f32 %v2896_v46, %v5012_v5  ;;  %v5586_v51 = vld [vmem:[#allocation8_spill] sm:$0xff] }
 0x4d3   :  { %2784 = vadd.xlane.f32.xlu1 %v2783_v42  ;;  %v2947_v42 = vsel %vm322_vm4, %v2927_v38, 0.0  ;;  %v2190_v41 = vsel %vm322_vm4, %v4855_v62, 0.0  ;;  %v2193_v5 = vsel %vm322_vm4, %v4882_v25, 0.0  ;;  %v2196_v62 = vsel %vm322_vm4, %v4921_v2, 0.0 }
 0x4d4   :  { %v2880_v25 = vrot.slane %v2852_v8, %v3645_v11  ;;  %v2202_v2 = vsel %vm322_vm4, %v4934_v52, 0.0  ;;  %v2208_v52 = vsel %vm322_vm4, %v4951_v55, 0.0  ;;  %v491_v45 = vmax.f32 %v5586_v51, 1e-20  ;;  %v5598_v8 = vld [vmem:[#allocation12_spill] sm:$0xff] }
 0x4d5   :  { %v486_v46 = vmax.f32 %v5590_v20, 1e-20 }
 0x4d6   :  { %2787 = vadd.xlane.f32.xlu0 %v2786_v17  ;;  %v2883_v17 = vcombine.high %v2873_v35, %v2873_v35  ;;  %v2884_v7 = vcombine.high %v2880_v25, %v2880_v25 }
 0x4d7   :  { %2790 = vadd.xlane.f32.xlu1 %v2789_v14  ;;  %v2953_v14 = vsel %vm322_vm4, %v2929_v47, 0.0 }
 0x4d8   :  { %v2900_v15 = vrot.slane %v2883_v17, %v3638_v9  ;;  %v5593_v17 = vld [vmem:[#allocation18_spill] sm:$0xff] }
 0x4da   :  { %2793 = vadd.xlane.f32.xlu0 %v2792_v26  ;;  %v2956_v26 = vsel %vm322_vm4, %v2930_v4, 0.0  ;;  %v2931_v58 = vmul.f32 %v2900_v15, %v5017_v6  ;;  %v2932_v22 = vmul.f32 %v2900_v15, %v5022_v1  ;;  %v2199_v1 = vsel %vm322_vm4, %v4926_v28, 0.0 }
 0x4db   :  { %2796 = vadd.xlane.f32.xlu1 %v2795_v29  ;;  %v2904_v29 = vrot.slane %v2866_v63, %v3638_v9  ;;  %v2205_v28 = vsel %vm322_vm4, %v4937_v3, 0.0  ;;  %v2916_v3 = vrot.slane %v2884_v7, %v3638_v9  ;;  %v5594_v4 = vlaneseq }
 0x4dc   :  { %v2959_v12 = vsel %vm322_vm4, %v2931_v58, 0.0 }
 0x4dd   :  { %v2933_v6 = vmul.f32 %v2904_v29, %v5027_v48  ;;  %v2934_v43 = vmul.f32 %v2904_v29, %v5032_v19  ;;  %v2882_v48 = vcombine.high %v2866_v63, %v2866_v63  ;;  %v2940_v55 = vmul.f32 %v2916_v3, %v5069_v54  ;;  %v5587_v54 = vld [vmem:[#allocation9_spill] sm:$0xff]  ;;  %v5152_v63 = vpop.xlane.xlu1 %2000 }
 0x4de   :  { %2799 = vadd.xlane.f32.xlu0 %v2798_v0  ;;  %v2962_v0 = vsel %vm322_vm4, %v2932_v22, 0.0  ;;  %v702_v33 = vand.u32 127, %v5594_v4  ;;  %v5597_v22 = vld [vmem:[#allocation23_spill] sm:$0xff] }
 0x4df   :  { %2802 = vadd.xlane.f32.xlu1 %v2801_v40  ;;  %v2965_v32 = vsel %vm322_vm4, %v2933_v6, 0.0  ;;  %v2908_v40 = vrot.slane %v2880_v25, %v3638_v9  ;;  %v2968_v23 = vsel %vm322_vm4, %v2934_v43, 0.0  ;;  %v2986_v57 = vsel %vm322_vm4, %v2940_v55, 0.0  ;;  %v5599_v6 = vld [vmem:[#allocation5_spill] sm:$0xff] }
 0x4e0   :  { %v5157_v25 = vsub.s32 %v702_v33, %v5599_v6 }
 0x4e1   :  { %v2935_v11 = vmul.f32 %v2908_v40, %v5041_v18  ;;  %v2936_v19 = vmul.f32 %v2908_v40, %v5046_v39  ;;  %v2211_v39 = vsel %vm322_vm4, %v4954_v30, 0.0  ;;  %v485_v30 = vmax.f32 %v4190_v13, 1e-20 }
 0x4e2   :  { %2805 = vadd.xlane.f32.xlu0 %v2804_v61  ;;  %v2912_v61 = vrot.slane %v2882_v48, %v3638_v9 }
 0x4e3   :  { %2808 = vadd.xlane.f32.xlu1 %v2807_v53  ;;  %v2971_v60 = vsel %vm322_vm4, %v2935_v11, 0.0  ;;  %v2974_v53 = vsel %vm322_vm4, %v2936_v19, 0.0  ;;  %v5602_v11 = vld [vmem:[#allocation20_spill] sm:$0xff] }
 0x4e4   :  { %v2937_v18 = vmul.f32 %v2912_v61, %v5051_v24  ;;  %v2938_v10 = vmul.f32 %v2912_v61, %v5057_v44  ;;  %v483_v24 = vmax.f32 %v4188_v27, 1e-20  ;;  %v5584_v44 = vld [vmem:[#allocation6_spill] sm:$0xff] }
 0x4e5   :  { %v487_v31 = vmax.f32 %v5584_v44, 1e-20  ;;  %v5588_v27 = vld [vmem:[#allocation10_spill] sm:$0xff]  ;;  %v5609_v44 = vld [vmem:[#allocation39_spill] sm:$0xff] }
 0x4e6   :  { %2811 = vadd.xlane.f32.xlu0 %v2810_v59  ;;  %v2977_v35 = vsel %vm322_vm4, %v2937_v18, 0.0  ;;  %v2939_v59 = vmul.f32 %v2916_v3, %v5062_v37  ;;  %3393 = vrcp.f32 %v483_v24  ;;  %v495_v38 = vmax.f32 %v5588_v27, 1e-20  ;;  %v5604_v61 = vld [vmem:[#allocation22_spill] sm:$0xff] }
 0x4e7   :  { %2814 = vadd.xlane.f32.xlu1 %v2813_v50  ;;  %v2980_v50 = vsel %vm322_vm4, %v2938_v10, 0.0  ;;  %3395 = vrcp.f32 %v485_v30 }
 0x4e8   :  { %v2983_v9 = vsel %vm322_vm4, %v2939_v59, 0.0  ;;  %3397 = vrcp.f32 %v487_v31  ;;  %v1276_v31 = vmax.f32 %v5609_v44, 1e-20 }
 0x4ea   :  { %2817 = vadd.xlane.f32.xlu0 %v2816_v16  ;;  %v5585_v16 = vld [vmem:[#allocation7_spill] sm:$0xff] }
 0x4eb   :  { %2942 = vadd.xlane.f32.xlu1 %v2941_v36  ;;  %v489_v37 = vmax.f32 %v5585_v16, 1e-20  ;;  %v493_v36 = vmax.f32 %v5587_v54, 1e-20 }
 0x4ed   :  { %3399 = vrcp.f32 %v489_v37 }
 0x4ee   :  { %2945 = vadd.xlane.f32.xlu0 %v2944_v56  ;;  %v5589_v56 = vld [vmem:[#allocation11_spill] sm:$0xff]  ;;  %3401 = vrcp.f32 %v491_v45  ;;  %v5610_v45 = vld [vmem:[#allocation40_spill] sm:$0xff] }
 0x4ef   :  { %2948 = vadd.xlane.f32.xlu1 %v2947_v42  ;;  %v484_v13 = vmax.f32 %v5589_v56, 1e-20  ;;  %3403 = vrcp.f32 %v493_v36  ;;  %v5591_v42 = vld [vmem:[#allocation14_spill] sm:$0xff]  ;;  %v1278_v54 = vmax.f32 %v5610_v45, 1e-20  ;;  %v5626_v45 = vld [vmem:[#allocation35_spill] sm:$0xff] }
 0x4f0   :  { %v488_v34 = vmax.f32 %v5591_v42, 1e-20  ;;  %3405 = vrcp.f32 %v495_v38  ;;  %v5611_v38 = vld [vmem:[#allocation24_spill] sm:$0xff] }
 0x4f1   :  { %3407 = vrcp.f32 %v484_v13  ;;  %v5612_v13 = vld [vmem:[#allocation41_spill] sm:$0xff] }
 0x4f2   :  { %2951 = vadd.xlane.f32.xlu0 %v2950_v49  ;;  %v5592_v49 = vld [vmem:[#allocation16_spill] sm:$0xff]  ;;  %3409 = vrcp.f32 %v486_v46  ;;  %v1280_v20 = vmax.f32 %v5612_v13, 1e-20 }
 0x4f3   :  { %2188 = vadd.xlane.f32.xlu1 %v2187_v21  ;;  %v490_v47 = vmax.f32 %v5592_v49, 1e-20  ;;  %v492_v21 = vmax.f32 %v5593_v17, 1e-20  ;;  %3411 = vrcp.f32 %v488_v34  ;;  %v5613_v34 = vld [vmem:[#allocation26_spill] sm:$0xff] }
 0x4f5   :  { %3413 = vrcp.f32 %v490_v47  ;;  %v5614_v47 = vld [vmem:[#allocation42_spill] sm:$0xff] }
 0x4f6   :  { %2954 = vadd.xlane.f32.xlu0 %v2953_v14  ;;  %v5595_v14 = vld [vmem:[#allocation19_spill] sm:$0xff]  ;;  %3415 = vrcp.f32 %v492_v21  ;;  %v1282_v17 = vmax.f32 %v5614_v47, 1e-20 }
 0x4f7   :  { %2957 = vadd.xlane.f32.xlu1 %v2956_v26  ;;  %v494_v15 = vmax.f32 %v5595_v14, 1e-20  ;;  %v5149_v26 = vpop.xlane.xlu0 %1997 }
 0x4f9   :  { %3417 = vrcp.f32 %v494_v15  ;;  %v5616_v15 = vld [vmem:[#allocation48_spill] sm:$0xff] }
 0x4fa   :  { %2191 = vadd.xlane.f32.xlu0 %v2190_v41  ;;  %v5596_v41 = vld [vmem:[#allocation21_spill] sm:$0xff] }
 0x4fb   :  { %2194 = vadd.xlane.f32.xlu1 %v2193_v5  ;;  %v496_v58 = vmax.f32 %v5596_v41, 1e-20  ;;  %v3394_v5 = vpop.eup %3393  ;;  %v5173_v18 = vpop.xlane.xlu0 %2003  ;;  %v1269_v41 = vmax.f32 %v5616_v15, 1e-20 }
 0x4fc   :  { %v3396_v29 = vpop.eup %3395 }
 0x4fd   :  { %3419 = vrcp.f32 %v496_v58 }
 0x4fe   :  { %2960 = vadd.xlane.f32.xlu0 %v2959_v12  ;;  %v498_v12 = vmax.f32 %v5597_v22, 1e-20  ;;  %v5617_v22 = vld [vmem:[#allocation30_spill] sm:$0xff] }
 0x4ff   :  { %2963 = vadd.xlane.f32.xlu1 %v2962_v0  ;;  %v497_v0 = vmax.f32 %v5598_v8, 1e-20  ;;  %v5209_v58 = vpop.xlane.xlu0 %2009 }
 0x500   :  { %3421 = vrcp.f32 %v498_v12 }
 0x501   :  { %3423 = vrcp.f32 %v497_v0  ;;  %v5619_v0 = vld [vmem:[#allocation50_spill] sm:$0xff] }
 0x502   :  { %2197 = vadd.xlane.f32.xlu0 %v2196_v62  ;;  %v3398_v62 = vpop.eup %3397 }
 0x503   :  { %2200 = vadd.xlane.f32.xlu1 %v2199_v1  ;;  %v5600_v1 = vld [vmem:[#allocation15_spill] sm:$0xff]  ;;  %v3400_v40 = vpop.eup %3399  ;;  %v5166_v48 = vmul.f32 %v3398_v62, %v5602_v11  ;;  %v1271_v62 = vmax.f32 %v5619_v0, 1e-20  ;;  %v5228_v44 = vpop.xlane.xlu0 %2015 }
 0x504   :  { %v5160_v43 = vmul.f32 %v3394_v5, %v5600_v1  ;;  %v5170_v7 = vmul.f32 %v3400_v40, %v5604_v61  ;;  %v5620_v40 = vld [vmem:[#allocation31_spill] sm:$0xff] }
 0x505   :  { %v726_v51 = vrot.slane %v5166_v48, %v5157_v25 }
 0x506   :  { %2966 = vadd.xlane.f32.xlu0 %v2965_v32  ;;  %v707_v32 = vadd.s32 4294967288, %v702_v33  ;;  %v706_v24 = vrot.slane %v5160_v43, %v5157_v25  ;;  %v735_v27 = vrot.slane %v5170_v7, %v5157_v25  ;;  %v5615_v33 = vld [vmem:[#allocation28_spill] sm:$0xff] }
 0x507   :  { %2969 = vadd.xlane.f32.xlu1 %v2968_v23  ;;  %v5601_v23 = vld [vmem:[#allocation17_spill] sm:$0xff] }
 0x50a   :  { %2203 = vadd.xlane.f32.xlu0 %v2202_v2  ;;  %v5163_v2 = vmul.f32 %v3396_v29, %v5601_v23  ;;  %v5618_v29 = vld [vmem:[#allocation29_spill] sm:$0xff] }
 0x50b   :  { %2206 = vadd.xlane.f32.xlu1 %v2205_v28  ;;  %v5603_v28 = vld [vmem:[#allocation36_spill] sm:$0xff] }
 0x50c   :  { %v1270_v19 = vmax.f32 %v5603_v28, 1e-20  ;;  %v717_v37 = vrot.slane %v5163_v2, %v5157_v25  ;;  %v5621_v2 = vld [vmem:[#allocation52_spill] sm:$0xff] }
 0x50d   :  { %v1273_v11 = vmax.f32 %v5621_v2, 1e-20 }
 0x50e   :  { %2972 = vadd.xlane.f32.xlu0 %v2971_v60  ;;  %v3402_v60 = vpop.eup %3401  ;;  %3425 = vrcp.f32 %v1270_v19 }
 0x50f   :  { %2975 = vadd.xlane.f32.xlu1 %v2974_v53  ;;  %v5605_v53 = vld [vmem:[#allocation37_spill] sm:$0xff]  ;;  %v3404_v3 = vpop.eup %3403 }
 0x510   :  { %v3406_v55 = vpop.eup %3405 }
 0x511   :  { %v3408_v16 = vpop.eup %3407  ;;  %v5212_v12 = vmul.f32 %v3406_v55, %v5617_v22  ;;  %v5625_v55 = vld [vmem:[#allocation55_spill] sm:$0xff] }
 0x512   :  { %2209 = vadd.xlane.f32.xlu0 %v2208_v52  ;;  %v1272_v52 = vmax.f32 %v5605_v53, 1e-20  ;;  %v3410_v36 = vpop.eup %3409  ;;  %v5198_v56 = vmul.f32 %v3408_v16, %v5611_v38  ;;  %v5623_v53 = vld [vmem:[#allocation53_spill] sm:$0xff]  ;;  %v5631_v22 = vld [vmem:[#allocation43_spill] sm:$0xff] }
 0x513   :  { %2212 = vadd.xlane.f32.xlu1 %v2211_v39  ;;  %v5606_v39 = vld [vmem:[#allocation25_spill] sm:$0xff]  ;;  %v3412_v46 = vpop.eup %3411  ;;  %v660_v49 = vmul.f32 %v3410_v36, %v5613_v34 }
 0x514   :  { %v5176_v10 = vmul.f32 %v3402_v60, %v5606_v39  ;;  %3427 = vrcp.f32 %v1272_v52  ;;  %v3414_v21 = vpop.eup %3413  ;;  %v664_v14 = vmul.f32 %v3412_v46, %v5615_v33  ;;  %v5622_v60 = vld [vmem:[#allocation33_spill] sm:$0xff]  ;;  %v1275_v52 = vmax.f32 %v5623_v53, 1e-20  ;;  %v5629_v46 = vld [vmem:[#allocation58_spill] sm:$0xff] }
 0x515   :  { %v3416_v5 = vpop.eup %3415  ;;  %v668_v8 = vmul.f32 %v3414_v21, %v5618_v29  ;;  %v5627_v36 = vld [vmem:[#allocation57_spill] sm:$0xff]  ;;  %v1281_v34 = vmax.f32 %v5629_v46, 1e-20  ;;  %v5630_v21 = vld [vmem:[#allocation59_spill] sm:$0xff]  ;;  %v1284_v29 = vmax.f32 %v5631_v22, 1e-20 }
 0x516   :  { %2978 = vadd.xlane.f32.xlu0 %v2977_v35  ;;  %v5607_v35 = vld [vmem:[#allocation38_spill] sm:$0xff]  ;;  %v744_v42 = vrot.slane %v5176_v10, %v5157_v25  ;;  %v3418_v1 = vpop.eup %3417  ;;  %v672_v23 = vmul.f32 %v3416_v5, %v5620_v40  ;;  %v1279_v38 = vmax.f32 %v5627_v36, 1e-20  ;;  %v1283_v33 = vmax.f32 %v5630_v21, 1e-20  ;;  %v5633_v53 = vld [vmem:[#allocation45_spill] sm:$0xff] }
 0x517   :  { %2981 = vadd.xlane.f32.xlu1 %v2980_v50  ;;  %v1274_v59 = vmax.f32 %v5607_v35, 1e-20  ;;  %v5179_v50 = vpop.xlane.xlu1 %2006  ;;  %v3420_v28 = vpop.eup %3419  ;;  %v676_v61 = vmul.f32 %v3418_v1, %v5622_v60  ;;  %v5624_v35 = vld [vmem:[#allocation34_spill] sm:$0xff]  ;;  %v2045_v60 = vmax.f32 %v5152_v63, 1e-20  ;;  %v5635_v63 = vld [vmem:[#allocation61_spill] sm:$0xff] }
 0x518   :  { %v5640_v22 = vld [vmem:[#allocation49_spill] sm:$0xff] }
 0x519   :  { %3429 = vrcp.f32 %v1274_v59  ;;  %v680_v59 = vmul.f32 %v3420_v28, %v5624_v35  ;;  %v5632_v28 = vld [vmem:[#allocation44_spill] sm:$0xff] }
 0x51a   :  { %2984 = vadd.xlane.f32.xlu0 %v2983_v9  ;;  %v5608_v9 = vld [vmem:[#allocation27_spill] sm:$0xff]  ;;  %3431 = vrcp.f32 %v1276_v31 }
 0x51b   :  { %2987 = vadd.xlane.f32.xlu1 %v2986_v57  ;;  %v5184_v30 = vmul.f32 %v3404_v3, %v5608_v9  ;;  %v5187_v57 = vsub.s32 %v707_v32, %v5599_v6  ;;  %3433 = vrcp.f32 %v1278_v54  ;;  %v5216_v6 = vpop.xlane.xlu1 %2012  ;;  %v3422_v3 = vpop.eup %3421  ;;  %v1277_v9 = vmax.f32 %v5625_v55, 1e-20 }
 0x51c   :  { %3435 = vrcp.f32 %v1280_v20  ;;  %v3424_v31 = vpop.eup %3423  ;;  %v684_v54 = vmul.f32 %v3422_v3, %v5626_v45  ;;  %v5634_v3 = vld [vmem:[#allocation46_spill] sm:$0xff]  ;;  %v2046_v45 = vmax.f32 %v5173_v18, 1e-20  ;;  %v5638_v18 = vld [vmem:[#allocation63_spill] sm:$0xff] }
 0x51d   :  { %v753_v4 = vrot.slane %v5184_v30, %v5157_v25  ;;  %v711_v32 = vrot.slane %v5198_v56, %v5187_v57  ;;  %v721_v19 = vrot.slane %v660_v49, %v5187_v57  ;;  %3437 = vrcp.f32 %v1282_v17  ;;  %v5628_v56 = vld [vmem:[#allocation32_spill] sm:$0xff]  ;;  %v3426_v49 = vpop.eup %3425 }
 0x51e   :  { %v730_v39 = vrot.slane %v664_v14, %v5187_v57  ;;  %3439 = vrcp.f32 %v1269_v41  ;;  %v739_v16 = vrot.slane %v668_v8, %v5187_v57  ;;  %v682_v13 = vmul.f32 %v3424_v31, %v5628_v56  ;;  %v3428_v15 = vpop.eup %3427  ;;  %v5636_v56 = vld [vmem:[#allocation62_spill] sm:$0xff] }
 0x51f   :  { %3441 = vrcp.f32 %v1271_v62  ;;  %v748_v20 = vrot.slane %v672_v23, %v5187_v57  ;;  %v722_v47 = vsel %vm712_vm5, %v721_v19, %v717_v37  ;;  %v757_v17 = vrot.slane %v676_v61, %v5187_v57  ;;  %v5239_v14 = vpop.xlane.xlu1 %2018 }
 0x520   :  { %3443 = vrcp.f32 %v1273_v11  ;;  %v731_v41 = vsel %vm712_vm5, %v730_v39, %v726_v51  ;;  %v766_v5 = vrot.slane %v680_v59, %v5187_v57  ;;  %v713_v37 = vsel %vm712_vm5, %v711_v32, %v706_v24  ;;  %v5263_v24 = vpop.xlane.xlu0 %2021 }
 0x521   :  { %3445 = vrcp.f32 %v1275_v52  ;;  %v740_v0 = vsel %vm712_vm5, %v739_v16, %v735_v27  ;;  %v775_v48 = vrot.slane %v684_v54, %v5187_v57  ;;  %v762_v62 = vrot.slane %v5212_v12, %v5157_v25 }
 0x522   :  { %3447 = vrcp.f32 %v1277_v9  ;;  %v778_v1 = vsel %vm777_vm6, %v722_v47, %v713_v37  ;;  %v749_v43 = vsel %vm712_vm5, %v748_v20, %v744_v42  ;;  %v771_v27 = vrot.slane %v682_v13, %v5157_v25  ;;  %v5637_v47 = vld [vmem:[#allocation60_spill] sm:$0xff] }
 0x523   :  { %v3430_v8 = vpop.eup %3429  ;;  %3449 = vrcp.f32 %v1279_v38  ;;  %v780_v32 = vsel %vm779_vm7, %v731_v41, %v778_v1  ;;  %v758_v12 = vsel %vm712_vm5, %v757_v17, %v753_v4  ;;  %v5271_v40 = vpop.xlane.xlu1 %2024  ;;  %v2044_v42 = vmax.f32 %v5149_v26, 1e-20  ;;  %v5639_v41 = vld [vmem:[#allocation47_spill] sm:$0xff] }
 0x524   :  { %v3432_v51 = vpop.eup %3431  ;;  %3451 = vrcp.f32 %v1281_v34  ;;  %v782_v10 = vsel %vm781_vm8, %v740_v0, %v780_v32  ;;  %v767_v2 = vsel %vm712_vm5, %v766_v5, %v762_v62  ;;  %v5277_v19 = vmul.f32 %v3426_v49, %v5632_v28  ;;  %v5642_v0 = vld [vmem:[#allocation64_spill] sm:$0xff] }
 0x525   :  { %v3434_v7 = vpop.eup %3433  ;;  %3453 = vrcp.f32 %v1283_v33  ;;  %v776_v30 = vsel %vm712_vm5, %v775_v48, %v771_v27  ;;  %v784_v4 = vsel %vm783_vm9, %v749_v43, %v782_v10  ;;  %v1446_v52 = vmul.f32 %v3428_v15, %v5633_v53  ;;  %v5643_v43 = vld [vmem:[#allocation65_spill] sm:$0xff] }
 0x526   :  { %v3436_v23 = vpop.eup %3435  ;;  %3455 = vrcp.f32 %v1284_v29  ;;  %v1450_v39 = vmul.f32 %v3430_v8, %v5634_v3  ;;  %v786_v26 = vsel %vm785_vm10, %v758_v12, %v784_v4  ;;  %v1494_v38 = vrot.slane %v5277_v19, %v5187_v57  ;;  %v5641_v8 = vld [vmem:[#allocation51_spill] sm:$0xff] }
 0x527   :  { %v3438_v11 = vpop.eup %3437  ;;  %v788_v9 = vsel %vm787_vm11, %v767_v2, %v786_v26  ;;  %3457 = vrcp.f32 %v2044_v42  ;;  %v2047_v20 = vmax.f32 %v5179_v50, 1e-20  ;;  %v1503_v34 = vrot.slane %v1446_v52, %v5187_v57  ;;  %v5645_v2 = vld [vmem:[#allocation54_spill] sm:$0xff]  ;;  %v5647_v52 = vld [vmem:[#allocation56_spill] sm:$0xff] }
 0x528   :  { %v3440_v61 = vpop.eup %3439  ;;  %v5293_v54 = vsel %vm789_vm12, %v776_v30, %v788_v9  ;;  %3459 = vrcp.f32 %v2045_v60  ;;  %v1512_v49 = vrot.slane %v1450_v39, %v5187_v57  ;;  %v1454_v5 = vmul.f32 %v3432_v51, %v5639_v41  ;;  %v5644_v51 = vld [vmem:[#allocation66_spill] sm:$0xff]  ;;  %v5646_v30 = vld [vmem:[#allocation67_spill] sm:$0xff] }
 0x529   :  { %v3442_v59 = vpop.eup %3441  ;;  %v1440_v17 = vmul.f32 %v3440_v61, %v5637_v47  ;;  %v1458_v29 = vmul.f32 %v3434_v7, %v5640_v22  ;;  %v1462_v37 = vmul.f32 %v3436_v23, %v5641_v8  ;;  %3461 = vrcp.f32 %v2046_v45 }
 0x52a   :  { %v3444_v31 = vpop.eup %3443  ;;  %v1444_v16 = vmul.f32 %v3442_v59, %v5635_v63  ;;  %v2048_v32 = vmax.f32 %v5209_v58, 1e-20  ;;  %3463 = vrcp.f32 %v2047_v20  ;;  %v2049_v7 = vmax.f32 %v5216_v6, 1e-20 }
 0x52b   :  { %v3446_v36 = vpop.eup %3445  ;;  %v1448_v13 = vmul.f32 %v3444_v31, %v5636_v56  ;;  %v1466_v28 = vmul.f32 %v3438_v11, %v5645_v2  ;;  %v1490_v19 = vrot.slane %v1440_v17, %v5157_v25  ;;  %v1521_v58 = vrot.slane %v1454_v5, %v5187_v57 }
 0x52c   :  { %v3448_v46 = vpop.eup %3447  ;;  %v1452_v21 = vmul.f32 %v3446_v36, %v5638_v18  ;;  %v1499_v1 = vrot.slane %v1444_v16, %v5157_v25  ;;  %v1530_v53 = vrot.slane %v1458_v29, %v5187_v57  ;;  %3465 = vrcp.f32 %v2048_v32 }
 0x52d   :  { %v3450_v15 = vpop.eup %3449  ;;  %v1456_v50 = vmul.f32 %v3448_v46, %v5642_v0  ;;  %v1508_v10 = vrot.slane %v1448_v13, %v5157_v25  ;;  %v2050_v59 = vmax.f32 %v5228_v44, 1e-20  ;;  %v1539_v9 = vrot.slane %v1462_v37, %v5187_v57 }
 0x52e   :  { %v3452_v62 = vpop.eup %3451  ;;  %v1460_v27 = vmul.f32 %v3450_v15, %v5643_v43  ;;  %v1517_v60 = vrot.slane %v1452_v21, %v5157_v25  ;;  %v1504_v11 = vsel %vm712_vm5, %v1503_v34, %v1499_v1  ;;  %3467 = vrcp.f32 %v2049_v7 }
 0x52f   :  { %v3454_v12 = vpop.eup %3453  ;;  %v1464_v42 = vmul.f32 %v3452_v62, %v5644_v51  ;;  %v1526_v39 = vrot.slane %v1456_v50, %v5157_v25  ;;  %v1513_v31 = vsel %vm712_vm5, %v1512_v49, %v1508_v10  ;;  %v1548_v45 = vrot.slane %v1466_v28, %v5187_v57 }
 0x530   :  { %v3456_v23 = vpop.eup %3455  ;;  %v1468_v4 = vmul.f32 %v3454_v12, %v5646_v30  ;;  %v1535_v26 = vrot.slane %v1460_v27, %v5157_v25  ;;  %v1495_v36 = vsel %vm712_vm5, %v1494_v38, %v1490_v19  ;;  %v1522_v56 = vsel %vm712_vm5, %v1521_v58, %v1517_v60 }
 0x531   :  { %v1470_v3 = vmul.f32 %v3456_v23, %v5647_v52  ;;  %v1544_v63 = vrot.slane %v1464_v42, %v5157_v25  ;;  %v3458_v16 = vpop.eup %3457  ;;  %v1559_v34 = vsel %vm777_vm6, %v1504_v11, %v1495_v36  ;;  %v1531_v49 = vsel %vm712_vm5, %v1530_v53, %v1526_v39 }
 0x532   :  { %v1553_v13 = vrot.slane %v1468_v4, %v5157_v25  ;;  %v3460_v46 = vpop.eup %3459  ;;  %v1560_v18 = vsel %vm779_vm7, %v1513_v31, %v1559_v34  ;;  %v1540_v21 = vsel %vm712_vm5, %v1539_v9, %v1535_v26  ;;  %3469 = vrcp.f32 %v2050_v59 }
 0x533   :  { %v1557_v44 = vrot.slane %v1470_v3, %v5187_v57  ;;  %v1561_v15 = vsel %vm781_vm8, %v1522_v56, %v1560_v18  ;;  %v1549_v5 = vsel %vm712_vm5, %v1548_v45, %v1544_v63  ;;  %v3462_v22 = vpop.eup %3461  ;;  %v2051_v34 = vmax.f32 %v5239_v14, 1e-20 }
 0x534   :  { %v1562_v0 = vsel %vm783_vm9, %v1531_v49, %v1561_v15  ;;  %v3464_v50 = vpop.eup %3463 }
 0x535   :  { %v1558_v37 = vsel %vm712_vm5, %v1557_v44, %v1553_v13  ;;  %v1563_v43 = vsel %vm785_vm10, %v1540_v21, %v1562_v0  ;;  %3471 = vrcp.f32 %v2051_v34  ;;  %v2052_v21 = vmax.f32 %v5263_v24, 1e-20 }
 0x536   :  { %v3466_v51 = vpop.eup %3465 }
 0x537   :  { %v5284_v35 = vpop.xlane.xlu0 %2027  ;;  %3473 = vrcp.f32 %v2052_v21 }
 0x538   :  { %v5287_v55 = vpop.xlane.xlu1 %2030  ;;  %v3468_v23 = vpop.eup %3467 }
 0x53c   :  { %v3470_v58 = vpop.eup %3469 }
 0x53f   :  { %v5303_v33 = vpop.xlane.xlu0 %2033 }
 0x540   :  { %v5309_v48 = vpop.xlane.xlu1 %2036  ;;  %v2056_v0 = vmax.f32 %v5303_v33, 1e-20 }
 0x547   :  { %v5321_v61 = vpop.xlane.xlu0 %2039 }
 0x548   :  { %v5327_v6 = vpop.xlane.xlu1 %2042 }
 0x54b   :  { %v2168_v20 = vpop.xlane.xlu0 %2167 }
 0x54c   :  { %v2215_v47 = vmul.f32 %v3458_v16, %v2168_v20  ;;  %v2171_v17 = vpop.xlane.xlu1 %2170 }
 0x54d   :  { %v2217_v38 = vmul.f32 %v3460_v46, %v2171_v17 }
 0x54e   :  { %v2265_v41 = vrot.slane %v2215_v47, %v5157_v25  ;;  %792 = vxpose.xlu1.b32.start.end [1/1] (short) (narrow) %v5293_v54, 16  ;;  %v1564_v54 = vsel %vm787_vm11, %v1549_v5, %v1563_v43  ;;  %v3472_v5 = vpop.eup %3471  ;;  %v2058_v43 = vmax.f32 %v5321_v61, 1e-20 }
 0x54f   :  { %v2269_v29 = vrot.slane %v2217_v38, %v5187_v57  ;;  %v2174_v8 = vpop.xlane.xlu0 %2173  ;;  %v1565_v10 = vsel %vm789_vm12, %v1558_v37, %v1564_v54  ;;  %v2053_v38 = vmax.f32 %v5271_v40, 1e-20  ;;  %v2055_v37 = vmax.f32 %v5287_v55, 1e-20  ;;  %v3474_v54 = vpop.eup %3473 }
 0x550   :  { %v2219_v62 = vmul.f32 %v3462_v22, %v2174_v8  ;;  %v2177_v1 = vpop.xlane.xlu1 %2176  ;;  %v2059_v55 = vmax.f32 %v5327_v6, 1e-20 }
 0x551   :  { %v2270_v27 = vsel %vm712_vm5, %v2269_v29, %v2265_v41  ;;  %v2221_v32 = vmul.f32 %v3464_v50, %v2177_v1  ;;  %3475 = vrcp.f32 %v2053_v38  ;;  %v2054_v29 = vmax.f32 %v5284_v35, 1e-20 }
 0x552   :  { %v2274_v12 = vrot.slane %v2219_v62, %v5157_v25  ;;  %v2057_v62 = vmax.f32 %v5309_v48, 1e-20 }
 0x553   :  { %v2278_v42 = vrot.slane %v2221_v32, %v5187_v57  ;;  %1567 = vxpose.xlu1.b32.start.end [1/1] (short) (narrow) %v1565_v10, 16  ;;  %v2180_v7 = vpop.xlane.xlu0 %2179  ;;  %3477 = vrcp.f32 %v2054_v29 }
 0x554   :  { %v2223_v2 = vmul.f32 %v3466_v51, %v2180_v7  ;;  %v2183_v28 = vpop.xlane.xlu1 %2182  ;;  %3479 = vrcp.f32 %v2055_v37 }
 0x555   :  { %v2279_v19 = vsel %vm712_vm5, %v2278_v42, %v2274_v12  ;;  %v2225_v60 = vmul.f32 %v3468_v23, %v2183_v28  ;;  %3481 = vrcp.f32 %v2056_v0 }
 0x556   :  { %v2334_v30 = vsel %vm777_vm6, %v2279_v19, %v2270_v27  ;;  %v2283_v4 = vrot.slane %v2223_v2, %v5157_v25  ;;  %3483 = vrcp.f32 %v2057_v62 }
 0x557   :  { %v2287_v53 = vrot.slane %v2225_v60, %v5187_v57  ;;  %v2186_v52 = vpop.xlane.xlu0 %2185  ;;  %3485 = vrcp.f32 %v2058_v43 }
 0x558   :  { %v2227_v3 = vmul.f32 %v3470_v58, %v2186_v52  ;;  %v2773_v39 = vpop.xlane.xlu1 %2772  ;;  %3487 = vrcp.f32 %v2059_v55 }
 0x559   :  { %v2288_v11 = vsel %vm712_vm5, %v2287_v53, %v2283_v4  ;;  %v2819_v27 = vmax.f32 %v2773_v39, 1e-20 }
 0x55a   :  { %v2335_v26 = vsel %vm779_vm7, %v2288_v11, %v2334_v30  ;;  %v2292_v24 = vrot.slane %v2227_v3, %v5157_v25 }
 0x55b   :  { %v2776_v59 = vpop.xlane.xlu0 %2775  ;;  %v3476_v48 = vpop.eup %3475  ;;  %3489 = vrcp.f32 %v2819_v27 }
 0x55c   :  { %v2779_v9 = vpop.xlane.xlu1 %2778  ;;  %v2820_v12 = vmax.f32 %v2776_v59, 1e-20 }
 0x55d   :  { %v2821_v51 = vmax.f32 %v2779_v9, 1e-20  ;;  %v3478_v58 = vpop.eup %3477 }
 0x55e   :  { %3491 = vrcp.f32 %v2820_v12  ;;  %v3480_v3 = vpop.eup %3479 }
 0x55f   :  { %v2782_v31 = vpop.xlane.xlu0 %2781  ;;  %3493 = vrcp.f32 %v2821_v51  ;;  %v3482_v59 = vpop.eup %3481 }
 0x560   :  { %v5363_v63 = vpop.xlane.xlu1 %2784  ;;  %v2822_v42 = vmax.f32 %v2782_v31, 1e-20 }
 0x561   :  { %v2823_v23 = vmax.f32 %v5363_v63, 1e-20  ;;  %v3484_v63 = vpop.eup %3483 }
 0x562   :  { %3495 = vrcp.f32 %v2822_v42 }
 0x563   :  { %v5365_v16 = vpop.xlane.xlu0 %2787  ;;  %3497 = vrcp.f32 %v2823_v23 }
 0x564   :  { %v5367_v45 = vpop.xlane.xlu1 %2790  ;;  %v2824_v2 = vmax.f32 %v5365_v16, 1e-20 }
 0x565   :  { %v2825_v19 = vmax.f32 %v5367_v45, 1e-20 }
 0x566   :  { %3499 = vrcp.f32 %v2824_v2 }
 0x567   :  { %v5369_v36 = vpop.xlane.xlu0 %2793  ;;  %3501 = vrcp.f32 %v2825_v19 }
 0x568   :  { %v5371_v56 = vpop.xlane.xlu1 %2796  ;;  %v2826_v60 = vmax.f32 %v5369_v36, 1e-20 }
 0x569   :  { %v2827_v53 = vmax.f32 %v5371_v56, 1e-20  ;;  %v3486_v56 = vpop.eup %3485 }
 0x56a   :  { %3503 = vrcp.f32 %v2826_v60  ;;  %v3488_v21 = vpop.eup %3487 }
 0x56b   :  { %v5373_v13 = vpop.xlane.xlu0 %2799  ;;  %3505 = vrcp.f32 %v2827_v53 }
 0x56c   :  { %v5375_v20 = vpop.xlane.xlu1 %2802  ;;  %v2828_v39 = vmax.f32 %v5373_v13, 1e-20 }
 0x56d   :  { %v2829_v9 = vmax.f32 %v5375_v20, 1e-20 }
 0x56e   :  { %3507 = vrcp.f32 %v2828_v39 }
 0x56f   :  { %v5377_v46 = vpop.xlane.xlu0 %2805  ;;  %3509 = vrcp.f32 %v2829_v9 }
 0x570   :  { %v5379_v44 = vpop.xlane.xlu1 %2808  ;;  %v2830_v16 = vmax.f32 %v5377_v46, 1e-20 }
 0x571   :  { %v2831_v20 = vmax.f32 %v5379_v44, 1e-20 }
 0x572   :  { %3511 = vrcp.f32 %v2830_v16 }
 0x573   :  { %v5382_v49 = vpop.xlane.xlu0 %2811  ;;  %3513 = vrcp.f32 %v2831_v20 }
 0x574   :  { %v5384_v47 = vpop.xlane.xlu1 %2814 }
 0x575   :  { %v2833_v62 = vmax.f32 %v5384_v47, 1e-20 }
 0x577   :  { %v5386_v17 = vpop.xlane.xlu0 %2817 }
 0x578   :  { %v5388_v18 = vpop.xlane.xlu1 %2942  ;;  %v2834_v44 = vmax.f32 %v5386_v17, 1e-20 }
 0x57b   :  { %v5392_v15 = vpop.xlane.xlu0 %2945 }
 0x57c   :  { %v5394_v41 = vpop.xlane.xlu1 %2948 }
 0x57f   :  { %v5396_v14 = vpop.xlane.xlu0 %2951 }
 0x580   :  { %v2189_v22 = vpop.xlane.xlu1 %2188 }
 0x581   :  { %v2229_v8 = vmul.f32 %v3472_v5, %v2189_v22  ;;  %v3490_v5 = vpop.eup %3489 }
 0x582   :  { %v3492_v29 = vpop.eup %3491  ;;  %v2990_v42 = vmul.f32 %v3490_v5, %v5388_v18 }
 0x583   :  { %v2296_v40 = vrot.slane %v2229_v8, %v5187_v57  ;;  %v5403_v50 = vpop.xlane.xlu0 %2954  ;;  %v2832_v8 = vmax.f32 %v5382_v49, 1e-20  ;;  %v3494_v0 = vpop.eup %3493 }
 0x584   :  { %v5406_v1 = vpop.xlane.xlu1 %2957 }
 0x585   :  { %v2297_v35 = vsel %vm712_vm5, %v2296_v40, %v2292_v24  ;;  %v3496_v40 = vpop.eup %3495  ;;  %3515 = vrcp.f32 %v2832_v8 }
 0x586   :  { %v2336_v33 = vsel %vm781_vm8, %v2297_v35, %v2335_v26  ;;  %v3498_v55 = vpop.eup %3497  ;;  %3517 = vrcp.f32 %v2833_v62 }
 0x587   :  { %v2192_v32 = vpop.xlane.xlu0 %2191  ;;  %v3500_v27 = vpop.eup %3499  ;;  %3519 = vrcp.f32 %v2834_v44  ;;  %v2998_v23 = vmul.f32 %v3498_v55, %v5403_v50  ;;  %v3040_v50 = vrot.slane %v2990_v42, %v5157_v25 }
 0x588   :  { %v2195_v10 = vpop.xlane.xlu1 %2194  ;;  %v2231_v61 = vmul.f32 %v3474_v54, %v2192_v32  ;;  %v3502_v54 = vpop.eup %3501  ;;  %v3000_v2 = vmul.f32 %v3500_v27, %v5406_v1 }
 0x589   :  { %v2233_v7 = vmul.f32 %v3476_v48, %v2195_v10  ;;  %v3504_v10 = vpop.eup %3503  ;;  %v2996_v48 = vmul.f32 %v3496_v40, %v5396_v14 }
 0x58a   :  { %v2301_v30 = vrot.slane %v2231_v61, %v5157_v25  ;;  %v3506_v51 = vpop.eup %3505 }
 0x58b   :  { %v5413_v6 = vpop.xlane.xlu0 %2960  ;;  %v2305_v4 = vrot.slane %v2233_v7, %v5187_v57  ;;  %v3508_v61 = vpop.eup %3507  ;;  %v2994_v7 = vmul.f32 %v3494_v0, %v5394_v41  ;;  %v3053_v53 = vrot.slane %v2996_v48, %v5187_v57 }
 0x58c   :  { %v5416_v28 = vpop.xlane.xlu1 %2963  ;;  %v3510_v60 = vpop.eup %3509  ;;  %v3002_v14 = vmul.f32 %v3502_v54, %v5413_v6  ;;  %v3062_v6 = vrot.slane %v3000_v2, %v5187_v57 }
 0x58d   :  { %v2306_v45 = vsel %vm712_vm5, %v2305_v4, %v2301_v30  ;;  %v2992_v30 = vmul.f32 %v3492_v29, %v5392_v15  ;;  %v3004_v4 = vmul.f32 %v3504_v10, %v5416_v28  ;;  %v3512_v18 = vpop.eup %3511  ;;  %v3058_v15 = vrot.slane %v2998_v23, %v5157_v25 }
 0x58e   :  { %v2337_v22 = vsel %vm783_vm9, %v2306_v45, %v2336_v33  ;;  %v3514_v9 = vpop.eup %3513 }
 0x58f   :  { %v2198_v52 = vpop.xlane.xlu0 %2197  ;;  %v3071_v16 = vrot.slane %v3004_v4, %v5187_v57 }
 0x590   :  { %v2235_v11 = vmul.f32 %v3478_v58, %v2198_v52  ;;  %v2201_v26 = vpop.xlane.xlu1 %2200 }
 0x591   :  { %v2237_v31 = vmul.f32 %v3480_v3, %v2201_v26 }
 0x592   :  { %v2310_v36 = vrot.slane %v2235_v11, %v5157_v25 }
 0x593   :  { %v2314_v34 = vrot.slane %v2237_v31, %v5187_v57  ;;  %v2967_v13 = vpop.xlane.xlu0 %2966  ;;  %v3044_v31 = vrot.slane %v2992_v30, %v5187_v57 }
 0x594   :  { %v2970_v38 = vpop.xlane.xlu1 %2969  ;;  %v3006_v52 = vmul.f32 %v3506_v51, %v2967_v13 }
 0x595   :  { %v2315_v46 = vsel %vm712_vm5, %v2314_v34, %v2310_v36  ;;  %v3008_v3 = vmul.f32 %v3508_v61, %v2970_v38  ;;  %v3045_v62 = vsel %vm712_vm5, %v3044_v31, %v3040_v50 }
 0x596   :  { %v2338_v37 = vsel %vm785_vm10, %v2315_v46, %v2337_v22  ;;  %v3076_v13 = vrot.slane %v3006_v52, %v5157_v25 }
 0x597   :  { %v2204_v24 = vpop.xlane.xlu0 %2203 }
 0x598   :  { %v2239_v43 = vmul.f32 %v3482_v59, %v2204_v24  ;;  %v2207_v35 = vpop.xlane.xlu1 %2206  ;;  %v3049_v59 = vrot.slane %v2994_v7, %v5157_v25 }
 0x599   :  { %v2241_v33 = vmul.f32 %v3484_v63, %v2207_v35  ;;  %v3067_v63 = vrot.slane %v3002_v14, %v5157_v25 }
 0x59a   :  { %v2319_v32 = vrot.slane %v2239_v43, %v5157_v25  ;;  %v3054_v34 = vsel %vm712_vm5, %v3053_v53, %v3049_v59 }
 0x59b   :  { %v2323_v49 = vrot.slane %v2241_v33, %v5187_v57  ;;  %v2973_v12 = vpop.xlane.xlu0 %2972  ;;  %v3072_v43 = vsel %vm712_vm5, %v3071_v16, %v3067_v63  ;;  %v3109_v44 = vsel %vm777_vm6, %v3054_v34, %v3045_v62 }
 0x59c   :  { %v2976_v47 = vpop.xlane.xlu1 %2975  ;;  %v3010_v1 = vmul.f32 %v3510_v60, %v2973_v12 }
 0x59d   :  { %v2324_v17 = vsel %vm712_vm5, %v2323_v49, %v2319_v32  ;;  %v3012_v11 = vmul.f32 %v3512_v18, %v2976_v47 }
 0x59e   :  { %v2339_v19 = vsel %vm787_vm11, %v2324_v17, %v2338_v37  ;;  %v3085_v20 = vrot.slane %v3010_v1, %v5157_v25  ;;  %v3063_v37 = vsel %vm712_vm5, %v3062_v6, %v3058_v15 }
 0x59f   :  { %v2210_v58 = vpop.xlane.xlu0 %2209  ;;  %v3089_v22 = vrot.slane %v3012_v11, %v5187_v57  ;;  %v3110_v54 = vsel %vm779_vm7, %v3063_v37, %v3109_v44 }
 0x5a0   :  { %v2243_v41 = vmul.f32 %v3486_v56, %v2210_v58  ;;  %v2213_v39 = vpop.xlane.xlu1 %2212  ;;  %v3516_v56 = vpop.eup %3515  ;;  %v3111_v10 = vsel %vm781_vm8, %v3072_v43, %v3110_v54 }
 0x5a1   :  { %v2245_v26 = vmul.f32 %v3488_v21, %v2213_v39  ;;  %v3080_v21 = vrot.slane %v3008_v3, %v5187_v57  ;;  %v3518_v8 = vpop.eup %3517  ;;  %v3090_v49 = vsel %vm712_vm5, %v3089_v22, %v3085_v20  ;;  %v3214_v3 = vld [vmem:[%s5516_s7] ss:$0 sm:$0xff] }
 0x5a2   :  { %v2328_v28 = vrot.slane %v2243_v41, %v5157_v25  ;;  %v3520_v40 = vpop.eup %3519 }
 0x5a3   :  { %v2332_v45 = vrot.slane %v2245_v26, %v5187_v57  ;;  %v2979_v36 = vpop.xlane.xlu0 %2978  ;;  %v3081_v33 = vsel %vm712_vm5, %v3080_v21, %v3076_v13 }
 0x5a4   :  { %v3014_v38 = vmul.f32 %v3514_v9, %v2979_v36  ;;  %v2982_v5 = vpop.xlane.xlu1 %2981  ;;  %v3112_v51 = vsel %vm783_vm9, %v3081_v33, %v3111_v10 }
 0x5a5   :  { %v3016_v46 = vmul.f32 %v3516_v56, %v2982_v5  ;;  %v2333_v29 = vsel %vm712_vm5, %v2332_v45, %v2328_v28  ;;  %v3113_v17 = vsel %vm785_vm10, %v3090_v49, %v3112_v51 }
 0x5a6   :  { %v3094_v0 = vrot.slane %v3014_v38, %v5157_v25  ;;  %v2340_v24 = vsel %vm789_vm12, %v2333_v29, %v2339_v19 }
 0x5a7   :  { %v3098_v35 = vrot.slane %v3016_v46, %v5187_v57  ;;  %2342 = vxpose.xlu0.b32.start.end [1/1] (short) (narrow) %v2340_v24, 16  ;;  %v2985_v55 = vpop.xlane.xlu0 %2984 }
 0x5a8   :  { %v3018_v27 = vmul.f32 %v3518_v8, %v2985_v55  ;;  %v2988_v32 = vpop.xlane.xlu1 %2987 }
 0x5a9   :  { %v3020_v12 = vmul.f32 %v3520_v40, %v2988_v32  ;;  %v3099_v48 = vsel %vm712_vm5, %v3098_v35, %v3094_v0 }
 0x5aa   :  { %v3103_v47 = vrot.slane %v3018_v27, %v5157_v25  ;;  %v3114_v7 = vsel %vm787_vm11, %v3099_v48, %v3113_v17 }
 0x5ab   :  { %v3107_v42 = vrot.slane %v3020_v12, %v5187_v57 }
 0x5ad   :  { %v3108_v61 = vsel %vm712_vm5, %v3107_v42, %v3103_v47 }
 0x5ae   :  { %v3115_v23 = vsel %vm789_vm12, %v3108_v61, %v3114_v7 }
 0x5af   :  { %3117 = vxpose.xlu1.b32.start.end [1/1] (short) (narrow) %v3115_v23, 16 }
 0x5ce   :  { %v808_v2 = vpop.trf.xlu1 }
 0x5d2   :  { %v809_v19 = vpop.trf.xlu1 }
 0x5d6   :  { %v1583_v60 = vpop.trf.xlu1 }
 0x5d7   :  { %3151 = vrot.lane.b32.xlu0 %v1583_v60, %s3557_s18 }
 0x5da   :  { %v1584_v30 = vpop.trf.xlu1 }
 0x5db   :  { %3153 = vrot.lane.b32.xlu1 %v1584_v30, %s3557_s18 }
 0x627   :  { %v2358_v25 = vpop.trf.xlu0 }
 0x628   :  { %3159 = vrot.lane.b32.xlu1 %v2358_v25, %s3559_s22 }
 0x62b   :  { %v2359_v57 = vpop.trf.xlu0 }
 0x62c   :  { %3161 = vrot.lane.b32.xlu0 %v2359_v57, %s3559_s22  ;;  %s3563_s22 = smov [#allocation2]  }
 0x62f   :  { %v3133_v14 = vpop.trf.xlu1 }
 0x630   :  { %3167 = vrot.lane.b32.xlu1 %v3133_v14, %s3560_s23 }
 0x633   :  { %v3134_v4 = vpop.trf.xlu1 }
 0x634   :  { %3169 = vrot.lane.b32.xlu0 %v3134_v4, %s3560_s23  ;;  %s3197_s23 = sshll.u32 %s3563_s22, 4  ;;  %s3198_s23 = int_to_ptr.vmem [resolvable:$true] %s3197_s23 }
 0x635   :  { %s3529_s7 = scalar_lea.vmem %s3198_s23, 256  ;;  %p3534_p1 = scmp.lt.s32.totalorder %s3198_s23, %s3198_s23 }
 0x636   :  { %p3530_p0 = scmp.ne.s32.totalorder %s3198_s23, %s3529_s7  ;;  %p3535_p2 = scmp.lt.s32.totalorder %s3529_s7, %s3529_s7 }
 0x638   :  { %p3536_p3 = por %p3535_p2, %p3534_p1 }
 0x63a   :  { %p3537_p4 = pnand %p3536_p3, %p3530_p0 }
 0x649   :  { %v3152_v18 = vpop.permute.xlu0 %3151 }
 0x64a   :  { %v3173_v52 = vsel %vm49_vm1, %v808_v2, %v3152_v18 }
 0x64d   :  { %v3154_v58 = vpop.permute.xlu1 %3153 }
 0x64e   :  { %v3174_v26 = vsel %vm49_vm1, %v809_v19, %v3154_v58 }
 0x69a   :  { %v3160_v53 = vpop.permute.xlu1 %3159 }
 0x69b   :  { %v3175_v41 = vsel %vm322_vm4, %v3173_v52, %v3160_v53 }
 0x69e   :  { %v3162_v39 = vpop.permute.xlu0 %3161 }
 0x69f   :  { %v3176_v59 = vsel %vm322_vm4, %v3174_v26, %v3162_v39 }
 0x6a2   :  { %v3168_v50 = vpop.permute.xlu1 %3167 }
 0x6a3   :  { %v3178_v1 = vsel %vm3177_vm13, %v3175_v41, %v3168_v50 }
 0x6a4   :  { %v3187_v11 = vadd.f32 %v3214_v3, %v3178_v1 }
 0x6a6   :  { %3190 = vst.msk [vmem:[#allocation2] sm:$0xff] %vm3189_vm14, %v3187_v11  ;;  %v3170_v15 = vpop.permute.xlu0 %3169 }
 0x6a7   :  { %v3179_v6 = vsel %vm3177_vm13, %v3176_v59, %v3170_v15 }
 0x6a8   :  { %v3188_v28 = vadd.f32 %v3214_v3, %v3179_v6 }
 0x6aa   :  { %3191 = vst.msk [vmem:[#allocation2 + $0x8] sm:$0xff] %vm3189_vm14, %v3188_v28 }
 0x6ab   :  { %3540 = shalt.err (!%p3537_p4)
}
 0x6ac   :  { %s3541_s5 = scalar_lea.hbm %s5517_s8, 256 }
 0x6ad   :  { %p3542_p5 = scmp.ne.s32.totalorder %s5517_s8, %s3541_s5  ;;  %p3545_p6 = scmp.lt.u32.totalorder %s3541_s5, %s5517_s8 }
 0x6af   :  { %p3547_p7 = pnand %p3545_p6, %p3542_p5 }
 0x6b1   :  { %3550 = shalt.err (!%p3547_p7)
}
 0x6b2   :  { %s3564_s4 = smov 128  }
 0x6b3   :  { %3203 = dma.vmem_to_hbm [thread:$0]  %s3198_s23, 256, %s5517_s8, [#allocation3], %s3564_s4, %s3564_s4, %s3557_s18  }
 0x6b4   :  { %3551 = dma.done.wait [#allocation3], 256  }
 0x6b5   :  { %3552 = vsyncadd [#allocation3], 4294967040 }
 0x6b6   :  { %3207 = vsyncpa [#allocation3], 1 }

</bundles_post_ra>
